<compile_context>
chip_gen: v5e
topology: v5e:2x2
jax: 0.10.0
libtpu: 0.0.40
codegen_flags: <defaults>
</compile_context>

<pallas_src>
import numpy as np
import jax
import jax.numpy as jnp
from jax.experimental import pallas as pl
from jax.experimental.pallas import tpu as pltpu

# ---------------- configuration (small, consistent with the module) ---------
B = 2                   # batch
H = W = 8               # input_resolution
C = 32                  # dim
NUM_HEADS = 4
WINDOW = 4              # window_size
SHIFT = 2               # shift_size (SW-MSA branch -> exercises the attn mask)
MLP_RATIO = 4.0
HIDDEN = int(C * MLP_RATIO)
N = WINDOW * WINDOW     # tokens per window
L = H * W               # tokens per image
HEAD_DIM = C // NUM_HEADS
SCALE = HEAD_DIM ** (-0.5)
NW = (H // WINDOW) * (W // WINDOW)   # windows per image
EPS = 1e-5
NEG_INF = -1e9          # cross-window logits (exp underflows to exactly 0 in f32)

# row layout of the single packed small-vector operand (VEC_ROWS, 128)
ROW_G1, ROW_B1, ROW_G2, ROW_B2 = 0, 1, 2, 3
ROW_BQ, ROW_BK, ROW_BV, ROW_BPROJ = 4, 5, 6, 7
ROW_HEADMASK = 8                       # rows 8 .. 8+NUM_HEADS-1
ROW_BB1, ROW_BB2 = 12, 13
VEC_ROWS = 16


# ---------------- host-side precompute (deterministic) ----------------------
def build_attn_mask():
    """(nW, N, N) 0/-100 shift mask, exactly as the PyTorch code builds it."""
    img_mask = np.zeros((1, H, W, 1), dtype=np.float32)
    slices = (slice(0, -WINDOW), slice(-WINDOW, -SHIFT), slice(-SHIFT, None))
    cnt = 0
    for hs in slices:
        for ws_ in slices:
            img_mask[:, hs, ws_, :] = cnt
            cnt += 1
    mw = img_mask.reshape(1, H // WINDOW, WINDOW, W // WINDOW, WINDOW, 1)
    mw = mw.transpose(0, 1, 3, 2, 4, 5).reshape(-1, WINDOW * WINDOW)
    am = mw[:, None, :] - mw[:, :, None]
    am = np.where(am != 0, np.float32(-100.0), np.float32(0.0))
    return am.astype(np.float32)                      # (nW, N, N)


def build_rel_pos_index():
    coords = np.stack(np.meshgrid(np.arange(WINDOW), np.arange(WINDOW),
                                  indexing="ij"))     # (2, ws, ws)
    flat = coords.reshape(2, -1)
    rel = flat[:, :, None] - flat[:, None, :]         # (2, N, N)
    rel = rel.transpose(1, 2, 0).astype(np.int64)     # (N, N, 2)
    rel[:, :, 0] += WINDOW - 1
    rel[:, :, 1] += WINDOW - 1
    rel[:, :, 0] *= 2 * WINDOW - 1
    return rel.sum(-1)                                # (N, N)


def window_order_permutation():
    """idx[a] = original token row that lands at window-order position a after
    roll(-SHIFT,-SHIFT) + window_partition (mirrors the PyTorch ops)."""
    idx = np.arange(L).reshape(H, W)
    idx = np.roll(idx, shift=(-SHIFT, -SHIFT), axis=(0, 1))
    idx = idx.reshape(H // WINDOW, WINDOW, W // WINDOW, WINDOW)
    idx = idx.transpose(0, 2, 1, 3).reshape(-1)
    return idx


def build_attn_bias(rpb):
    """(nh, L, L) attention bias in ORIGINAL token order.

    Built block-diagonally in window order (rel-pos bias + shift mask inside
    each window block, NEG_INF across windows -> the L-wide softmax equals the
    per-window softmax), then conjugated by the shift+window permutation P:
        softmax(P S Pt + B) (P V) = P softmax(S + Pt B P) V
    so with B' = Pt B P the kernel needs NO permutation matmuls at all.
    """
    mask = jnp.asarray(build_attn_mask())                 # (nW, N, N)
    blocks = rpb[:, None, :, :] + mask[None, :, :, :]     # (nh, nW, N, N)
    bias = jnp.full((NUM_HEADS, L, L), NEG_INF, jnp.float32)
    for w in range(NW):
        sl = slice(w * N, (w + 1) * N)
        bias = bias.at[:, sl, sl].set(blocks[:, w])
    idx = window_order_permutation()
    pos = np.argsort(idx)                 # original row -> window-order position
    bias = bias[:, pos, :][:, :, pos]     # B' = P^T B P
    return bias


# ---------------- the single fused Pallas kernel -----------------------------
def swin_block_kernel(x_ref, bias_ref, vec_ref, wstack_ref, w1_ref, w2_ref,
                      o_ref, attn_scratch):
    rows = x_ref.shape[0]            # L (per-image grid) or B*L (stacked)
    n_img = rows // L

    x = x_ref[...]                                           # (rows, C)

    # ---- LayerNorm 1 (one-pass stats: var = E[x^2] - mu^2) -------------------
    g1 = vec_ref[ROW_G1, :C]
    b1 = vec_ref[ROW_B1, :C]
    mu = jnp.mean(x, axis=-1, keepdims=True)
    var = jnp.mean(x * x, axis=-1, keepdims=True) - mu * mu
    xn = (x - mu) * jax.lax.rsqrt(var + EPS) * g1 + b1

    # ---- QKV (qk scale pre-folded into Wq / bq host-side) --------------------
    q = jnp.dot(xn, wstack_ref[0], preferred_element_type=jnp.float32) + vec_ref[ROW_BQ, :C]
    k = jnp.dot(xn, wstack_ref[1], preferred_element_type=jnp.float32) + vec_ref[ROW_BK, :C]
    v = jnp.dot(xn, wstack_ref[2], preferred_element_type=jnp.float32) + vec_ref[ROW_BV, :C]

    # ---- head separation via lane masks (no 8-wide lane slices) --------------
    hm = vec_ref[ROW_HEADMASK:ROW_HEADMASK + NUM_HEADS, :C][:, None, :]  # (nh,1,C)
    kh = k[None, :, :] * hm                                  # (nh, rows, C)
    vh = v[None, :, :] * hm
    qh = jnp.broadcast_to(q[None, :, :], (NUM_HEADS, rows, C))
    bias = bias_ref[...]                                     # (nh, L, L)

    # ---- windowed multi-head attention, per image -----------------------------
    # bias is block-diagonal per window (NEG_INF across windows) in original
    # token order, so a plain L-wide softmax reproduces the per-window softmax.
    for im in range(n_img):
        rs = slice(im * L, (im + 1) * L)
        s = jnp.einsum('hnc,hmc->hnm', qh[:, rs, :], kh[:, rs, :],
                       preferred_element_type=jnp.float32)   # (nh, L, L)
        s = s + bias
        # No row-max subtraction: logits are O(1) (layernormed inputs, 0.02-scale
        # weights); -1e9 cross-window entries underflow exp() to exactly 0.
        # Guard: revisit if weight magnitudes change materially.
        p = jnp.exp(s)
        p = p * pl.reciprocal(jnp.sum(p, axis=-1, keepdims=True), approx=True)
        o = jnp.einsum('hnm,hmc->hnc', p, vh[:, rs, :],
                       preferred_element_type=jnp.float32)   # (nh, L, C)
        # each head owns its own lane block -> summing heads == concat of heads
        attn_scratch[rs, :] = jnp.sum(o, axis=0)

    # ---- output projection + residual 1 ---------------------------------------
    y = jnp.dot(attn_scratch[...], wstack_ref[3],
                preferred_element_type=jnp.float32) + vec_ref[ROW_BPROJ, :C]
    x1 = x + y

    # ---- LayerNorm 2 + MLP (tanh GELU on EUP) + residual 2 --------------------
    g2 = vec_ref[ROW_G2, :C]
    b2 = vec_ref[ROW_B2, :C]
    mu2 = jnp.mean(x1, axis=-1, keepdims=True)
    var2 = jnp.mean(x1 * x1, axis=-1, keepdims=True) - mu2 * mu2
    xn2 = (x1 - mu2) * jax.lax.rsqrt(var2 + EPS) * g2 + b2

    hid = jnp.dot(xn2, w1_ref[...],
                  preferred_element_type=jnp.float32) + vec_ref[ROW_BB1, :HIDDEN]
    hid = jax.nn.gelu(hid, approximate=True)    # tanh form (EUP); ~1e-3 vs erf
    mlp = jnp.dot(hid, w2_ref[...],
                  preferred_element_type=jnp.float32) + vec_ref[ROW_BB2, :C]

    o_ref[...] = (x1 + mlp).astype(o_ref.dtype)
    # drop / attn_drop / drop_path are 0.0 -> identity at inference; omitted.


# ---------------- wrapper -----------------------------------------------------
def _multi_tensorcore_chip():
    """True on chips with 2 TensorCores (v7x): shard the batch across cores.
    On v5e/v6e the grid is a serial loop, so stack the batch instead."""
    try:
        kind = jax.devices()[0].device_kind.lower()
    except Exception:
        return False
    return ("v7" in kind) or ("tpu7" in kind)


def _prepare_kernel_inputs(params):
    """Fold the qk scale into Wq/bq, stack the (C,C) weights, pack all small
    vectors (and per-head lane masks) into one (16,128) VMEM operand."""
    wqkv = params["wqkv"]
    bqkv = params["bqkv"][0]
    wstack = jnp.stack([wqkv[:, :C] * SCALE,          # Wq (scale folded)
                        wqkv[:, C:2 * C],             # Wk
                        wqkv[:, 2 * C:],              # Wv
                        params["wproj"]], axis=0)     # (4, C, C)

    vec = jnp.zeros((VEC_ROWS, 128), jnp.float32)
    vec = vec.at[ROW_G1, :C].set(params["g1"][0])
    vec = vec.at[ROW_B1, :C].set(params["b1"][0])
    vec = vec.at[ROW_G2, :C].set(params["g2"][0])
    vec = vec.at[ROW_B2, :C].set(params["b2"][0])
    vec = vec.at[ROW_BQ, :C].set(bqkv[:C] * SCALE)
    vec = vec.at[ROW_BK, :C].set(bqkv[C:2 * C])
    vec = vec.at[ROW_BV, :C].set(bqkv[2 * C:])
    vec = vec.at[ROW_BPROJ, :C].set(params["bproj"][0])
    hm = (jnp.arange(C)[None, :] // HEAD_DIM ==
          jnp.arange(NUM_HEADS)[:, None]).astype(jnp.float32)     # (nh, C)
    vec = vec.at[ROW_HEADMASK:ROW_HEADMASK + NUM_HEADS, :C].set(hm)
    vec = vec.at[ROW_BB1, :HIDDEN].set(params["bb1"][0])
    vec = vec.at[ROW_BB2, :C].set(params["bb2"][0])
    return wstack, vec, params["w1"], params["w2"], params["attn_bias"]


def swin_transformer_block(x, params, *, per_image_grid=None):
    """x: (B, L, C) with L = H*W. Returns (B, L, C)."""
    b, l, c = x.shape
    assert l == L and c == C
    if per_image_grid is None:
        per_image_grid = _multi_tensorcore_chip()

    wstack, vec, w1, w2, bias = _prepare_kernel_inputs(params)
    x2 = x.reshape(b * l, c)

    if per_image_grid:
        grid, rows, semantics = (b,), l, ("parallel",)        # one image per TC
    else:
        grid, rows, semantics = (1,), b * l, ("arbitrary",)   # stacked, 1 step

    def const_spec(shape):
        nd = len(shape)
        return pl.BlockSpec(shape, lambda i, _nd=nd: (0,) * _nd)

    out = pl.pallas_call(
        swin_block_kernel,
        out_shape=jax.ShapeDtypeStruct((b * l, c), jnp.float32),
        grid=grid,
        in_specs=[
            pl.BlockSpec((rows, C), lambda i: (i, 0)),   # x rows for this step
            const_spec((NUM_HEADS, L, L)),               # attention bias
            const_spec((VEC_ROWS, 128)),                 # packed small vectors
            const_spec((4, C, C)),                       # Wq/Wk/Wv/Wproj
            const_spec((C, HIDDEN)),                     # fc1
            const_spec((HIDDEN, C)),                     # fc2
        ],
        out_specs=pl.BlockSpec((rows, C), lambda i: (i, 0)),
        scratch_shapes=[pltpu.VMEM((rows, C), jnp.float32)],
        compiler_params=pltpu.CompilerParams(dimension_semantics=semantics),
    )(x2, bias, vec, wstack, w1, w2)
    return out.reshape(b, l, c)


# ---------------- parameter setup (deterministic, synthetic) ------------------
def init_params(key):
    ks = jax.random.split(key, 5)
    p = {
        "g1": jnp.ones((1, C), jnp.float32),
        "b1": jnp.zeros((1, C), jnp.float32),
        "g2": jnp.ones((1, C), jnp.float32),
        "b2": jnp.zeros((1, C), jnp.float32),
        "wqkv": jax.random.normal(ks[0], (C, 3 * C), jnp.float32) * 0.02,
        "bqkv": jnp.zeros((1, 3 * C), jnp.float32),
        "wproj": jax.random.normal(ks[1], (C, C), jnp.float32) * 0.02,
        "bproj": jnp.zeros((1, C), jnp.float32),
        "w1": jax.random.normal(ks[2], (C, HIDDEN), jnp.float32) * 0.02,
        "bb1": jnp.zeros((1, HIDDEN), jnp.float32),
        "w2": jax.random.normal(ks[3], (HIDDEN, C), jnp.float32) * 0.02,
        "bb2": jnp.zeros((1, C), jnp.float32),
        # trunc_normal_(std=0.02) approximated with normal*0.02 (synthetic init)
        "rpb_table": jax.random.normal(
            ks[4], ((2 * WINDOW - 1) * (2 * WINDOW - 1), NUM_HEADS),
            jnp.float32) * 0.02,
    }
    rel_idx = build_rel_pos_index()                              # (N, N) int
    rpb = p["rpb_table"][rel_idx.reshape(-1)].reshape(N, N, NUM_HEADS)
    rpb = jnp.transpose(rpb, (2, 0, 1))                          # (nh, N, N)
    p["rpb"] = rpb
    p["attn_bias"] = build_attn_bias(rpb)    # (nh, L, L), token order, P folded
    return p


# ---------------- pure-JAX reference (mirrors the PyTorch forward) ------------
def _window_partition(x, ws):
    b, h, w, c = x.shape
    x = x.reshape(b, h // ws, ws, w // ws, ws, c)
    return x.transpose(0, 1, 3, 2, 4, 5).reshape(-1, ws, ws, c)


def _window_reverse(windows, ws, h, w):
    b = windows.shape[0] // (h * w // ws // ws)
    x = windows.reshape(b, h // ws, w // ws, ws, ws, -1)
    return x.transpose(0, 1, 3, 2, 4, 5).reshape(b, h, w, -1)


def swin_block_reference(x, params):
    b, l, c = x.shape
    shortcut = x
    mu = jnp.mean(x, -1, keepdims=True)
    var = jnp.mean((x - mu) ** 2, -1, keepdims=True)
    xn = (x - mu) / jnp.sqrt(var + EPS) * params["g1"][0] + params["b1"][0]
    shifted = jnp.roll(xn.reshape(b, H, W, c), (-SHIFT, -SHIFT), axis=(1, 2))
    xw = _window_partition(shifted, WINDOW).reshape(-1, N, c)     # (b*nW, N, C)
    qkv = xw @ params["wqkv"] + params["bqkv"][0]
    qkv = qkv.reshape(-1, N, 3, NUM_HEADS, HEAD_DIM).transpose(2, 0, 3, 1, 4)
    q, k, v = qkv[0] * SCALE, qkv[1], qkv[2]                      # (b*nW, nh, N, hd)
    attn = jnp.einsum("bhnd,bhmd->bhnm", q, k)
    attn = attn + params["rpb"][None]
    mask = jnp.asarray(build_attn_mask())
    attn = attn.reshape(b, NW, NUM_HEADS, N, N) + mask[None, :, None]
    attn = jax.nn.softmax(attn.reshape(-1, NUM_HEADS, N, N), axis=-1)
    out = jnp.einsum("bhnm,bhmd->bhnd", attn, v)
    out = out.transpose(0, 2, 1, 3).reshape(-1, N, c)
    out = out @ params["wproj"] + params["bproj"][0]
    sb = _window_reverse(out.reshape(-1, WINDOW, WINDOW, c), WINDOW, H, W)
    y = jnp.roll(sb, (SHIFT, SHIFT), axis=(1, 2)).reshape(b, l, c)
    x1 = shortcut + y
    mu2 = jnp.mean(x1, -1, keepdims=True)
    var2 = jnp.mean((x1 - mu2) ** 2, -1, keepdims=True)
    xn2 = (x1 - mu2) / jnp.sqrt(var2 + EPS) * params["g2"][0] + params["b2"][0]
    hid = jax.nn.gelu(xn2 @ params["w1"] + params["bb1"][0], approximate=False)
    return x1 + hid @ params["w2"] + params["bb2"][0]


if __name__ == "__main__":
    key = jax.random.PRNGKey(0)
    k_x, k_p = jax.random.split(key)
    params = init_params(k_p)
    x = jax.random.normal(k_x, (B, L, C), jnp.float32)

    # default path (stacked single grid step on v5e/v6e, per-image on v7x)
    out = jax.jit(lambda v: swin_transformer_block(v, params))(x)
    jax.block_until_ready(out)
    assert out.shape == (B, L, C)
    assert bool(jnp.all(jnp.isfinite(out)))

    ref = swin_block_reference(x, params)
    err = float(jnp.max(jnp.abs(out - ref)))
    assert err < 5e-3, f"max abs error vs reference (default path): {err}"

    # also validate the per-image (v7x / 2-TensorCore) configuration explicitly
    out2 = jax.jit(
        lambda v: swin_transformer_block(v, params, per_image_grid=True))(x)
    jax.block_until_ready(out2)
    err2 = float(jnp.max(jnp.abs(out2 - ref)))
    assert err2 < 5e-3, f"max abs error vs reference (per-image path): {err2}"

    print("KERNEL_OK")
</pallas_src>

<mosaic_0001>
module attributes {stable_mosaic.version = 11 : i64} {
  func.func @swin_block_kernel(%arg0: i32, %arg1: memref<128x32xf32, #tpu.memory_space<vmem>>, %arg2: memref<4x64x64xf32, #tpu.memory_space<vmem>>, %arg3: memref<16x128xf32, #tpu.memory_space<vmem>>, %arg4: memref<4x32x32xf32, #tpu.memory_space<vmem>>, %arg5: memref<32x128xf32, #tpu.memory_space<vmem>>, %arg6: memref<128x32xf32, #tpu.memory_space<vmem>>, %arg7: memref<128x32xf32, #tpu.memory_space<vmem>>, %arg8: memref<128x32xf32, #tpu.memory_space<vmem>>) attributes {dimension_semantics = [#tpu.dimension_semantics<arbitrary>], iteration_bounds = array<i64: 1>, scalar_prefetch = 0 : i64, scratch_operands = 1 : i64, tpu.core_type = #tpu.core_type<tc>, window_params = [{transform_indices = @transform_0, window_bounds = array<i64: 128, 32>}, {pipeline_mode = #tpu.pipeline_mode<synchronous>, transform_indices = @transform_1, window_bounds = array<i64: 4, 64, 64>}, {pipeline_mode = #tpu.pipeline_mode<synchronous>, transform_indices = @transform_2, window_bounds = array<i64: 16, 128>}, {pipeline_mode = #tpu.pipeline_mode<synchronous>, transform_indices = @transform_3, window_bounds = array<i64: 4, 32, 32>}, {pipeline_mode = #tpu.pipeline_mode<synchronous>, transform_indices = @transform_4, window_bounds = array<i64: 32, 128>}, {pipeline_mode = #tpu.pipeline_mode<synchronous>, transform_indices = @transform_5, window_bounds = array<i64: 128, 32>}, {transform_indices = @transform_6, window_bounds = array<i64: 128, 32>}]} {
    %c0 = arith.constant 0 : index
    %c0_0 = arith.constant 0 : index
    %0 = vector.load %arg1[%c0, %c0_0] : memref<128x32xf32, #tpu.memory_space<vmem>>, vector<128x32xf32>
    %c0_1 = arith.constant 0 : index
    %c0_2 = arith.constant 0 : index
    %1 = vector.load %arg3[%c0_1, %c0_2] : memref<16x128xf32, #tpu.memory_space<vmem>>, vector<1x32xf32>
    %2 = vector.shape_cast %1 : vector<1x32xf32> to vector<32xf32>
    %c1 = arith.constant 1 : index
    %c0_3 = arith.constant 0 : index
    %3 = vector.load %arg3[%c1, %c0_3] : memref<16x128xf32, #tpu.memory_space<vmem>>, vector<1x32xf32>
    %4 = vector.shape_cast %3 : vector<1x32xf32> to vector<32xf32>
    %cst = arith.constant dense<0.000000e+00> : vector<128xf32>
    %5 = vector.multi_reduction <add>, %0, %cst [1] : vector<128x32xf32> to vector<128xf32>
    %6 = vector.shape_cast %5 : vector<128xf32> to vector<128x1xf32>
    %cst_4 = arith.constant 3.200000e+01 : f32
    %7 = vector.broadcast %cst_4 : f32 to vector<128x1xf32>
    %8 = arith.divf %6, %7 : vector<128x1xf32>
    %9 = arith.mulf %0, %0 : vector<128x32xf32>
    %cst_5 = arith.constant dense<0.000000e+00> : vector<128xf32>
    %10 = vector.multi_reduction <add>, %9, %cst_5 [1] : vector<128x32xf32> to vector<128xf32>
    %11 = vector.shape_cast %10 : vector<128xf32> to vector<128x1xf32>
    %cst_6 = arith.constant 3.200000e+01 : f32
    %12 = vector.broadcast %cst_6 : f32 to vector<128x1xf32>
    %13 = arith.divf %11, %12 : vector<128x1xf32>
    %14 = arith.mulf %8, %8 : vector<128x1xf32>
    %15 = arith.subf %13, %14 : vector<128x1xf32>
    %16 = vector.broadcast %8 : vector<128x1xf32> to vector<128x32xf32>
    %17 = arith.subf %0, %16 : vector<128x32xf32>
    %cst_7 = arith.constant 9.99999974E-6 : f32
    %18 = vector.broadcast %cst_7 : f32 to vector<128x1xf32>
    %19 = arith.addf %15, %18 : vector<128x1xf32>
    %20 = math.rsqrt %19 : vector<128x1xf32>
    %21 = vector.broadcast %20 : vector<128x1xf32> to vector<128x32xf32>
    %22 = arith.mulf %17, %21 : vector<128x32xf32>
    %23 = vector.shape_cast %2 : vector<32xf32> to vector<1x32xf32>
    %24 = vector.broadcast %23 : vector<1x32xf32> to vector<128x32xf32>
    %25 = arith.mulf %22, %24 : vector<128x32xf32>
    %26 = vector.shape_cast %4 : vector<32xf32> to vector<1x32xf32>
    %27 = vector.broadcast %26 : vector<1x32xf32> to vector<128x32xf32>
    %28 = arith.addf %25, %27 : vector<128x32xf32>
    %c0_8 = arith.constant 0 : index
    %c0_9 = arith.constant 0 : index
    %c0_10 = arith.constant 0 : index
    %29 = vector.load %arg4[%c0_8, %c0_9, %c0_10] : memref<4x32x32xf32, #tpu.memory_space<vmem>>, vector<1x32x32xf32>
    %30 = vector.shape_cast %29 : vector<1x32x32xf32> to vector<32x32xf32>
    %cst_11 = arith.constant dense<0.000000e+00> : vector<128x32xf32>
    %31 = tpu.matmul %28, %30, %cst_11 {dimension_numbers = #tpu.dot_dimension_numbers<[1], [0], [0], [1], [0, 0, 1, 1], [], []>} : vector<128x32xf32>, vector<32x32xf32>, vector<128x32xf32> -> vector<128x32xf32>
    %c4 = arith.constant 4 : index
    %c0_12 = arith.constant 0 : index
    %32 = vector.load %arg3[%c4, %c0_12] : memref<16x128xf32, #tpu.memory_space<vmem>>, vector<1x32xf32>
    %33 = vector.shape_cast %32 : vector<1x32xf32> to vector<32xf32>
    %34 = vector.shape_cast %33 : vector<32xf32> to vector<1x32xf32>
    %35 = vector.broadcast %34 : vector<1x32xf32> to vector<128x32xf32>
    %36 = arith.addf %31, %35 : vector<128x32xf32>
    %c1_13 = arith.constant 1 : index
    %c0_14 = arith.constant 0 : index
    %c0_15 = arith.constant 0 : index
    %37 = vector.load %arg4[%c1_13, %c0_14, %c0_15] : memref<4x32x32xf32, #tpu.memory_space<vmem>>, vector<1x32x32xf32>
    %38 = vector.shape_cast %37 : vector<1x32x32xf32> to vector<32x32xf32>
    %cst_16 = arith.constant dense<0.000000e+00> : vector<128x32xf32>
    %39 = tpu.matmul %28, %38, %cst_16 {dimension_numbers = #tpu.dot_dimension_numbers<[1], [0], [0], [1], [0, 0, 1, 1], [], []>} : vector<128x32xf32>, vector<32x32xf32>, vector<128x32xf32> -> vector<128x32xf32>
    %c5 = arith.constant 5 : index
    %c0_17 = arith.constant 0 : index
    %40 = vector.load %arg3[%c5, %c0_17] : memref<16x128xf32, #tpu.memory_space<vmem>>, vector<1x32xf32>
    %41 = vector.shape_cast %40 : vector<1x32xf32> to vector<32xf32>
    %42 = vector.shape_cast %41 : vector<32xf32> to vector<1x32xf32>
    %43 = vector.broadcast %42 : vector<1x32xf32> to vector<128x32xf32>
    %44 = arith.addf %39, %43 : vector<128x32xf32>
    %c2 = arith.constant 2 : index
    %c0_18 = arith.constant 0 : index
    %c0_19 = arith.constant 0 : index
    %45 = vector.load %arg4[%c2, %c0_18, %c0_19] : memref<4x32x32xf32, #tpu.memory_space<vmem>>, vector<1x32x32xf32>
    %46 = vector.shape_cast %45 : vector<1x32x32xf32> to vector<32x32xf32>
    %cst_20 = arith.constant dense<0.000000e+00> : vector<128x32xf32>
    %47 = tpu.matmul %28, %46, %cst_20 {dimension_numbers = #tpu.dot_dimension_numbers<[1], [0], [0], [1], [0, 0, 1, 1], [], []>} : vector<128x32xf32>, vector<32x32xf32>, vector<128x32xf32> -> vector<128x32xf32>
    %c6 = arith.constant 6 : index
    %c0_21 = arith.constant 0 : index
    %48 = vector.load %arg3[%c6, %c0_21] : memref<16x128xf32, #tpu.memory_space<vmem>>, vector<1x32xf32>
    %49 = vector.shape_cast %48 : vector<1x32xf32> to vector<32xf32>
    %50 = vector.shape_cast %49 : vector<32xf32> to vector<1x32xf32>
    %51 = vector.broadcast %50 : vector<1x32xf32> to vector<128x32xf32>
    %52 = arith.addf %47, %51 : vector<128x32xf32>
    %c8 = arith.constant 8 : index
    %c0_22 = arith.constant 0 : index
    %53 = vector.load %arg3[%c8, %c0_22] : memref<16x128xf32, #tpu.memory_space<vmem>>, vector<4x32xf32>
    %54 = vector.shape_cast %53 : vector<4x32xf32> to vector<4x1x32xf32>
    %55 = vector.shape_cast %44 : vector<128x32xf32> to vector<1x128x32xf32>
    %56 = vector.broadcast %55 : vector<1x128x32xf32> to vector<4x128x32xf32>
    %57 = vector.broadcast %54 : vector<4x1x32xf32> to vector<4x128x32xf32>
    %58 = arith.mulf %56, %57 : vector<4x128x32xf32>
    %59 = vector.shape_cast %52 : vector<128x32xf32> to vector<1x128x32xf32>
    %60 = vector.broadcast %59 : vector<1x128x32xf32> to vector<4x128x32xf32>
    %61 = vector.broadcast %54 : vector<4x1x32xf32> to vector<4x128x32xf32>
    %62 = arith.mulf %60, %61 : vector<4x128x32xf32>
    %63 = vector.shape_cast %36 : vector<128x32xf32> to vector<1x128x32xf32>
    %64 = vector.shape_cast %63 : vector<1x128x32xf32> to vector<1x128x32xf32>
    %65 = vector.broadcast %64 : vector<1x128x32xf32> to vector<4x128x32xf32>
    %c0_23 = arith.constant 0 : index
    %c0_24 = arith.constant 0 : index
    %c0_25 = arith.constant 0 : index
    %66 = vector.load %arg2[%c0_23, %c0_24, %c0_25] : memref<4x64x64xf32, #tpu.memory_space<vmem>>, vector<4x64x64xf32>
    %67 = vector.extract_strided_slice %65 {offsets = [0, 0, 0], sizes = [4, 64, 32], strides = [1, 1, 1]} : vector<4x128x32xf32> to vector<4x64x32xf32>
    %68 = vector.extract_strided_slice %58 {offsets = [0, 0, 0], sizes = [4, 64, 32], strides = [1, 1, 1]} : vector<4x128x32xf32> to vector<4x64x32xf32>
    "tpu.trace_start"() <{level = 10 : i32, message = "hnc,hmc->hnm"}> : () -> ()
    %cst_26 = arith.constant dense<0.000000e+00> : vector<4x64x64xf32>
    %69 = tpu.matmul %67, %68, %cst_26 {dimension_numbers = #tpu.dot_dimension_numbers<[2], [2], [1], [1], [0, 0, 0, 1, 1, 1], [0], [0]>} : vector<4x64x32xf32>, vector<4x64x32xf32>, vector<4x64x64xf32> -> vector<4x64x64xf32>
    "tpu.trace_stop"() : () -> ()
    %70 = arith.addf %69, %66 : vector<4x64x64xf32>
    %71 = math.exp %70 : vector<4x64x64xf32>
    %cst_27 = arith.constant dense<0.000000e+00> : vector<4x64xf32>
    %72 = vector.multi_reduction <add>, %71, %cst_27 [2] : vector<4x64x64xf32> to vector<4x64xf32>
    %73 = vector.shape_cast %72 : vector<4x64xf32> to vector<4x64x1xf32>
    %74 = tpu.reciprocal %73 {approx = true} : vector<4x64x1xf32> -> vector<4x64x1xf32>
    %75 = vector.broadcast %74 : vector<4x64x1xf32> to vector<4x64x64xf32>
    %76 = arith.mulf %71, %75 : vector<4x64x64xf32>
    %77 = vector.extract_strided_slice %62 {offsets = [0, 0, 0], sizes = [4, 64, 32], strides = [1, 1, 1]} : vector<4x128x32xf32> to vector<4x64x32xf32>
    "tpu.trace_start"() <{level = 10 : i32, message = "hnm,hmc->hnc"}> : () -> ()
    %cst_28 = arith.constant dense<0.000000e+00> : vector<4x64x32xf32>
    %78 = tpu.matmul %76, %77, %cst_28 {dimension_numbers = #tpu.dot_dimension_numbers<[2], [1], [1], [2], [0, 0, 0, 1, 1, 2], [0], [0]>} : vector<4x64x64xf32>, vector<4x64x32xf32>, vector<4x64x32xf32> -> vector<4x64x32xf32>
    "tpu.trace_stop"() : () -> ()
    %cst_29 = arith.constant dense<0.000000e+00> : vector<64x32xf32>
    %79 = vector.multi_reduction <add>, %78, %cst_29 [0] : vector<4x64x32xf32> to vector<64x32xf32>
    %c0_30 = arith.constant 0 : index
    %c0_31 = arith.constant 0 : index
    %80 = vector.load %arg8[%c0_30, %c0_31] : memref<128x32xf32, #tpu.memory_space<vmem>>, vector<64x32xf32>
    tpu.vector_store %arg8[%c0_30, %c0_31], %79 {strides = array<i32>} : memref<128x32xf32, #tpu.memory_space<vmem>>, vector<64x32xf32>,
    %81 = vector.extract_strided_slice %65 {offsets = [0, 64, 0], sizes = [4, 64, 32], strides = [1, 1, 1]} : vector<4x128x32xf32> to vector<4x64x32xf32>
    %82 = vector.extract_strided_slice %58 {offsets = [0, 64, 0], sizes = [4, 64, 32], strides = [1, 1, 1]} : vector<4x128x32xf32> to vector<4x64x32xf32>
    "tpu.trace_start"() <{level = 10 : i32, message = "hnc,hmc->hnm"}> : () -> ()
    %cst_32 = arith.constant dense<0.000000e+00> : vector<4x64x64xf32>
    %83 = tpu.matmul %81, %82, %cst_32 {dimension_numbers = #tpu.dot_dimension_numbers<[2], [2], [1], [1], [0, 0, 0, 1, 1, 1], [0], [0]>} : vector<4x64x32xf32>, vector<4x64x32xf32>, vector<4x64x64xf32> -> vector<4x64x64xf32>
    "tpu.trace_stop"() : () -> ()
    %84 = arith.addf %83, %66 : vector<4x64x64xf32>
    %85 = math.exp %84 : vector<4x64x64xf32>
    %cst_33 = arith.constant dense<0.000000e+00> : vector<4x64xf32>
    %86 = vector.multi_reduction <add>, %85, %cst_33 [2] : vector<4x64x64xf32> to vector<4x64xf32>
    %87 = vector.shape_cast %86 : vector<4x64xf32> to vector<4x64x1xf32>
    %88 = tpu.reciprocal %87 {approx = true} : vector<4x64x1xf32> -> vector<4x64x1xf32>
    %89 = vector.broadcast %88 : vector<4x64x1xf32> to vector<4x64x64xf32>
    %90 = arith.mulf %85, %89 : vector<4x64x64xf32>
    %91 = vector.extract_strided_slice %62 {offsets = [0, 64, 0], sizes = [4, 64, 32], strides = [1, 1, 1]} : vector<4x128x32xf32> to vector<4x64x32xf32>
    "tpu.trace_start"() <{level = 10 : i32, message = "hnm,hmc->hnc"}> : () -> ()
    %cst_34 = arith.constant dense<0.000000e+00> : vector<4x64x32xf32>
    %92 = tpu.matmul %90, %91, %cst_34 {dimension_numbers = #tpu.dot_dimension_numbers<[2], [1], [1], [2], [0, 0, 0, 1, 1, 2], [0], [0]>} : vector<4x64x64xf32>, vector<4x64x32xf32>, vector<4x64x32xf32> -> vector<4x64x32xf32>
    "tpu.trace_stop"() : () -> ()
    %cst_35 = arith.constant dense<0.000000e+00> : vector<64x32xf32>
    %93 = vector.multi_reduction <add>, %92, %cst_35 [0] : vector<4x64x32xf32> to vector<64x32xf32>
    %c64 = arith.constant 64 : index
    %c0_36 = arith.constant 0 : index
    %94 = vector.load %arg8[%c64, %c0_36] : memref<128x32xf32, #tpu.memory_space<vmem>>, vector<64x32xf32>
    tpu.vector_store %arg8[%c64, %c0_36], %93 {strides = array<i32>} : memref<128x32xf32, #tpu.memory_space<vmem>>, vector<64x32xf32>,
    %c0_37 = arith.constant 0 : index
    %c0_38 = arith.constant 0 : index
    %95 = vector.load %arg8[%c0_37, %c0_38] : memref<128x32xf32, #tpu.memory_space<vmem>>, vector<128x32xf32>
    %c3 = arith.constant 3 : index
    %c0_39 = arith.constant 0 : index
    %c0_40 = arith.constant 0 : index
    %96 = vector.load %arg4[%c3, %c0_39, %c0_40] : memref<4x32x32xf32, #tpu.memory_space<vmem>>, vector<1x32x32xf32>
    %97 = vector.shape_cast %96 : vector<1x32x32xf32> to vector<32x32xf32>
    %cst_41 = arith.constant dense<0.000000e+00> : vector<128x32xf32>
    %98 = tpu.matmul %95, %97, %cst_41 {dimension_numbers = #tpu.dot_dimension_numbers<[1], [0], [0], [1], [0, 0, 1, 1], [], []>} : vector<128x32xf32>, vector<32x32xf32>, vector<128x32xf32> -> vector<128x32xf32>
    %c7 = arith.constant 7 : index
    %c0_42 = arith.constant 0 : index
    %99 = vector.load %arg3[%c7, %c0_42] : memref<16x128xf32, #tpu.memory_space<vmem>>, vector<1x32xf32>
    %100 = vector.shape_cast %99 : vector<1x32xf32> to vector<32xf32>
    %101 = vector.shape_cast %100 : vector<32xf32> to vector<1x32xf32>
    %102 = vector.broadcast %101 : vector<1x32xf32> to vector<128x32xf32>
    %103 = arith.addf %98, %102 : vector<128x32xf32>
    %104 = arith.addf %0, %103 : vector<128x32xf32>
    %c2_43 = arith.constant 2 : index
    %c0_44 = arith.constant 0 : index
    %105 = vector.load %arg3[%c2_43, %c0_44] : memref<16x128xf32, #tpu.memory_space<vmem>>, vector<1x32xf32>
    %106 = vector.shape_cast %105 : vector<1x32xf32> to vector<32xf32>
    %c3_45 = arith.constant 3 : index
    %c0_46 = arith.constant 0 : index
    %107 = vector.load %arg3[%c3_45, %c0_46] : memref<16x128xf32, #tpu.memory_space<vmem>>, vector<1x32xf32>
    %108 = vector.shape_cast %107 : vector<1x32xf32> to vector<32xf32>
    %cst_47 = arith.constant dense<0.000000e+00> : vector<128xf32>
    %109 = vector.multi_reduction <add>, %104, %cst_47 [1] : vector<128x32xf32> to vector<128xf32>
    %110 = vector.shape_cast %109 : vector<128xf32> to vector<128x1xf32>
    %cst_48 = arith.constant 3.200000e+01 : f32
    %111 = vector.broadcast %cst_48 : f32 to vector<128x1xf32>
    %112 = arith.divf %110, %111 : vector<128x1xf32>
    %113 = arith.mulf %104, %104 : vector<128x32xf32>
    %cst_49 = arith.constant dense<0.000000e+00> : vector<128xf32>
    %114 = vector.multi_reduction <add>, %113, %cst_49 [1] : vector<128x32xf32> to vector<128xf32>
    %115 = vector.shape_cast %114 : vector<128xf32> to vector<128x1xf32>
    %cst_50 = arith.constant 3.200000e+01 : f32
    %116 = vector.broadcast %cst_50 : f32 to vector<128x1xf32>
    %117 = arith.divf %115, %116 : vector<128x1xf32>
    %118 = arith.mulf %112, %112 : vector<128x1xf32>
    %119 = arith.subf %117, %118 : vector<128x1xf32>
    %120 = vector.broadcast %112 : vector<128x1xf32> to vector<128x32xf32>
    %121 = arith.subf %104, %120 : vector<128x32xf32>
    %cst_51 = arith.constant 9.99999974E-6 : f32
    %122 = vector.broadcast %cst_51 : f32 to vector<128x1xf32>
    %123 = arith.addf %119, %122 : vector<128x1xf32>
    %124 = math.rsqrt %123 : vector<128x1xf32>
    %125 = vector.broadcast %124 : vector<128x1xf32> to vector<128x32xf32>
    %126 = arith.mulf %121, %125 : vector<128x32xf32>
    %127 = vector.shape_cast %106 : vector<32xf32> to vector<1x32xf32>
    %128 = vector.broadcast %127 : vector<1x32xf32> to vector<128x32xf32>
    %129 = arith.mulf %126, %128 : vector<128x32xf32>
    %130 = vector.shape_cast %108 : vector<32xf32> to vector<1x32xf32>
    %131 = vector.broadcast %130 : vector<1x32xf32> to vector<128x32xf32>
    %132 = arith.addf %129, %131 : vector<128x32xf32>
    %c0_52 = arith.constant 0 : index
    %c0_53 = arith.constant 0 : index
    %133 = vector.load %arg5[%c0_52, %c0_53] : memref<32x128xf32, #tpu.memory_space<vmem>>, vector<32x128xf32>
    %cst_54 = arith.constant dense<0.000000e+00> : vector<128x128xf32>
    %134 = tpu.matmul %132, %133, %cst_54 {dimension_numbers = #tpu.dot_dimension_numbers<[1], [0], [0], [1], [0, 0, 1, 1], [], []>} : vector<128x32xf32>, vector<32x128xf32>, vector<128x128xf32> -> vector<128x128xf32>
    %c12 = arith.constant 12 : index
    %c0_55 = arith.constant 0 : index
    %135 = vector.load %arg3[%c12, %c0_55] : memref<16x128xf32, #tpu.memory_space<vmem>>, vector<1x128xf32>
    %136 = vector.shape_cast %135 : vector<1x128xf32> to vector<128xf32>
    %137 = vector.shape_cast %136 : vector<128xf32> to vector<1x128xf32>
    %138 = vector.broadcast %137 : vector<1x128xf32> to vector<128x128xf32>
    %139 = arith.addf %134, %138 : vector<128x128xf32>
    %140 = arith.mulf %139, %139 : vector<128x128xf32>
    %141 = arith.mulf %139, %140 : vector<128x128xf32>
    %cst_56 = arith.constant 4.471500e-02 : f32
    %142 = vector.broadcast %cst_56 : f32 to vector<128x128xf32>
    %143 = arith.mulf %142, %141 : vector<128x128xf32>
    %144 = arith.addf %139, %143 : vector<128x128xf32>
    %cst_57 = arith.constant 0.797884583 : f32
    %145 = vector.broadcast %cst_57 : f32 to vector<128x128xf32>
    %146 = arith.mulf %145, %144 : vector<128x128xf32>
    %147 = math.tanh %146 : vector<128x128xf32>
    %cst_58 = arith.constant 1.000000e+00 : f32
    %148 = vector.broadcast %cst_58 : f32 to vector<128x128xf32>
    %149 = arith.addf %148, %147 : vector<128x128xf32>
    %cst_59 = arith.constant 5.000000e-01 : f32
    %150 = vector.broadcast %cst_59 : f32 to vector<128x128xf32>
    %151 = arith.mulf %150, %149 : vector<128x128xf32>
    %152 = arith.mulf %139, %151 : vector<128x128xf32>
    %c0_60 = arith.constant 0 : index
    %c0_61 = arith.constant 0 : index
    %153 = vector.load %arg6[%c0_60, %c0_61] : memref<128x32xf32, #tpu.memory_space<vmem>>, vector<128x32xf32>
    %cst_62 = arith.constant dense<0.000000e+00> : vector<128x32xf32>
    %154 = tpu.matmul %152, %153, %cst_62 {dimension_numbers = #tpu.dot_dimension_numbers<[1], [0], [0], [1], [0, 0, 1, 1], [], []>} : vector<128x128xf32>, vector<128x32xf32>, vector<128x32xf32> -> vector<128x32xf32>
    %c13 = arith.constant 13 : index
    %c0_63 = arith.constant 0 : index
    %155 = vector.load %arg3[%c13, %c0_63] : memref<16x128xf32, #tpu.memory_space<vmem>>, vector<1x32xf32>
    %156 = vector.shape_cast %155 : vector<1x32xf32> to vector<32xf32>
    %157 = vector.shape_cast %156 : vector<32xf32> to vector<1x32xf32>
    %158 = vector.broadcast %157 : vector<1x32xf32> to vector<128x32xf32>
    %159 = arith.addf %154, %158 : vector<128x32xf32>
    %160 = arith.addf %104, %159 : vector<128x32xf32>
    %c0_64 = arith.constant 0 : index
    %c0_65 = arith.constant 0 : index
    %161 = vector.load %arg7[%c0_64, %c0_65] : memref<128x32xf32, #tpu.memory_space<vmem>>, vector<128x32xf32>
    tpu.vector_store %arg7[%c0_64, %c0_65], %160 {strides = array<i32>} : memref<128x32xf32, #tpu.memory_space<vmem>>, vector<128x32xf32>,
    return
  }
  func.func @transform_0(%arg0: i32) -> (i32, i32) {
    %c0_i32 = arith.constant 0 : i32
    %c0_i32_0 = arith.constant 0 : i32
    return %arg0, %c0_i32 : i32, i32
  }
  func.func @transform_1(%arg0: i32) -> (i32, i32, i32) {
    %c0_i32 = arith.constant 0 : i32
    %c0_i32_0 = arith.constant 0 : i32
    %c0_i32_1 = arith.constant 0 : i32
    %c0_i32_2 = arith.constant 0 : i32
    return %c0_i32, %c0_i32_0, %c0_i32_1 : i32, i32, i32
  }
  func.func @transform_2(%arg0: i32) -> (i32, i32) {
    %c0_i32 = arith.constant 0 : i32
    %c0_i32_0 = arith.constant 0 : i32
    %c0_i32_1 = arith.constant 0 : i32
    return %c0_i32, %c0_i32_0 : i32, i32
  }
  func.func @transform_3(%arg0: i32) -> (i32, i32, i32) {
    %c0_i32 = arith.constant 0 : i32
    %c0_i32_0 = arith.constant 0 : i32
    %c0_i32_1 = arith.constant 0 : i32
    %c0_i32_2 = arith.constant 0 : i32
    return %c0_i32, %c0_i32_0, %c0_i32_1 : i32, i32, i32
  }
  func.func @transform_4(%arg0: i32) -> (i32, i32) {
    %c0_i32 = arith.constant 0 : i32
    %c0_i32_0 = arith.constant 0 : i32
    %c0_i32_1 = arith.constant 0 : i32
    return %c0_i32, %c0_i32_0 : i32, i32
  }
  func.func @transform_5(%arg0: i32) -> (i32, i32) {
    %c0_i32 = arith.constant 0 : i32
    %c0_i32_0 = arith.constant 0 : i32
    %c0_i32_1 = arith.constant 0 : i32
    return %c0_i32, %c0_i32_0 : i32, i32
  }
  func.func @transform_6(%arg0: i32) -> (i32, i32) {
    %c0_i32 = arith.constant 0 : i32
    %c0_i32_0 = arith.constant 0 : i32
    return %arg0, %c0_i32 : i32, i32
  }
}

</mosaic_0001>

<bundles_post_ra>
// kernel: _lambda_.1
= control target key start
LH: loop header
LB: loop body
LE: loop exit
PB: predicated region body
PF: predicated region fallthrough
CT: control target
= control target key end

     0   :  { %11 = vsyncpa [#allocation4], 0  ;;  %s6649_s0 = inlined_call_operand.vmem [shape: f32[128,32], index: 0, kind: input, shape index: {}]   ;;  %s6650_s1 = inlined_call_operand.hbm [shape: f32[4,64,64], index: 1, kind: input, shape index: {}]   ;;  %s6651_s2 = inlined_call_operand.vmem [shape: f32[16,128], index: 2, kind: input, shape index: {}]   ;;  %s6652_s3 = inlined_call_operand.vmem [shape: f32[4,32,32], index: 3, kind: input, shape index: {}]   ;;  %s6653_s4 = inlined_call_operand.vmem [shape: f32[32,128], index: 4, kind: input, shape index: {}]   ;;  %s6654_s5 = inlined_call_operand.hbm [shape: f32[128,32], index: 5, kind: input, shape index: {}]   ;;  %s6655_s6 = inlined_call_operand.vmem [shape: f32[128,32], index: 6, kind: output, shape index: {}]  }
   0x1   :  { %s19_s23 = sshll.u32 %s6650_s1, 4  ;;  %s20_s23 = int_to_ptr.hbm [resolvable:$true] %s19_s23 }
   0x2   :  { %12 = vsyncpa [#allocation6], 0  ;;  %s4323_s24 = smov [#allocation3]   ;;  %s38_s28 = sshll.u32 %s6654_s5, 4  ;;  %s39_s28 = int_to_ptr.hbm [resolvable:$true] %s38_s28 }
   0x3   :  { %s21_s25 = sshll.u32 %s4323_s24, 4  ;;  %s4324_s29 = smov 128   ;;  %s22_s25 = int_to_ptr.vmem [resolvable:$true] %s21_s25 }
   0x4   :  { %s4325_s30 = smov 8   ;;  %s4326_s7 = smov [#allocation5]  }
   0x5   :  { %27 = dma.hbm_to_vmem [thread:$0]  %s20_s23, 4096, %s22_s25, [#allocation4], %s4324_s29, %s4324_s29, %s4325_s30  }
   0x6   :  { %s40_s8 = sshll.u32 %s4326_s7, 4  ;;  %s41_s8 = int_to_ptr.vmem [resolvable:$true] %s40_s8 }
   0x7   :  { %46 = dma.hbm_to_vmem [thread:$0]  %s39_s28, 2048, %s41_s8, [#allocation6], %s4324_s29, %s4324_s29, %s4325_s30  }
   0x8   :  { %4319 = dma.done.wait [#allocation4], 4096  }
   0x9   :  { %4320 = vsyncadd [#allocation4], 4294963200 }
   0xa   :  { %4321 = dma.done.wait [#allocation6], 2048  }
   0xb   :  { %4322 = vsyncadd [#allocation6], 4294965248  ;;  %vm73_vm0 = vcmask 261120   ;;  %v4372_v0 = vld [vmem:[%s6649_s0 + $0x78] sm:$0xff]  ;;  %v4377_v1 = vld [vmem:[%s6649_s0 + $0x8] sm:$0xff] }
   0xc   :  { %v4382_v2 = vld [vmem:[%s6649_s0] sm:$0xff]  ;;  %v119_v3 = vsel %vm73_vm0, %v4372_v0, 0.0  ;;  %v77_v4 = vsel %vm73_vm0, %v4377_v1, 0.0  ;;  %v160_v6 = vmul.f32 %v4372_v0, %v4372_v0  ;;  %v146_v7 = vmul.f32 %v4377_v1, %v4377_v1  ;;  %v4402_v12 = vld [vmem:[%s6649_s0 + $0x10] sm:$0xff]  ;;  %v4409_v14 = vld [vmem:[%s6649_s0 + $0x18] sm:$0xff] }
   0xd   :  { %v74_v5 = vsel %vm73_vm0, %v4382_v2, 0.0  ;;  %120 = vadd.xlane.f32.xlu0 %v119_v3  ;;  %78 = vadd.xlane.f32.xlu2 %v77_v4  ;;  %v145_v8 = vmul.f32 %v4382_v2, %v4382_v2  ;;  %v147_v13 = vmul.f32 %v4402_v12, %v4402_v12  ;;  %v80_v15 = vsel %vm73_vm0, %v4402_v12, 0.0  ;;  %v4419_v18 = vld [vmem:[%s6649_s0 + $0x20] sm:$0xff]  ;;  %v4432_v24 = vld [vmem:[%s6649_s0 + $0x28] sm:$0xff]  ;;  %v4439_v26 = vld [vmem:[%s6649_s0 + $0x30] sm:$0xff] }
   0xe   :  { %75 = vadd.xlane.f32.xlu1 %v74_v5  ;;  %v206_v9 = vsel %vm73_vm0, %v160_v6, 0.0  ;;  %v164_v10 = vsel %vm73_vm0, %v146_v7, 0.0  ;;  %v83_v16 = vsel %vm73_vm0, %v4409_v14, 0.0  ;;  %v148_v19 = vmul.f32 %v4409_v14, %v4409_v14  ;;  %v4449_v30 = vld [vmem:[%s6649_s0 + $0x38] sm:$0xff]  ;;  %v4462_v36 = vld [vmem:[%s6649_s0 + $0x40] sm:$0xff]  ;;  %v4469_v38 = vld [vmem:[%s6649_s0 + $0x48] sm:$0xff] }
   0xf   :  { %v161_v11 = vsel %vm73_vm0, %v145_v8, 0.0  ;;  %v167_v17 = vsel %vm73_vm0, %v147_v13, 0.0  ;;  %v149_v20 = vmul.f32 %v4419_v18, %v4419_v18  ;;  %v86_v23 = vsel %vm73_vm0, %v4419_v18, 0.0  ;;  %v4479_v42 = vld [vmem:[%s6649_s0 + $0x50] sm:$0xff]  ;;  %v4492_v48 = vld [vmem:[%s6649_s0 + $0x58] sm:$0xff]  ;;  %v4499_v50 = vld [vmem:[%s6649_s0 + $0x60] sm:$0xff] }
  0x10   :  { %v170_v21 = vsel %vm73_vm0, %v148_v19, 0.0  ;;  %v150_v25 = vmul.f32 %v4432_v24, %v4432_v24  ;;  %v89_v27 = vsel %vm73_vm0, %v4432_v24, 0.0  ;;  %v92_v28 = vsel %vm73_vm0, %v4439_v26, 0.0  ;;  %v4509_v54 = vld [vmem:[%s6649_s0 + $0x68] sm:$0xff]  ;;  %v4522_v60 = vld [vmem:[%s6649_s0 + $0x70] sm:$0xff]  ;;  %v502_v13 = vld [vmem:[%s6652_s3 + $0x18] sm:$0xff] }
  0x11   :  { %v173_v22 = vsel %vm73_vm0, %v149_v20, 0.0  ;;  %v151_v31 = vmul.f32 %v4439_v26, %v4439_v26  ;;  %v152_v32 = vmul.f32 %v4449_v30, %v4449_v30  ;;  %v95_v35 = vsel %vm73_vm0, %v4449_v30, 0.0  ;;  %565 = vmatpush.msra.mxu0 %v502_v13  ;;  %3840 = vmatpush.msra.mxu1 %v502_v13  ;;  %v501_v19 = vld [vmem:[%s6652_s3 + $0x10] sm:$0xff] }
  0x12   :  { %v176_v29 = vsel %vm73_vm0, %v150_v25, 0.0  ;;  %v153_v37 = vmul.f32 %v4462_v36, %v4462_v36  ;;  %v98_v39 = vsel %vm73_vm0, %v4462_v36, 0.0  ;;  %v101_v40 = vsel %vm73_vm0, %v4469_v38, 0.0  ;;  %v3594_v20 = vld [vmem:[%s6652_s3 + $0x50] sm:$0xff]  ;;  %v3593_v25 = vld [vmem:[%s6652_s3 + $0x48] sm:$0xff] }
  0x13   :  { %v179_v33 = vsel %vm73_vm0, %v151_v31, 0.0  ;;  %v182_v34 = vsel %vm73_vm0, %v152_v32, 0.0  ;;  %v154_v43 = vmul.f32 %v4469_v38, %v4469_v38  ;;  %v155_v44 = vmul.f32 %v4479_v42, %v4479_v42  ;;  %566 = vmatpush.msra.mxu0 %v501_v19  ;;  %3841 = vmatpush.msra.mxu1 %v501_v19 }
  0x14   :  { %v185_v41 = vsel %vm73_vm0, %v153_v37, 0.0  ;;  %v104_v47 = vsel %vm73_vm0, %v4479_v42, 0.0  ;;  %v156_v49 = vmul.f32 %v4492_v48, %v4492_v48  ;;  %v107_v51 = vsel %vm73_vm0, %v4492_v48, 0.0 }
  0x15   :  { %207 = vadd.xlane.f32.xlu0 %v206_v9  ;;  %165 = vadd.xlane.f32.xlu2 %v164_v10  ;;  %v188_v45 = vsel %vm73_vm0, %v154_v43, 0.0  ;;  %v191_v46 = vsel %vm73_vm0, %v155_v44, 0.0  ;;  %v110_v52 = vsel %vm73_vm0, %v4499_v50, 0.0  ;;  %v157_v55 = vmul.f32 %v4499_v50, %v4499_v50 }
  0x16   :  { %162 = vadd.xlane.f32.xlu1 %v161_v11  ;;  %v194_v53 = vsel %vm73_vm0, %v156_v49, 0.0  ;;  %v158_v56 = vmul.f32 %v4509_v54, %v4509_v54  ;;  %v113_v59 = vsel %vm73_vm0, %v4509_v54, 0.0  ;;  %v116_v61 = vsel %vm73_vm0, %v4522_v60, 0.0 }
  0x17   :  { %v197_v57 = vsel %vm73_vm0, %v157_v55, 0.0  ;;  %v159_v62 = vmul.f32 %v4522_v60, %v4522_v60  ;;  %v4327_v3 = vmov 32.0  }
  0x18   :  { %v200_v58 = vsel %vm73_vm0, %v158_v56, 0.0  ;;  %3867 = vrcp.f32 %v4327_v3  ;;  %v3572_v56 = vld [vmem:[%s6652_s3 + $0x20] sm:$0xff] }
  0x19   :  { %v203_v63 = vsel %vm73_vm0, %v159_v62, 0.0 }
  0x1d   :  { %81 = vadd.xlane.f32.xlu0 %v80_v15  ;;  %84 = vadd.xlane.f32.xlu2 %v83_v16  ;;  %v3595_v15 = vld [vmem:[%s6652_s3 + $0x58] sm:$0xff] }
  0x1e   :  { %168 = vadd.xlane.f32.xlu1 %v167_v17  ;;  %v3868_v4 = vpop.eup %3867  ;;  %709 = vmatpush.msra.mxu2 %v3595_v15 }
  0x1f   :  { %v123_v5 = vmul.f32 32.0, %v3868_v4  ;;  %vm127_vm1 = vweird.f32 %v3868_v4 }
  0x20   :  { %710 = vmatpush.msra.mxu2 %v3594_v20 }
  0x21   :  { %v124_v6 = vsub.f32 1.0, %v123_v5 }
  0x22   :  { %711 = vmatpush.msra.mxu2 %v3593_v25 }
  0x23   :  { %v125_v7 = vmul.f32 %v3868_v4, %v124_v6 }
  0x25   :  { %171 = vadd.xlane.f32.xlu0 %v170_v21  ;;  %174 = vadd.xlane.f32.xlu2 %v173_v22  ;;  %v126_v8 = vadd.f32 %v3868_v4, %v125_v7 }
  0x26   :  { %87 = vadd.xlane.f32.xlu1 %v86_v23  ;;  %v500_v23 = vld [vmem:[%s6652_s3 + $0x8] sm:$0xff] }
  0x27   :  { %v4535_v16 = vsel %vm127_vm1, %v3868_v4, %v126_v8  ;;  %567 = vmatpush.msra.mxu0 %v500_v23  ;;  %3842 = vmatpush.msra.mxu1 %v500_v23 }
  0x2d   :  { %90 = vadd.xlane.f32.xlu0 %v89_v27  ;;  %93 = vadd.xlane.f32.xlu2 %v92_v28  ;;  %v499_v28 = vld [vmem:[%s6652_s3] sm:$0xff] }
  0x2e   :  { %177 = vadd.xlane.f32.xlu1 %v176_v29  ;;  %v3592_v29 = vld [vmem:[%s6652_s3 + $0x40] sm:$0xff]  ;;  %568 = vmatpush.msra.mxu0 %v499_v28 }
  0x2f   :  { %3843 = vmatpush.msra.mxu1 %v499_v28  ;;  %712 = vmatpush.msra.mxu2 %v3592_v29 }
  0x35   :  { %180 = vadd.xlane.f32.xlu0 %v179_v33  ;;  %183 = vadd.xlane.f32.xlu2 %v182_v34 }
  0x36   :  { %96 = vadd.xlane.f32.xlu1 %v95_v35 }
  0x3d   :  { %99 = vadd.xlane.f32.xlu0 %v98_v39  ;;  %102 = vadd.xlane.f32.xlu2 %v101_v40 }
  0x3e   :  { %186 = vadd.xlane.f32.xlu1 %v185_v41  ;;  %v3575_v41 = vld [vmem:[%s6652_s3 + $0x38] sm:$0xff] }
  0x3f   :  { %637 = vmatpush.msrb.mxu1 %v3575_v41 }
  0x45   :  { %189 = vadd.xlane.f32.xlu0 %v188_v45  ;;  %192 = vadd.xlane.f32.xlu2 %v191_v46  ;;  %v3574_v46 = vld [vmem:[%s6652_s3 + $0x30] sm:$0xff] }
  0x46   :  { %105 = vadd.xlane.f32.xlu1 %v104_v47  ;;  %638 = vmatpush.msrb.mxu1 %v3574_v46 }
  0x4d   :  { %108 = vadd.xlane.f32.xlu0 %v107_v51  ;;  %111 = vadd.xlane.f32.xlu2 %v110_v52  ;;  %v3573_v52 = vld [vmem:[%s6652_s3 + $0x28] sm:$0xff] }
  0x4e   :  { %195 = vadd.xlane.f32.xlu1 %v194_v53  ;;  %639 = vmatpush.msrb.mxu1 %v3573_v52 }
  0x50   :  { %640 = vmatpush.msrb.mxu1 %v3572_v56 }
  0x55   :  { %198 = vadd.xlane.f32.xlu0 %v197_v57  ;;  %201 = vadd.xlane.f32.xlu2 %v200_v58 }
  0x56   :  { %114 = vadd.xlane.f32.xlu1 %v113_v59 }
  0x5d   :  { %117 = vadd.xlane.f32.xlu0 %v116_v61 }
  0x5e   :  { %204 = vadd.xlane.f32.xlu1 %v203_v63 }
  0x80   :  { %v121_v9 = vpop.xlane.xlu0 %120  ;;  %v79_v10 = vpop.xlane.xlu2 %78 }
  0x81   :  { %v76_v11 = vpop.xlane.xlu1 %75  ;;  %v4538_v17 = vmul.f32 %v4535_v16, %v79_v10  ;;  %v4550_v22 = vmul.f32 %v4535_v16, %v121_v9 }
  0x82   :  { %v4547_v21 = vmul.f32 %v4535_v16, %v76_v11 }
  0x83   :  { %v226_v27 = vmul.f32 %v4538_v17, %v4538_v17  ;;  %v240_v34 = vmul.f32 %v4550_v22, %v4550_v22 }
  0x84   :  { %v225_v31 = vmul.f32 %v4547_v21, %v4547_v21 }
  0x88   :  { %v208_v32 = vpop.xlane.xlu0 %207  ;;  %v166_v33 = vpop.xlane.xlu2 %165 }
  0x89   :  { %v224_v35 = vmul.f32 %v208_v32, %v4535_v16  ;;  %v210_v37 = vmul.f32 %v166_v33, %v4535_v16  ;;  %v163_v39 = vpop.xlane.xlu1 %162 }
  0x8a   :  { %v209_v40 = vmul.f32 %v163_v39, %v4535_v16 }
  0x8b   :  { %v256_v43 = vsub.f32 %v224_v35, %v240_v34  ;;  %v242_v44 = vsub.f32 %v210_v37, %v226_v27 }
  0x8c   :  { %v241_v45 = vsub.f32 %v209_v40, %v225_v31  ;;  %v272_v40 = vsub.f32 %v4372_v0, %v4550_v22 }
  0x8d   :  { %v288_v47 = vadd.f32 1e-05, %v256_v43  ;;  %v4579_v49 = vadd.f32 1e-05, %v242_v44 }
  0x8e   :  { %v4581_v51 = vadd.f32 1e-05, %v241_v45 }
  0x8f   :  { %3869 = vrsqrt.f32 %v288_v47  ;;  %vm445_vm3 = vweird.f32 %v288_v47  ;;  %vm305_vm4 = vweird.f32 %v4579_v49 }
  0x90   :  { %3871 = vrsqrt.f32 %v4579_v49  ;;  %v82_v53 = vpop.xlane.xlu0 %81  ;;  %v85_v55 = vpop.xlane.xlu2 %84  ;;  %vm295_vm7 = vweird.f32 %v4581_v51 }
  0x91   :  { %3873 = vrsqrt.f32 %v4581_v51  ;;  %v4592_v57 = vmul.f32 %v4535_v16, %v82_v53  ;;  %v169_v58 = vpop.xlane.xlu1 %168  ;;  %v4598_v62 = vmul.f32 %v4535_v16, %v85_v55 }
  0x92   :  { %v211_v59 = vmul.f32 %v169_v58, %v4535_v16  ;;  %v4643_v58 = vld [vmem:[%s6651_s2] ss:$0 sm:$0xff] }
  0x93   :  { %v227_v61 = vmul.f32 %v4592_v57, %v4592_v57  ;;  %v228_v9 = vmul.f32 %v4598_v62, %v4598_v62 }
  0x95   :  { %v3870_v63 = vpop.eup %3869  ;;  %v243_v3 = vsub.f32 %v211_v59, %v227_v61  ;;  %v257_v61 = vsub.f32 %v4382_v2, %v4547_v21 }
  0x96   :  { %v4600_v4 = vpop.eup %3871  ;;  %v440_v5 = vmul.f32 %v3870_v63, %v288_v47  ;;  %vm446_vm2 = vweird.f32 %v3870_v63 }
  0x97   :  { %v3874_v6 = vpop.eup %3873  ;;  %v300_v7 = vmul.f32 %v4600_v4, %v4579_v49  ;;  %v4604_v8 = vadd.f32 1e-05, %v243_v3  ;;  %vm4626_vm6 = vmor %vm445_vm3, %vm446_vm2  ;;  %vm306_vm8 = vweird.f32 %v4600_v4  ;;  %v258_v49 = vsub.f32 %v4377_v1, %v4538_v17 }
  0x98   :  { %v441_v10 = vmul.f32 %v3870_v63, %v440_v5  ;;  %v290_v11 = vmul.f32 %v3874_v6, %v4581_v51  ;;  %v172_v13 = vpop.xlane.xlu0 %171  ;;  %v175_v15 = vpop.xlane.xlu2 %174  ;;  %vm296_vm5 = vweird.f32 %v3874_v6  ;;  %vm4664_vm10 = vmor %vm305_vm4, %vm306_vm8 }
  0x99   :  { %v301_v19 = vmul.f32 %v4600_v4, %v300_v7  ;;  %3875 = vrsqrt.f32 %v4604_v8  ;;  %v212_v20 = vmul.f32 %v172_v13, %v4535_v16  ;;  %v88_v23 = vpop.xlane.xlu1 %87  ;;  %v213_v29 = vmul.f32 %v175_v15, %v4535_v16  ;;  %vm297_vm9 = vmor %vm295_vm7, %vm296_vm5 }
  0x9a   :  { %v442_v25 = vmul.f32 0.5, %v441_v10  ;;  %v291_v27 = vmul.f32 %v3874_v6, %v290_v11  ;;  %v4613_v28 = vmul.f32 %v4535_v16, %v88_v23  ;;  %vm315_vm11 = vweird.f32 %v4604_v8 }
  0x9b   :  { %v302_v31 = vmul.f32 0.5, %v301_v19  ;;  %v244_v32 = vsub.f32 %v212_v20, %v228_v9 }
  0x9c   :  { %v443_v33 = vsub.f32 1.5, %v442_v25  ;;  %v292_v34 = vmul.f32 0.5, %v291_v27  ;;  %v229_v35 = vmul.f32 %v4613_v28, %v4613_v28 }
  0x9d   :  { %v303_v37 = vsub.f32 1.5, %v302_v31  ;;  %v4618_v39 = vadd.f32 1e-05, %v244_v32 }
  0x9e   :  { %v444_v41 = vmul.f32 %v3870_v63, %v443_v33  ;;  %v293_v43 = vsub.f32 1.5, %v292_v34  ;;  %v245_v44 = vsub.f32 %v213_v29, %v229_v35 }
  0x9f   :  { %v4622_v45 = vpop.eup %3875  ;;  %3877 = vrsqrt.f32 %v4618_v39  ;;  %v304_v47 = vmul.f32 %v4600_v4, %v303_v37  ;;  %vm325_vm14 = vweird.f32 %v4618_v39 }
  0xa0   :  { %v294_v52 = vmul.f32 %v3874_v6, %v293_v43  ;;  %v310_v0 = vmul.f32 %v4622_v45, %v4604_v8  ;;  %v4633_v22 = vadd.f32 1e-05, %v245_v44  ;;  %v91_v53 = vpop.xlane.xlu0 %90  ;;  %v448_v51 = vsel %vm4626_vm6, %v3870_v63, %v444_v41  ;;  %v94_v59 = vpop.xlane.xlu2 %93  ;;  %v4658_v63 = vld [vmem:[%s6651_s2 + $0x1] ss:$0 sm:$0xff] }
  0xa1   :  { %v4638_v55 = vmul.f32 %v4535_v16, %v91_v53  ;;  %v178_v56 = vpop.xlane.xlu1 %177  ;;  %v464_v10 = vmul.f32 %v448_v51, %v272_v40  ;;  %v4669_v13 = vmul.f32 %v4535_v16, %v94_v59  ;;  %v308_v20 = vsel %vm4664_vm10, %v4600_v4, %v304_v47 }
  0xa2   :  { %v311_v3 = vmul.f32 %v4622_v45, %v310_v0  ;;  %3879 = vrsqrt.f32 %v4633_v22  ;;  %v214_v5 = vmul.f32 %v178_v56, %v4535_v16  ;;  %v298_v9 = vsel %vm297_vm9, %v3874_v6, %v294_v52 }
  0xa3   :  { %v230_v7 = vmul.f32 %v4638_v55, %v4638_v55  ;;  %v449_v11 = vmul.f32 %v298_v9, %v257_v61  ;;  %v481_v19 = vmul.f32 %v4643_v58, %v464_v10  ;;  %vm316_vm12 = vweird.f32 %v4622_v45 }
  0xa4   :  { %v312_v21 = vmul.f32 0.5, %v311_v3  ;;  %v231_v17 = vmul.f32 %v4669_v13, %v4669_v13  ;;  %v450_v34 = vmul.f32 %v308_v20, %v258_v49  ;;  %vm4705_vm13 = vmor %vm315_vm11, %vm316_vm12  ;;  %v259_v61 = vsub.f32 %v4402_v12, %v4592_v57 }
  0xa5   :  { %v4671_v6 = vpop.eup %3877  ;;  %v246_v15 = vsub.f32 %v214_v5, %v230_v7  ;;  %v466_v27 = vmul.f32 %v4643_v58, %v449_v11  ;;  %v4687_v31 = vadd.f32 %v4658_v63, %v481_v19  ;;  %vm335_vm2 = vweird.f32 %v4633_v22 }
  0xa6   :  { %v313_v23 = vsub.f32 1.5, %v312_v21  ;;  %v320_v25 = vmul.f32 %v4671_v6, %v4618_v39  ;;  %v467_v53 = vmul.f32 %v4643_v58, %v450_v34  ;;  %vm326_vm15 = vweird.f32 %v4671_v6 }
  0xa7   :  { %v4684_v29 = vadd.f32 1e-05, %v246_v15  ;;  %v483_v1 = vadd.f32 %v4658_v63, %v466_v27  ;;  %3571 = vmatmul.msk.f32.vlgmr.msra.gmra.mxu1 %vm73_vm0, %v4687_v31  ;;  %vm4737_vm1 = vmor %vm325_vm14, %vm326_vm15  ;;  %v262_v39 = vsub.f32 %v4432_v24, %v4638_v55 }
  0xa8   :  { %v4689_v32 = vpop.eup %3879  ;;  %v321_v4 = vmul.f32 %v4671_v6, %v320_v25  ;;  %v181_v33 = vpop.xlane.xlu0 %180  ;;  %v314_v35 = vmul.f32 %v4622_v45, %v313_v23  ;;  %v484_v7 = vadd.f32 %v4658_v63, %v467_v53 }
  0xa9   :  { %v330_v37 = vmul.f32 %v4689_v32, %v4633_v22  ;;  %3881 = vrsqrt.f32 %v4684_v29  ;;  %v97_v40 = vpop.xlane.xlu1 %96  ;;  %v184_v41 = vpop.xlane.xlu2 %183  ;;  %3556 = vmatmul.msk.f32.vlgmr.msra.gmra.mxu0 %vm73_vm0, %v483_v1  ;;  %3596 = vmatmul.msk.f32.vlgmr.msra.gmra.mxu2 %vm73_vm0, %v483_v1  ;;  %v215_v46 = vmul.f32 %v181_v33, %v4535_v16  ;;  %vm336_vm3 = vweird.f32 %v4689_v32 }
  0xaa   :  { %v322_v44 = vmul.f32 0.5, %v321_v4  ;;  %v4713_v52 = vmul.f32 %v4535_v16, %v97_v40  ;;  %v216_v47 = vmul.f32 %v184_v41, %v4535_v16  ;;  %v318_v59 = vsel %vm4705_vm13, %v4622_v45, %v314_v35  ;;  %vm4771_vm4 = vmor %vm335_vm2, %vm336_vm3 }
  0xab   :  { %v247_v0 = vsub.f32 %v215_v46, %v231_v17  ;;  %v331_v51 = vmul.f32 %v4689_v32, %v330_v37  ;;  %v451_v10 = vmul.f32 %v318_v59, %v259_v61  ;;  %v260_v17 = vsub.f32 %v4409_v14, %v4598_v62 }
  0xac   :  { %v232_v8 = vmul.f32 %v4713_v52, %v4713_v52  ;;  %v323_v56 = vsub.f32 1.5, %v322_v44  ;;  %vm345_vm5 = vweird.f32 %v4684_v29  ;;  %v263_v62 = vsub.f32 %v4439_v26, %v4669_v13 }
  0xad   :  { %v4725_v3 = vadd.f32 1e-05, %v247_v0  ;;  %v332_v21 = vmul.f32 0.5, %v331_v51  ;;  %v468_v49 = vmul.f32 %v4643_v58, %v451_v10  ;;  %v261_v0 = vsub.f32 %v4419_v18, %v4613_v28 }
  0xae   :  { %v248_v9 = vsub.f32 %v216_v47, %v232_v8  ;;  %v324_v45 = vmul.f32 %v4671_v6, %v323_v56 }
  0xaf   :  { %v4727_v5 = vpop.eup %3881  ;;  %3883 = vrsqrt.f32 %v4725_v3  ;;  %3576 = vmatmul.msk.f32.vlgmr.msrb.gmra.mxu1 %vm73_vm0, %v483_v1  ;;  %v333_v25 = vsub.f32 1.5, %v332_v21  ;;  %v485_v35 = vadd.f32 %v4658_v63, %v468_v49  ;;  %vm355_vm8 = vweird.f32 %v4725_v3 }
  0xb0   :  { %v100_v2 = vpop.xlane.xlu0 %99  ;;  %v340_v12 = vmul.f32 %v4727_v5, %v4684_v29  ;;  %v4747_v20 = vadd.f32 1e-05, %v248_v9  ;;  %v328_v4 = vsel %vm4737_vm1, %v4671_v6, %v324_v45  ;;  %vm346_vm6 = vweird.f32 %v4727_v5 }
  0xb1   :  { %v187_v57 = vpop.xlane.xlu1 %186  ;;  %3557 = vmatmul.msk.f32.gmra.mxu0 %vm73_vm0, %v484_v7  ;;  %3597 = vmatmul.msk.f32.gmra.mxu2 %vm73_vm0, %v484_v7  ;;  %v4744_v11 = vmul.f32 %v4535_v16, %v100_v2  ;;  %v103_v19 = vpop.xlane.xlu2 %102  ;;  %v452_v37 = vmul.f32 %v328_v4, %v260_v17  ;;  %v334_v6 = vmul.f32 %v4689_v32, %v333_v25  ;;  %vm4802_vm7 = vmor %vm345_vm5, %vm346_vm6 }
  0xb2   :  { %v217_v15 = vmul.f32 %v187_v57, %v4535_v16  ;;  %v341_v27 = vmul.f32 %v4727_v5, %v340_v12  ;;  %v4761_v34 = vmul.f32 %v4535_v16, %v103_v19  ;;  %3885 = vrsqrt.f32 %v4747_v20 }
  0xb3   :  { %v233_v23 = vmul.f32 %v4744_v11, %v4744_v11  ;;  %v469_v53 = vmul.f32 %v4643_v58, %v452_v37  ;;  %v338_v56 = vsel %vm4771_vm4, %v4689_v32, %v334_v6  ;;  %vm365_vm11 = vweird.f32 %v4747_v20 }
  0xb4   :  { %v342_v41 = vmul.f32 0.5, %v341_v27  ;;  %v234_v43 = vmul.f32 %v4761_v34, %v4761_v34  ;;  %v264_v2 = vsub.f32 %v4449_v30, %v4713_v52 }
  0xb5   :  { %v4756_v1 = vpop.eup %3883  ;;  %v249_v33 = vsub.f32 %v217_v15, %v233_v23  ;;  %v486_v28 = vadd.f32 %v4658_v63, %v469_v53 }
  0xb6   :  { %v350_v14 = vmul.f32 %v4756_v1, %v4725_v3  ;;  %v343_v8 = vsub.f32 1.5, %v342_v41  ;;  %vm356_vm9 = vweird.f32 %v4756_v1 }
  0xb7   :  { %3577 = vmatmul.msk.f32.gmra.mxu1 %vm73_vm0, %v484_v7  ;;  %v4777_v22 = vadd.f32 1e-05, %v249_v33  ;;  %v453_v7 = vmul.f32 %v338_v56, %v261_v0  ;;  %vm4833_vm10 = vmor %vm355_vm8, %vm356_vm9 }
  0xb8   :  { %v190_v40 = vpop.xlane.xlu0 %189  ;;  %v351_v47 = vmul.f32 %v4756_v1, %v350_v14  ;;  %v4789_v51 = vpop.eup %3885  ;;  %v344_v9 = vmul.f32 %v4727_v5, %v343_v8 }
  0xb9   :  { %3558 = vmatmul.msk.f32.gmra.mxu0 %vm73_vm0, %v485_v35  ;;  %3598 = vmatmul.msk.f32.gmra.mxu2 %vm73_vm0, %v485_v35  ;;  %v218_v44 = vmul.f32 %v190_v40, %v4535_v16  ;;  %v106_v46 = vpop.xlane.xlu1 %105  ;;  %3887 = vrsqrt.f32 %v4777_v22  ;;  %v193_v18 = vpop.xlane.xlu2 %192  ;;  %v360_v32 = vmul.f32 %v4789_v51, %v4747_v20  ;;  %v470_v15 = vmul.f32 %v4643_v58, %v453_v7 }
  0xba   :  { %v4793_v61 = vmul.f32 %v4535_v16, %v106_v46  ;;  %v352_v10 = vmul.f32 0.5, %v351_v47  ;;  %v219_v21 = vmul.f32 %v193_v18, %v4535_v16  ;;  %v348_v23 = vsel %vm4802_vm7, %v4727_v5, %v344_v9 }
  0xbb   :  { %v250_v59 = vsub.f32 %v218_v44, %v234_v43  ;;  %v361_v49 = vmul.f32 %v4789_v51, %v360_v32  ;;  %v487_v4 = vadd.f32 %v4658_v63, %v470_v15  ;;  %v454_v17 = vmul.f32 %v348_v23, %v262_v39 }
  0xbc   :  { %v235_v45 = vmul.f32 %v4793_v61, %v4793_v61  ;;  %v353_v19 = vsub.f32 1.5, %v352_v10  ;;  %vm366_vm12 = vweird.f32 %v4789_v51  ;;  %vm375_vm14 = vweird.f32 %v4777_v22 }
  0xbd   :  { %v4808_v29 = vadd.f32 1e-05, %v250_v59  ;;  %v362_v5 = vmul.f32 0.5, %v361_v49  ;;  %v471_v43 = vmul.f32 %v4643_v58, %v454_v17  ;;  %vm4864_vm13 = vmor %vm365_vm11, %vm366_vm12  ;;  %v265_v23 = vsub.f32 %v4462_v36, %v4744_v11 }
  0xbe   :  { %v251_v25 = vsub.f32 %v219_v21, %v235_v45  ;;  %v354_v33 = vmul.f32 %v4756_v1, %v353_v19 }
  0xbf   :  { %3578 = vmatmul.msk.f32.gmra.mxu1 %vm73_vm0, %v485_v35  ;;  %v4813_v57 = vpop.eup %3887  ;;  %3889 = vrsqrt.f32 %v4808_v29  ;;  %v363_v44 = vsub.f32 1.5, %v362_v5  ;;  %v488_v47 = vadd.f32 %v4658_v63, %v471_v43  ;;  %vm385_vm2 = vweird.f32 %v4808_v29 }
  0xc0   :  { %v109_v12 = vpop.xlane.xlu0 %108  ;;  %v370_v24 = vmul.f32 %v4813_v57, %v4777_v22  ;;  %v4839_v3 = vadd.f32 1e-05, %v251_v25  ;;  %v358_v46 = vsel %vm4833_vm10, %v4756_v1, %v354_v33  ;;  %vm376_vm15 = vweird.f32 %v4813_v57 }
  0xc1   :  { %3559 = vmatmul.msk.f32.gmra.mxu0 %vm73_vm0, %v486_v28  ;;  %3599 = vmatmul.msk.f32.gmra.mxu2 %vm73_vm0, %v486_v28  ;;  %v4824_v27 = vmul.f32 %v4535_v16, %v109_v12  ;;  %v196_v55 = vpop.xlane.xlu1 %195  ;;  %v112_v41 = vpop.xlane.xlu2 %111  ;;  %v455_v56 = vmul.f32 %v358_v46, %v263_v62  ;;  %v364_v1 = vmul.f32 %v4789_v51, %v363_v44  ;;  %vm4893_vm1 = vmor %vm375_vm14, %vm376_vm15 }
  0xc2   :  { %v220_v40 = vmul.f32 %v196_v55, %v4535_v16  ;;  %v371_v6 = vmul.f32 %v4813_v57, %v370_v24  ;;  %3891 = vrsqrt.f32 %v4839_v3  ;;  %v4855_v53 = vmul.f32 %v4535_v16, %v112_v41 }
  0xc3   :  { %v236_v37 = vmul.f32 %v4824_v27, %v4824_v27  ;;  %v472_v45 = vmul.f32 %v4643_v58, %v455_v56  ;;  %v368_v21 = vsel %vm4864_vm13, %v4789_v51, %v364_v1  ;;  %v266_v44 = vsub.f32 %v4469_v38, %v4761_v34 }
  0xc4   :  { %v372_v8 = vmul.f32 0.5, %v371_v6  ;;  %v237_v18 = vmul.f32 %v4855_v53, %v4855_v53  ;;  %v456_v51 = vmul.f32 %v368_v21, %v264_v2  ;;  %vm395_vm5 = vweird.f32 %v4839_v3 }
  0xc5   :  { %v4845_v14 = vpop.eup %3889  ;;  %v252_v0 = vsub.f32 %v220_v40, %v236_v37  ;;  %v489_v49 = vadd.f32 %v4658_v63, %v472_v45 }
  0xc6   :  { %v380_v26 = vmul.f32 %v4845_v14, %v4808_v29  ;;  %v373_v7 = vsub.f32 1.5, %v372_v8  ;;  %v473_v11 = vmul.f32 %v4643_v58, %v456_v51  ;;  %vm386_vm3 = vweird.f32 %v4845_v14 }
  0xc7   :  { %3579 = vmatmul.msk.f32.gmra.mxu1 %vm73_vm0, %v486_v28  ;;  %v4870_v20 = vadd.f32 1e-05, %v252_v0  ;;  %vm4924_vm4 = vmor %vm385_vm2, %vm386_vm3 }
  0xc8   :  { %v199_v13 = vpop.xlane.xlu0 %198  ;;  %v381_v9 = vmul.f32 %v4845_v14, %v380_v26  ;;  %v4876_v32 = vpop.eup %3891  ;;  %v374_v15 = vmul.f32 %v4813_v57, %v373_v7  ;;  %v490_v29 = vadd.f32 %v4658_v63, %v473_v11 }
  0xc9   :  { %3560 = vmatmul.msk.f32.gmra.mxu0 %vm73_vm0, %v487_v4  ;;  %3600 = vmatmul.msk.f32.gmra.mxu2 %vm73_vm0, %v487_v4  ;;  %v221_v28 = vmul.f32 %v199_v13, %v4535_v16  ;;  %v115_v10 = vpop.xlane.xlu1 %114  ;;  %3893 = vrsqrt.f32 %v4870_v20  ;;  %v390_v30 = vmul.f32 %v4876_v32, %v4839_v3  ;;  %v202_v52 = vpop.xlane.xlu2 %201  ;;  %vm396_vm6 = vweird.f32 %v4876_v32 }
  0xca   :  { %v4888_v39 = vmul.f32 %v4535_v16, %v115_v10  ;;  %v382_v19 = vmul.f32 0.5, %v381_v9  ;;  %v222_v55 = vmul.f32 %v202_v52, %v4535_v16  ;;  %v378_v33 = vsel %vm4893_vm1, %v4813_v57, %v374_v15  ;;  %vm397_vm7 = vmor %vm395_vm5, %vm396_vm6 }
  0xcb   :  { %v253_v12 = vsub.f32 %v221_v28, %v237_v18  ;;  %v391_v17 = vmul.f32 %v4876_v32, %v390_v30  ;;  %v457_v35 = vmul.f32 %v378_v33, %v265_v23  ;;  %vm405_vm8 = vweird.f32 %v4870_v20 }
  0xcc   :  { %v238_v24 = vmul.f32 %v4888_v39, %v4888_v39  ;;  %vm1283_vm5 = vcmask 523264  }
  0xcd   :  { %v4903_v25 = vadd.f32 1e-05, %v253_v12  ;;  %v392_v41 = vmul.f32 0.5, %v391_v17  ;;  %v474_v46 = vmul.f32 %v4643_v58, %v457_v35 }
  0xce   :  { %v254_v37 = vsub.f32 %v222_v55, %v238_v24 }
  0xcf   :  { %3580 = vmatmul.msk.f32.gmra.mxu1 %vm73_vm0, %v487_v4  ;;  %v383_v4 = vsub.f32 1.5, %v382_v19  ;;  %v4912_v36 = vpop.eup %3893  ;;  %3895 = vrsqrt.f32 %v4903_v25  ;;  %v393_v13 = vsub.f32 1.5, %v392_v41  ;;  %v491_v56 = vadd.f32 %v4658_v63, %v474_v46 }
  0xd0   :  { %v118_v5 = vpop.xlane.xlu0 %117  ;;  %v400_v57 = vmul.f32 %v4912_v36, %v4870_v20  ;;  %v4935_v0 = vadd.f32 1e-05, %v254_v37  ;;  %vm406_vm9 = vweird.f32 %v4912_v36  ;;  %vm415_vm11 = vweird.f32 %v4903_v25 }
  0xd1   :  { %3561 = vmatmul.msk.f32.gmra.mxu0 %vm73_vm0, %v488_v47  ;;  %3601 = vmatmul.msk.f32.gmra.mxu2 %vm73_vm0, %v488_v47  ;;  %v4919_v40 = vmul.f32 %v4535_v16, %v118_v5  ;;  %v384_v6 = vmul.f32 %v4845_v14, %v383_v4  ;;  %v205_v62 = vpop.xlane.xlu1 %204  ;;  %v394_v18 = vmul.f32 %v4876_v32, %v393_v13  ;;  %vm407_vm10 = vmor %vm405_vm8, %vm406_vm9 }
  0xd2   :  { %v223_v26 = vmul.f32 %v205_v62, %v4535_v16  ;;  %3897 = vrsqrt.f32 %v4935_v0  ;;  %vm425_vm14 = vweird.f32 %v4935_v0 }
  0xd3   :  { %v239_v8 = vmul.f32 %v4919_v40, %v4919_v40  ;;  %v388_v38 = vsel %vm4924_vm4, %v4845_v14, %v384_v6  ;;  %v267_v14 = vsub.f32 %v4479_v42, %v4793_v61  ;;  %v398_v45 = vsel %vm397_vm7, %v4876_v32, %v394_v18 }
  0xd4   :  { %v458_v1 = vmul.f32 %v388_v38, %v266_v44  ;;  %v268_v32 = vsub.f32 %v4492_v48, %v4824_v27  ;;  %v269_v27 = vsub.f32 %v4499_v50, %v4855_v53  ;;  %v270_v50 = vsub.f32 %v4509_v54, %v4888_v39 }
  0xd5   :  { %v3896_v34 = vpop.eup %3895  ;;  %v255_v59 = vsub.f32 %v223_v26, %v239_v8  ;;  %v459_v15 = vmul.f32 %v398_v45, %v267_v14  ;;  %v271_v54 = vsub.f32 %v4522_v60, %v4919_v40  ;;  %v3860_v14 = vld [vmem:[%s6651_s2 + $0x6] ss:$0 sm:$0xff] }
  0xd6   :  { %v410_v7 = vmul.f32 %v3896_v34, %v4903_v25  ;;  %v475_v3 = vmul.f32 %v4643_v58, %v458_v1  ;;  %vm416_vm12 = vweird.f32 %v3896_v34 }
  0xd7   :  { %3581 = vmatmul.msk.f32.gmra.mxu1 %vm73_vm0, %v488_v47  ;;  %v401_v47 = vmul.f32 %v4912_v36, %v400_v57  ;;  %v287_v9 = vadd.f32 1e-05, %v255_v59  ;;  %v476_v20 = vmul.f32 %v4643_v58, %v459_v15  ;;  %vm417_vm13 = vmor %vm415_vm11, %vm416_vm12 }
  0xd8   :  { %v411_v2 = vmul.f32 %v3896_v34, %v410_v7  ;;  %v3898_v21 = vpop.eup %3897  ;;  %v492_v12 = vadd.f32 %v4658_v63, %v475_v3  ;;  %v5026_v3 = vld [vmem:[%s6651_s2 + $0x5] ss:$0 sm:$0xff] }
  0xd9   :  { %3562 = vmatmul.msk.f32.gmra.mxu0 %vm73_vm0, %v489_v49  ;;  %3602 = vmatmul.msk.f32.gmra.mxu2 %vm73_vm0, %v489_v49  ;;  %v402_v28 = vmul.f32 0.5, %v401_v47  ;;  %3899 = vrsqrt.f32 %v287_v9  ;;  %v420_v19 = vmul.f32 %v3898_v21, %v4935_v0  ;;  %v493_v51 = vadd.f32 %v4658_v63, %v476_v20 }
  0xda   :  { %v412_v61 = vmul.f32 0.5, %v411_v2  ;;  %vm426_vm15 = vweird.f32 %v3898_v21  ;;  %vm435_vm2 = vweird.f32 %v287_v9 }
  0xdb   :  { %v403_v10 = vsub.f32 1.5, %v402_v28  ;;  %v421_v52 = vmul.f32 %v3898_v21, %v420_v19  ;;  %vm427_vm1 = vmor %vm425_vm14, %vm426_vm15 }
  0xdc   :  { %v413_v30 = vsub.f32 1.5, %v412_v61 }
  0xdd   :  { %v404_v42 = vmul.f32 %v4912_v36, %v403_v10  ;;  %v422_v55 = vmul.f32 0.5, %v421_v52 }
  0xde   :  { %v414_v24 = vmul.f32 %v3896_v34, %v413_v30 }
  0xdf   :  { %3582 = vmatmul.msk.f32.gmra.mxu1 %vm73_vm0, %v489_v49  ;;  %v408_v22 = vsel %vm407_vm10, %v4912_v36, %v404_v42  ;;  %v3900_v49 = vpop.eup %3899  ;;  %v423_v25 = vsub.f32 1.5, %v422_v55 }
  0xe0   :  { %v460_v23 = vmul.f32 %v408_v22, %v268_v32  ;;  %v430_v48 = vmul.f32 %v3900_v49, %v287_v9  ;;  %v418_v33 = vsel %vm417_vm13, %v3896_v34, %v414_v24  ;;  %vm436_vm3 = vweird.f32 %v3900_v49 }
  0xe1   :  { %3563 = vmatmul.msk.f32.gmra.mxu0 %vm73_vm0, %v490_v29  ;;  %3603 = vmatmul.msk.f32.gmra.mxu2 %vm73_vm0, %v490_v29  ;;  %v461_v36 = vmul.f32 %v418_v33, %v269_v27  ;;  %v424_v11 = vmul.f32 %v3898_v21, %v423_v25  ;;  %vm437_vm4 = vmor %vm435_vm2, %vm436_vm3 }
  0xe2   :  { %v477_v4 = vmul.f32 %v4643_v58, %v460_v23  ;;  %v431_v17 = vmul.f32 %v3900_v49, %v430_v48 }
  0xe3   :  { %v478_v53 = vmul.f32 %v4643_v58, %v461_v36  ;;  %v428_v6 = vsel %vm427_vm1, %v3898_v21, %v424_v11 }
  0xe4   :  { %v494_v5 = vadd.f32 %v4658_v63, %v477_v4  ;;  %v432_v35 = vmul.f32 0.5, %v431_v17  ;;  %v462_v57 = vmul.f32 %v428_v6, %v270_v50 }
  0xe5   :  { %v495_v41 = vadd.f32 %v4658_v63, %v478_v53 }
  0xe6   :  { %v433_v37 = vsub.f32 1.5, %v432_v35  ;;  %v479_v39 = vmul.f32 %v4643_v58, %v462_v57 }
  0xe7   :  { %3583 = vmatmul.msk.f32.gmra.mxu1 %vm73_vm0, %v490_v29 }
  0xe8   :  { %v434_v62 = vmul.f32 %v3900_v49, %v433_v37  ;;  %v496_v29 = vadd.f32 %v4658_v63, %v479_v39 }
  0xe9   :  { %3604 = vmatmul.msk.f32.gmra.mxu2 %vm73_vm0, %v491_v56  ;;  %3564 = vmatmul.msk.f32.gmra.mxu0 %vm73_vm0, %v491_v56 }
  0xea   :  { %v438_v43 = vsel %vm437_vm4, %v3900_v49, %v434_v62 }
  0xeb   :  { %v463_v44 = vmul.f32 %v438_v43, %v271_v54 }
  0xed   :  { %v480_v46 = vmul.f32 %v4643_v58, %v463_v44 }
  0xef   :  { %3584 = vmatmul.msk.f32.gmra.mxu1 %vm73_vm0, %v491_v56  ;;  %v497_v60 = vadd.f32 %v4658_v63, %v480_v46 }
  0xf1   :  { %3605 = vmatmul.msk.f32.gmra.mxu2 %vm73_vm0, %v492_v12  ;;  %3565 = vmatmul.msk.f32.gmra.mxu0 %vm73_vm0, %v492_v12 }
  0xf7   :  { %3585 = vmatmul.msk.f32.gmra.mxu1 %vm73_vm0, %v492_v12 }
  0xf9   :  { %3606 = vmatmul.msk.f32.gmra.mxu2 %vm73_vm0, %v493_v51  ;;  %3566 = vmatmul.msk.f32.gmra.mxu0 %vm73_vm0, %v493_v51 }
  0xff   :  { %3586 = vmatmul.msk.f32.gmra.mxu1 %vm73_vm0, %v493_v51 }
 0x101   :  { %3607 = vmatmul.msk.f32.gmra.mxu2 %vm73_vm0, %v494_v5  ;;  %3567 = vmatmul.msk.f32.gmra.mxu0 %vm73_vm0, %v494_v5 }
 0x107   :  { %3587 = vmatmul.msk.f32.gmra.mxu1 %vm73_vm0, %v494_v5 }
 0x109   :  { %3608 = vmatmul.msk.f32.gmra.mxu2 %vm73_vm0, %v495_v41  ;;  %3568 = vmatmul.msk.f32.gmra.mxu0 %vm73_vm0, %v495_v41 }
 0x10f   :  { %3588 = vmatmul.msk.f32.gmra.mxu1 %vm73_vm0, %v495_v41 }
 0x111   :  { %3609 = vmatmul.msk.f32.gmra.mxu2 %vm73_vm0, %v496_v29  ;;  %3569 = vmatmul.msk.f32.gmra.mxu0 %vm73_vm0, %v496_v29 }
 0x117   :  { %3589 = vmatmul.msk.f32.gmra.mxu1 %vm73_vm0, %v496_v29 }
 0x119   :  { %3610 = vmatmul.msk.f32.gmra.mxu2 %vm73_vm0, %v497_v60  ;;  %3570 = vmatmul.msk.f32.gmra.mxu0 %vm73_vm0, %v497_v60 }
 0x11f   :  { %3590 = vmatmul.msk.f32.gmra.mxu1 %vm73_vm0, %v497_v60 }
 0x121   :  { %3611 = vmatmul.msk.f32.gmra.mxu2 %vm73_vm0, %v4687_v31 }
 0x124   :  { %v5004_v40 = vpop.f32.mrf.mxu1 }
 0x126   :  { %v5035_v12 = vpop.f32.mrf.mxu0 }
 0x127   :  { %3591 = vmatmul.msk.f32.gmra.mxu1 %vm73_vm0, %v4687_v31  ;;  %v5017_v31 = vld [vmem:[%s6651_s2 + $0x8] sm:$0xf] }
 0x128   :  { %v765_v7 = vrot.slane %v5017_v31, 2  ;;  %v5033_v21 = vperm.slane %v5017_v31, 0 }
 0x12a   :  { %v5040_v42 = vperm.slane %v765_v7, 0 }
 0x12c   :  { %v714_v58 = vpop.f32.mrf.mxu2  ;;  %v5008_v0 = vpop.f32.mrf.mxu1 }
 0x12d   :  { %v5091_v11 = vadd.f32 %v3860_v14, %v714_v58 }
 0x12e   :  { %v5084_v33 = vpop.f32.mrf.mxu0 }
 0x12f   :  { %v839_v62 = vmul.f32 %v5033_v21, %v5091_v11 }
 0x134   :  { %v717_v63 = vpop.f32.mrf.mxu2  ;;  %v5010_v8 = vpop.f32.mrf.mxu1 }
 0x135   :  { %v5079_v25 = vadd.f32 %v3860_v14, %v717_v63  ;;  %v5129_v44 = vadd.f32 %v5026_v3, %v5010_v8  ;;  %v764_v63 = vrot.slane %v5017_v31, 1  ;;  %v5143_v8 = vadd.f32 %v5026_v3, %v5008_v0 }
 0x136   :  { %v576_v29 = vpop.f32.mrf.mxu0 }
 0x137   :  { %v840_v53 = vmul.f32 %v5033_v21, %v5079_v25  ;;  %v5158_v0 = vperm.slane %v764_v63, 0 }
 0x13c   :  { %v720_v26 = vpop.f32.mrf.mxu2  ;;  %v5012_v13 = vpop.f32.mrf.mxu1 }
 0x13d   :  { %v5069_v55 = vadd.f32 %v3860_v14, %v720_v26  ;;  %v5118_v54 = vadd.f32 %v5026_v3, %v5012_v13  ;;  %v766_v26 = vrot.slane %v5017_v31, 3  ;;  %v776_v13 = vmul.f32 %v5033_v21, %v5129_v44 }
 0x13f   :  { %v841_v50 = vmul.f32 %v5033_v21, %v5069_v55  ;;  %v777_v46 = vmul.f32 %v5033_v21, %v5118_v54  ;;  %v809_v58 = vmul.f32 %v5040_v42, %v5118_v54 }
 0x144   :  { %v723_v47 = vpop.f32.mrf.mxu2  ;;  %v651_v38 = vpop.f32.mrf.mxu1 }
 0x145   :  { %v5059_v49 = vadd.f32 %v3860_v14, %v723_v47  ;;  %v5103_v37 = vadd.f32 %v5026_v3, %v651_v38  ;;  %v808_v47 = vmul.f32 %v5040_v42, %v5129_v44  ;;  %v5155_v38 = vld [vmem:[%s6651_s2 + $0x4] ss:$0 sm:$0xff] }
 0x147   :  { %v842_v17 = vmul.f32 %v5033_v21, %v5059_v49  ;;  %v778_v39 = vmul.f32 %v5033_v21, %v5103_v37  ;;  %v810_v43 = vmul.f32 %v5040_v42, %v5103_v37 }
 0x14c   :  { %v726_v34 = vpop.f32.mrf.mxu2  ;;  %v654_v56 = vpop.f32.mrf.mxu1 }
 0x14d   :  { %v5053_v52 = vadd.f32 %v3860_v14, %v726_v34  ;;  %v5087_v5 = vadd.f32 %v5026_v3, %v654_v56  ;;  %v579_v34 = vpop.f32.mrf.mxu0  ;;  %v5160_v56 = vperm.slane %v766_v26, 0 }
 0x14f   :  { %v843_v4 = vmul.f32 %v5033_v21, %v5053_v52  ;;  %v779_v6 = vmul.f32 %v5033_v21, %v5087_v5  ;;  %v811_v57 = vmul.f32 %v5040_v42, %v5087_v5 }
 0x154   :  { %v729_v1 = vpop.f32.mrf.mxu2  ;;  %v657_v59 = vpop.f32.mrf.mxu1 }
 0x155   :  { %v5042_v61 = vadd.f32 %v3860_v14, %v729_v1  ;;  %v5065_v23 = vadd.f32 %v5026_v3, %v657_v59  ;;  %v775_v1 = vmul.f32 %v5033_v21, %v5143_v8 }
 0x157   :  { %v844_v51 = vmul.f32 %v5033_v21, %v5042_v61  ;;  %v780_v36 = vmul.f32 %v5033_v21, %v5065_v23  ;;  %v812_v35 = vmul.f32 %v5040_v42, %v5065_v23 }
 0x15c   :  { %v732_v18 = vpop.f32.mrf.mxu2  ;;  %v660_v28 = vpop.f32.mrf.mxu1 }
 0x15d   :  { %v5028_v10 = vadd.f32 %v3860_v14, %v732_v18  ;;  %v5047_v32 = vadd.f32 %v5026_v3, %v660_v28  ;;  %v807_v18 = vmul.f32 %v5040_v42, %v5143_v8 }
 0x15f   :  { %v845_v22 = vmul.f32 %v5033_v21, %v5028_v10  ;;  %v781_v24 = vmul.f32 %v5033_v21, %v5047_v32  ;;  %v813_v27 = vmul.f32 %v5040_v42, %v5047_v32 }
 0x164   :  { %v735_v9 = vpop.f32.mrf.mxu2  ;;  %v663_v45 = vpop.f32.mrf.mxu1 }
 0x165   :  { %v5030_v2 = vadd.f32 %v3860_v14, %v735_v9  ;;  %v5038_v15 = vadd.f32 %v5026_v3, %v663_v45  ;;  %v5178_v14 = vadd.f32 %v5155_v38, %v5035_v12  ;;  %v5181_v9 = vadd.f32 %v5155_v38, %v576_v29 }
 0x166   :  { %v877_v45 = vmul.f32 %v5040_v42, %v5028_v10  ;;  %v797_v12 = vmul.f32 %v5158_v0, %v5047_v32  ;;  %v824_v29 = vmul.f32 %v5160_v56, %v5129_v44 }
 0x167   :  { %v846_v19 = vmul.f32 %v5033_v21, %v5030_v2  ;;  %v814_v20 = vmul.f32 %v5040_v42, %v5038_v15  ;;  %v782_v30 = vmul.f32 %v5033_v21, %v5038_v15  ;;  %v798_v28 = vmul.f32 %v5158_v0, %v5038_v15 }
 0x168   :  { %v830_v31 = vmul.f32 %v5160_v56, %v5038_v15  ;;  %v878_v7 = vmul.f32 %v5040_v42, %v5030_v2  ;;  %v829_v15 = vmul.f32 %v5160_v56, %v5047_v32  ;;  %v828_v32 = vmul.f32 %v5160_v56, %v5065_v23 }
 0x169   :  { %1476 = vmatpush.msrb.mxu2 %v846_v19  ;;  %3612 = vmatpush.xpose.msk.msrb.mxu0 %vm73_vm0, %v782_v30  ;;  %v876_v19 = vmul.f32 %v5040_v42, %v5042_v61  ;;  %v862_v63 = vmul.f32 %v5158_v0, %v5030_v2  ;;  %v894_v26 = vmul.f32 %v5160_v56, %v5030_v2 }
 0x16a   :  { %3844 = vmatpush.xpose.msk.msra.mxu3 %vm73_vm0, %v782_v30  ;;  %3644 = vmatpush.xpose.msk.msra.mxu1 %vm73_vm0, %v814_v20  ;;  %v875_v20 = vmul.f32 %v5040_v42, %v5053_v52 }
 0x16b   :  { %1477 = vmatpush.msrb.mxu2 %v845_v22  ;;  %v796_v22 = vmul.f32 %v5158_v0, %v5065_v23  ;;  %v795_v23 = vmul.f32 %v5158_v0, %v5087_v5 }
 0x16c   :  { %v5071_v48 = vpop.f32.mrf.mxu1 }
 0x16d   :  { %1478 = vmatpush.msrb.mxu2 %v844_v51  ;;  %3613 = vmatpush.xpose.msk.msrb.mxu0 %vm73_vm0, %v781_v24  ;;  %v582_v51 = vpop.f32.mrf.mxu0 }
 0x16e   :  { %3845 = vmatpush.xpose.msk.msra.mxu3 %vm73_vm0, %v781_v24  ;;  %3645 = vmatpush.xpose.msk.msra.mxu1 %vm73_vm0, %v813_v27  ;;  %v874_v24 = vmul.f32 %v5040_v42, %v5059_v49  ;;  %v5214_v27 = vadd.f32 %v5155_v38, %v5084_v33  ;;  %v827_v33 = vmul.f32 %v5160_v56, %v5087_v5 }
 0x16f   :  { %1479 = vmatpush.msrb.mxu2 %v843_v4  ;;  %v5217_v4 = vadd.f32 %v5155_v38, %v579_v34  ;;  %v5244_v5 = vadd.f32 %v5155_v38, %v582_v51  ;;  %v893_v34 = vmul.f32 %v5160_v56, %v5028_v10  ;;  %v889_v51 = vmul.f32 %v5160_v56, %v5069_v55 }
 0x171   :  { %1480 = vmatpush.msrb.mxu2 %v842_v17  ;;  %3614 = vmatpush.xpose.msk.msrb.mxu0 %vm73_vm0, %v780_v36  ;;  %v873_v17 = vmul.f32 %v5040_v42, %v5069_v55 }
 0x172   :  { %3846 = vmatpush.xpose.msk.msra.mxu3 %vm73_vm0, %v780_v36  ;;  %3646 = vmatpush.xpose.msk.msra.mxu1 %vm73_vm0, %v812_v35  ;;  %v872_v36 = vmul.f32 %v5040_v42, %v5079_v25  ;;  %v871_v35 = vmul.f32 %v5040_v42, %v5091_v11 }
 0x173   :  { %1481 = vmatpush.msrb.mxu2 %v841_v50 }
 0x174   :  { %v5107_v41 = vpop.f32.mrf.mxu1 }
 0x175   :  { %1482 = vmatpush.msrb.mxu2 %v840_v53  ;;  %3615 = vmatpush.xpose.msk.msrb.mxu0 %vm73_vm0, %v779_v6  ;;  %v794_v53 = vmul.f32 %v5158_v0, %v5103_v37 }
 0x176   :  { %3847 = vmatpush.xpose.msk.msra.mxu3 %vm73_vm0, %v779_v6  ;;  %3647 = vmatpush.xpose.msk.msra.mxu1 %vm73_vm0, %v811_v57  ;;  %v826_v6 = vmul.f32 %v5160_v56, %v5103_v37  ;;  %v585_v57 = vpop.f32.mrf.mxu0  ;;  %v825_v37 = vmul.f32 %v5160_v56, %v5118_v54 }
 0x177   :  { %1483 = vmatpush.msrb.mxu2 %v839_v62  ;;  %v793_v62 = vmul.f32 %v5158_v0, %v5118_v54  ;;  %v791_v54 = vmul.f32 %v5158_v0, %v5143_v8 }
 0x179   :  { %3616 = vmatpush.xpose.msk.msrb.mxu0 %vm73_vm0, %v778_v39 }
 0x17a   :  { %3848 = vmatpush.xpose.msk.msra.mxu3 %vm73_vm0, %v778_v39  ;;  %3648 = vmatpush.xpose.msk.msra.mxu1 %vm73_vm0, %v810_v43  ;;  %v792_v43 = vmul.f32 %v5158_v0, %v5129_v44  ;;  %v823_v44 = vmul.f32 %v5160_v56, %v5143_v8 }
 0x17c   :  { %v5133_v60 = vpop.f32.mrf.mxu1 }
 0x17d   :  { %3617 = vmatpush.xpose.msk.msrb.mxu0 %vm73_vm0, %v777_v46 }
 0x17e   :  { %3849 = vmatpush.xpose.msk.msra.mxu3 %vm73_vm0, %v777_v46  ;;  %3649 = vmatpush.xpose.msk.msra.mxu1 %vm73_vm0, %v809_v58  ;;  %v5263_v46 = vadd.f32 %v5155_v38, %v585_v57  ;;  %v588_v58 = vpop.f32.mrf.mxu0 }
 0x17f   :  { %v5291_v2 = vadd.f32 %v5155_v38, %v588_v58 }
 0x181   :  { %3618 = vmatpush.xpose.msk.msrb.mxu0 %vm73_vm0, %v776_v13 }
 0x182   :  { %3850 = vmatpush.xpose.msk.msra.mxu3 %vm73_vm0, %v776_v13  ;;  %3650 = vmatpush.xpose.msk.msra.mxu1 %vm73_vm0, %v808_v47  ;;  %v861_v13 = vmul.f32 %v5158_v0, %v5028_v10 }
 0x184   :  { %v5164_v59 = vpop.f32.mrf.mxu1 }
 0x185   :  { %3619 = vmatpush.xpose.msk.msrb.mxu0 %vm73_vm0, %v775_v1 }
 0x186   :  { %3851 = vmatpush.xpose.msk.msra.mxu3 %vm73_vm0, %v775_v1  ;;  %3651 = vmatpush.xpose.msk.msra.mxu1 %vm73_vm0, %v807_v18  ;;  %v860_v1 = vmul.f32 %v5158_v0, %v5042_v61 }
 0x188   :  { %3620 = vmatmul.msk.f32.vlgmr.msrb.gmra.mxu0 %vm73_vm0, %v5178_v14 }
 0x189   :  { %1606 = vmatpush.msra.mxu0 %v878_v7  ;;  %3622 = vmatmul.msk.f32.vlgmr.msra.gmra.mxu3 %vm73_vm0, %v5181_v9  ;;  %v859_v7 = vmul.f32 %v5158_v0, %v5053_v52 }
 0x18a   :  { %3628 = vmatpush.xpose.msk.msrb.mxu3 %vm73_vm0, %v798_v28  ;;  %3660 = vmatpush.xpose.msk.msrb.mxu1 %vm73_vm0, %v830_v31  ;;  %v892_v28 = vmul.f32 %v5160_v56, %v5042_v61  ;;  %v858_v61 = vmul.f32 %v5158_v0, %v5059_v49 }
 0x18b   :  { %3652 = vmatmul.msk.f32.vlgmr.msra.gmra.mxu1 %vm73_vm0, %v5178_v14  ;;  %1607 = vmatpush.msra.mxu0 %v877_v45  ;;  %v891_v45 = vmul.f32 %v5160_v56, %v5053_v52  ;;  %v591_v52 = vpop.f32.mrf.mxu0 }
 0x18c   :  { %v5204_v30 = vpop.f32.mrf.mxu1 }
 0x18d   :  { %1608 = vmatpush.msra.mxu0 %v876_v19 }
 0x18e   :  { %3629 = vmatpush.xpose.msk.msrb.mxu3 %vm73_vm0, %v797_v12  ;;  %3661 = vmatpush.xpose.msk.msrb.mxu1 %vm73_vm0, %v829_v15  ;;  %v890_v15 = vmul.f32 %v5160_v56, %v5059_v49  ;;  %v856_v49 = vmul.f32 %v5158_v0, %v5079_v25 }
 0x18f   :  { %1609 = vmatpush.msra.mxu0 %v875_v20  ;;  %v857_v20 = vmul.f32 %v5158_v0, %v5069_v55 }
 0x190   :  { %3621 = vmatmul.msk.f32.gmra.mxu0 %vm73_vm0, %v5214_v27 }
 0x191   :  { %1610 = vmatpush.msra.mxu0 %v874_v24  ;;  %3623 = vmatmul.msk.f32.gmra.mxu3 %vm73_vm0, %v5217_v4  ;;  %v5332_v24 = vadd.f32 %v5155_v38, %v591_v52  ;;  %v887_v38 = vmul.f32 %v5160_v56, %v5091_v11 }
 0x192   :  { %3630 = vmatpush.xpose.msk.msrb.mxu3 %vm73_vm0, %v796_v22  ;;  %3662 = vmatpush.xpose.msk.msrb.mxu1 %vm73_vm0, %v828_v32  ;;  %v888_v32 = vmul.f32 %v5160_v56, %v5079_v25 }
 0x193   :  { %3653 = vmatmul.msk.f32.gmra.mxu1 %vm73_vm0, %v5214_v27  ;;  %1611 = vmatpush.msra.mxu0 %v873_v17  ;;  %v5336_v17 = vadd.f32 %v5026_v3, %v5204_v30  ;;  %v5354_v30 = vadd.f32 %v5026_v3, %v5164_v59 }
 0x194   :  { %v681_v50 = vpop.f32.mrf.mxu1 }
 0x195   :  { %1612 = vmatpush.msra.mxu0 %v872_v36  ;;  %v5313_v12 = vadd.f32 %v5026_v3, %v681_v50  ;;  %v819_v36 = vmul.f32 %v5040_v42, %v5336_v17  ;;  %v786_v59 = vmul.f32 %v5033_v21, %v5354_v30  ;;  %v818_v50 = vmul.f32 %v5040_v42, %v5354_v30 }
 0x196   :  { %3631 = vmatpush.xpose.msk.msrb.mxu3 %vm73_vm0, %v795_v23  ;;  %3663 = vmatpush.xpose.msk.msrb.mxu1 %vm73_vm0, %v827_v33  ;;  %v855_v23 = vmul.f32 %v5158_v0, %v5091_v11  ;;  %v787_v33 = vmul.f32 %v5033_v21, %v5336_v17  ;;  %v673_v11 = vadd.f32 %v5026_v3, %v5133_v60 }
 0x197   :  { %1613 = vmatpush.msra.mxu0 %v871_v35  ;;  %v788_v55 = vmul.f32 %v5033_v21, %v5313_v12  ;;  %v820_v25 = vmul.f32 %v5040_v42, %v5313_v12 }
 0x198   :  { %v817_v57 = vmul.f32 %v5040_v42, %v673_v11 }
 0x199   :  { %3624 = vmatmul.msk.f32.gmra.mxu3 %vm73_vm0, %v5244_v5 }
 0x19a   :  { %3632 = vmatpush.xpose.msk.msrb.mxu3 %vm73_vm0, %v794_v53  ;;  %3664 = vmatpush.xpose.msk.msrb.mxu1 %vm73_vm0, %v826_v6  ;;  %v670_v53 = vadd.f32 %v5026_v3, %v5107_v41  ;;  %v785_v6 = vmul.f32 %v5033_v21, %v673_v11 }
 0x19b   :  { %3654 = vmatmul.msk.f32.gmra.mxu1 %vm73_vm0, %v5181_v9 }
 0x19c   :  { %v684_v39 = vpop.f32.mrf.mxu1  ;;  %v816_v41 = vmul.f32 %v5040_v42, %v670_v53 }
 0x19d   :  { %v5294_v18 = vadd.f32 %v5026_v3, %v684_v39  ;;  %v667_v39 = vadd.f32 %v5026_v3, %v5071_v48 }
 0x19e   :  { %3633 = vmatpush.xpose.msk.msrb.mxu3 %vm73_vm0, %v793_v62  ;;  %3665 = vmatpush.xpose.msk.msrb.mxu1 %vm73_vm0, %v825_v37  ;;  %v804_v62 = vmul.f32 %v5158_v0, %v5313_v12  ;;  %v784_v37 = vmul.f32 %v5033_v21, %v670_v53 }
 0x19f   :  { %v789_v19 = vmul.f32 %v5033_v21, %v5294_v18  ;;  %v821_v22 = vmul.f32 %v5040_v42, %v5294_v18  ;;  %v805_v60 = vmul.f32 %v5158_v0, %v5294_v18  ;;  %v815_v48 = vmul.f32 %v5040_v42, %v667_v39 }
 0x1a1   :  { %3625 = vmatmul.msk.f32.gmra.mxu3 %vm73_vm0, %v5263_v46 }
 0x1a2   :  { %3634 = vmatpush.xpose.msk.msrb.mxu3 %vm73_vm0, %v792_v43  ;;  %3666 = vmatpush.xpose.msk.msrb.mxu1 %vm73_vm0, %v824_v29  ;;  %v5398_v43 = vpop.f32.mrf.mxu0  ;;  %v803_v29 = vmul.f32 %v5158_v0, %v5336_v17 }
 0x1a3   :  { %3655 = vmatmul.msk.f32.gmra.mxu1 %vm73_vm0, %v5217_v4 }
 0x1a4   :  { %v687_v47 = vpop.f32.mrf.mxu1 }
 0x1a5   :  { %v5286_v8 = vadd.f32 %v5026_v3, %v687_v47  ;;  %v802_v3 = vmul.f32 %v5158_v0, %v5354_v30  ;;  %v835_v47 = vmul.f32 %v5160_v56, %v5336_v17 }
 0x1a6   :  { %3635 = vmatpush.xpose.msk.msrb.mxu3 %vm73_vm0, %v791_v54  ;;  %3667 = vmatpush.xpose.msk.msrb.mxu1 %vm73_vm0, %v823_v44  ;;  %v783_v54 = vmul.f32 %v5033_v21, %v667_v39  ;;  %v837_v44 = vmul.f32 %v5160_v56, %v5294_v18 }
 0x1a7   :  { %v790_v10 = vmul.f32 %v5033_v21, %v5286_v8  ;;  %v822_v31 = vmul.f32 %v5040_v42, %v5286_v8  ;;  %v806_v35 = vmul.f32 %v5158_v0, %v5286_v8  ;;  %v838_v58 = vmul.f32 %v5160_v56, %v5286_v8 }
 0x1a9   :  { %3626 = vmatmul.msk.f32.gmra.mxu3 %vm73_vm0, %v5291_v2  ;;  %3708 = vmatpush.xpose.msk.msra.mxu2 %vm73_vm0, %v790_v10 }
 0x1aa   :  { %1541 = vmatpush.msra.mxu3 %v862_v63  ;;  %1671 = vmatpush.msra.mxu1 %v894_v26  ;;  %v5422_v63 = vpop.f32.mrf.mxu0  ;;  %v801_v26 = vmul.f32 %v5158_v0, %v673_v11 }
 0x1ab   :  { %3656 = vmatmul.msk.f32.gmra.mxu1 %vm73_vm0, %v5244_v5  ;;  %3740 = vmatpush.xpose.msk.msrb.mxu0 %vm73_vm0, %v822_v31 }
 0x1ac   :  { %1542 = vmatpush.msra.mxu3 %v861_v13  ;;  %1672 = vmatpush.msra.mxu1 %v893_v34  ;;  %v836_v13 = vmul.f32 %v5160_v56, %v5313_v12  ;;  %v799_v34 = vmul.f32 %v5158_v0, %v667_v39 }
 0x1ad   :  { %3709 = vmatpush.xpose.msk.msra.mxu2 %vm73_vm0, %v789_v19 }
 0x1ae   :  { %1543 = vmatpush.msra.mxu3 %v860_v1  ;;  %1673 = vmatpush.msra.mxu1 %v892_v28  ;;  %v833_v1 = vmul.f32 %v5160_v56, %v673_v11  ;;  %v832_v28 = vmul.f32 %v5160_v56, %v670_v53 }
 0x1af   :  { %3741 = vmatpush.xpose.msk.msrb.mxu0 %vm73_vm0, %v821_v22  ;;  %v904_v22 = vld [vmem:[#allocation3 + $0x8] sm:$0xff] }
 0x1b0   :  { %1544 = vmatpush.msra.mxu3 %v859_v7  ;;  %1674 = vmatpush.msra.mxu1 %v891_v45  ;;  %v903_v7 = vld [vmem:[#allocation3] sm:$0xff] }
 0x1b1   :  { %3627 = vmatmul.msk.f32.gmra.mxu3 %vm73_vm0, %v5332_v24  ;;  %3710 = vmatpush.xpose.msk.msra.mxu2 %vm73_vm0, %v788_v55 }
 0x1b2   :  { %1545 = vmatpush.msra.mxu3 %v858_v61  ;;  %1675 = vmatpush.msra.mxu1 %v890_v15  ;;  %v5439_v8 = vpop.f32.mrf.mxu0 }
 0x1b3   :  { %3657 = vmatmul.msk.f32.gmra.mxu1 %vm73_vm0, %v5263_v46  ;;  %3742 = vmatpush.xpose.msk.msrb.mxu0 %vm73_vm0, %v820_v25  ;;  %v906_v25 = vld [vmem:[#allocation3 + $0x18] sm:$0xff] }
 0x1b4   :  { %1546 = vmatpush.msra.mxu3 %v857_v20  ;;  %1676 = vmatpush.msra.mxu1 %v889_v51  ;;  %v905_v20 = vld [vmem:[#allocation3 + $0x10] sm:$0xff] }
 0x1b5   :  { %3711 = vmatpush.xpose.msk.msra.mxu2 %vm73_vm0, %v787_v33 }
 0x1b6   :  { %1547 = vmatpush.msra.mxu3 %v856_v49  ;;  %1677 = vmatpush.msra.mxu1 %v888_v32 }
 0x1b7   :  { %3743 = vmatpush.xpose.msk.msrb.mxu0 %vm73_vm0, %v819_v36 }
 0x1b8   :  { %1548 = vmatpush.msra.mxu3 %v855_v23  ;;  %1678 = vmatpush.msra.mxu1 %v887_v38 }
 0x1b9   :  { %3636 = vmatmul.msk.f32.vlgmr.msrb.gmra.mxu3 %vm73_vm0, %v5178_v14  ;;  %3712 = vmatpush.xpose.msk.msra.mxu2 %vm73_vm0, %v786_v59  ;;  %v921_v59 = vld [vmem:[#allocation3 + $0x90] sm:$0xff] }
 0x1ba   :  { %3724 = vmatpush.xpose.msk.msrb.mxu3 %vm73_vm0, %v806_v35  ;;  %v5452_v18 = vpop.f32.mrf.mxu0 }
 0x1bb   :  { %3658 = vmatmul.msk.f32.gmra.mxu1 %vm73_vm0, %v5291_v2  ;;  %3744 = vmatpush.xpose.msk.msrb.mxu0 %vm73_vm0, %v818_v50 }
 0x1bd   :  { %3713 = vmatpush.xpose.msk.msra.mxu2 %vm73_vm0, %v785_v6 }
 0x1be   :  { %3725 = vmatpush.xpose.msk.msrb.mxu3 %vm73_vm0, %v805_v60 }
 0x1bf   :  { %3745 = vmatpush.xpose.msk.msrb.mxu0 %vm73_vm0, %v817_v57 }
 0x1c1   :  { %3637 = vmatmul.msk.f32.gmra.mxu3 %vm73_vm0, %v5214_v27  ;;  %3714 = vmatpush.xpose.msk.msra.mxu2 %vm73_vm0, %v784_v37 }
 0x1c2   :  { %3726 = vmatpush.xpose.msk.msrb.mxu3 %vm73_vm0, %v804_v62  ;;  %v5466_v10 = vpop.f32.mrf.mxu0 }
 0x1c3   :  { %3659 = vmatmul.msk.f32.gmra.mxu1 %vm73_vm0, %v5332_v24  ;;  %3746 = vmatpush.xpose.msk.msrb.mxu0 %vm73_vm0, %v816_v41 }
 0x1c5   :  { %3715 = vmatpush.xpose.msk.msra.mxu2 %vm73_vm0, %v783_v54 }
 0x1c6   :  { %3727 = vmatpush.xpose.msk.msrb.mxu3 %vm73_vm0, %v803_v29 }
 0x1c7   :  { %3747 = vmatpush.xpose.msk.msrb.mxu0 %vm73_vm0, %v815_v48 }
 0x1c9   :  { %3638 = vmatmul.msk.f32.gmra.mxu3 %vm73_vm0, %v5181_v9 }
 0x1ca   :  { %3728 = vmatpush.xpose.msk.msrb.mxu3 %vm73_vm0, %v802_v3 }
 0x1cb   :  { %3668 = vmatmul.msk.f32.vlgmr.msrb.gmra.mxu1 %vm73_vm0, %v5178_v14  ;;  %v800_v14 = vmul.f32 %v5158_v0, %v670_v53 }
 0x1cc   :  { %3756 = vmatpush.xpose.msk.msrb.mxu1 %vm73_vm0, %v838_v58 }
 0x1ce   :  { %3729 = vmatpush.xpose.msk.msrb.mxu3 %vm73_vm0, %v801_v26 }
 0x1d0   :  { %3757 = vmatpush.xpose.msk.msrb.mxu1 %vm73_vm0, %v837_v44 }
 0x1d1   :  { %3639 = vmatmul.msk.f32.gmra.mxu3 %vm73_vm0, %v5217_v4 }
 0x1d2   :  { %3730 = vmatpush.xpose.msk.msrb.mxu3 %vm73_vm0, %v800_v14 }
 0x1d3   :  { %3669 = vmatmul.msk.f32.gmra.mxu1 %vm73_vm0, %v5214_v27  ;;  %v834_v27 = vmul.f32 %v5160_v56, %v5354_v30  ;;  %v920_v30 = vld [vmem:[#allocation3 + $0x88] sm:$0xff] }
 0x1d4   :  { %3758 = vmatpush.xpose.msk.msrb.mxu1 %vm73_vm0, %v836_v13 }
 0x1d6   :  { %3731 = vmatpush.xpose.msk.msrb.mxu3 %vm73_vm0, %v799_v34 }
 0x1d8   :  { %3759 = vmatpush.xpose.msk.msrb.mxu1 %vm73_vm0, %v835_v47 }
 0x1d9   :  { %3640 = vmatmul.msk.f32.gmra.mxu3 %vm73_vm0, %v5244_v5 }
 0x1db   :  { %3670 = vmatmul.msk.f32.gmra.mxu1 %vm73_vm0, %v5181_v9  ;;  %v831_v9 = vmul.f32 %v5160_v56, %v667_v39 }
 0x1dc   :  { %3760 = vmatpush.xpose.msk.msrb.mxu1 %vm73_vm0, %v834_v27 }
 0x1e0   :  { %3761 = vmatpush.xpose.msk.msrb.mxu1 %vm73_vm0, %v833_v1 }
 0x1e1   :  { %3641 = vmatmul.msk.f32.gmra.mxu3 %vm73_vm0, %v5263_v46 }
 0x1e3   :  { %3671 = vmatmul.msk.f32.gmra.mxu1 %vm73_vm0, %v5217_v4  ;;  %v5472_v4 = vpop.f32.mrf.mxu0 }
 0x1e4   :  { %3762 = vmatpush.xpose.msk.msrb.mxu1 %vm73_vm0, %v832_v28 }
 0x1e8   :  { %3763 = vmatpush.xpose.msk.msrb.mxu1 %vm73_vm0, %v831_v9  ;;  %v911_v9 = vld [vmem:[#allocation3 + $0x40] sm:$0xff] }
 0x1e9   :  { %3642 = vmatmul.msk.f32.gmra.mxu3 %vm73_vm0, %v5291_v2 }
 0x1eb   :  { %3672 = vmatmul.msk.f32.gmra.mxu1 %vm73_vm0, %v5244_v5  ;;  %v5476_v31 = vpop.f32.mrf.mxu0  ;;  %v919_v5 = vld [vmem:[#allocation3 + $0x80] sm:$0xff] }
 0x1f1   :  { %3643 = vmatmul.msk.f32.gmra.mxu3 %vm73_vm0, %v5332_v24 }
 0x1f3   :  { %3673 = vmatmul.msk.f32.gmra.mxu1 %vm73_vm0, %v5263_v46 }
 0x1fb   :  { %3674 = vmatmul.msk.f32.gmra.mxu1 %vm73_vm0, %v5291_v2 }
 0x203   :  { %3675 = vmatmul.msk.f32.gmra.mxu1 %vm73_vm0, %v5332_v24 }
 0x205   :  { %v1000_v45 = vpop.f32.mrf.mxu0 }
 0x206   :  { %v1001_v61 = vadd.f32 %v1000_v45, %v903_v7  ;;  %v907_v7 = vld [vmem:[#allocation3 + $0x20] sm:$0xff] }
 0x208   :  { %v1130_v12 = vpop.f32.mrf.mxu1  ;;  %v1219_v19 = vmul.f32 1.442695, %v1001_v61 }
 0x209   :  { %v1131_v15 = vadd.f32 %v1130_v12, %v919_v5 }
 0x20a   :  { %3901 = vpow2.f32 %v1219_v19  ;;  %v5522_v19 = vpop.f32.mrf.mxu2 }
 0x20b   :  { %v1251_v52 = vmul.f32 1.442695, %v1131_v15 }
 0x20c   :  { %v1006_v46 = vpop.f32.mrf.mxu3 }
 0x20d   :  { %3903 = vpow2.f32 %v1251_v52  ;;  %v1007_v51 = vadd.f32 %v1006_v46, %v905_v20  ;;  %v1003_v2 = vpop.f32.mrf.mxu0  ;;  %v912_v52 = vld [vmem:[#allocation3 + $0x48] sm:$0xff] }
 0x20e   :  { %v1004_v32 = vadd.f32 %v1003_v2, %v904_v22 }
 0x20f   :  { %v1223_v49 = vmul.f32 1.442695, %v1007_v51  ;;  %v927_v51 = vld [vmem:[#allocation3 + $0xc0] sm:$0xff] }
 0x210   :  { %v1133_v17 = vpop.f32.mrf.mxu1  ;;  %v5480_v24 = vpop.eup %3901  ;;  %v1221_v38 = vmul.f32 1.442695, %v1004_v32 }
 0x211   :  { %3905 = vpow2.f32 %v1223_v49  ;;  %v1284_v23 = vsel %vm1283_vm5, %v5480_v24, 0.0  ;;  %v1134_v35 = vadd.f32 %v1133_v17, %v920_v30 }
 0x212   :  { %1285 = vadd.xlane.f32.xlu2 %v1284_v23  ;;  %3907 = vpow2.f32 %v1221_v38  ;;  %v5528_v30 = vpop.f32.mrf.mxu2 }
 0x213   :  { %v5482_v55 = vpop.eup %3903  ;;  %v1253_v62 = vmul.f32 1.442695, %v1134_v35 }
 0x214   :  { %v1332_v33 = vsel %vm1283_vm5, %v5482_v55, 0.0  ;;  %v1009_v36 = vpop.f32.mrf.mxu3 }
 0x215   :  { %1333 = vadd.xlane.f32.xlu0 %v1332_v33  ;;  %v1010_v11 = vadd.f32 %v1009_v36, %v906_v25  ;;  %v913_v25 = vld [vmem:[#allocation3 + $0x50] sm:$0xff] }
 0x217   :  { %v5488_v50 = vpop.eup %3905  ;;  %v1225_v60 = vmul.f32 1.442695, %v1010_v11 }
 0x218   :  { %v1136_v53 = vpop.f32.mrf.mxu1  ;;  %v1290_v57 = vsel %vm1283_vm5, %v5488_v50, 0.0  ;;  %v5492_v39 = vpop.eup %3907 }
 0x219   :  { %v1137_v6 = vadd.f32 %v1136_v53, %v921_v59  ;;  %3909 = vpow2.f32 %v1225_v60  ;;  %1291 = vadd.xlane.f32.xlu1 %v1290_v57  ;;  %v1287_v3 = vsel %vm1283_vm5, %v5492_v39, 0.0  ;;  %v928_v59 = vld [vmem:[#allocation3 + $0xc8] sm:$0xff] }
 0x21a   :  { %3911 = vpow2.f32 %v1253_v62  ;;  %v908_v60 = vld [vmem:[#allocation3 + $0x28] sm:$0xff] }
 0x21b   :  { %v1255_v37 = vmul.f32 1.442695, %v1137_v6 }
 0x21c   :  { %v1012_v41 = vpop.f32.mrf.mxu3 }
 0x21d   :  { %3913 = vpow2.f32 %v1255_v37  ;;  %v1013_v61 = vadd.f32 %v1012_v41, %v907_v7 }
 0x21f   :  { %v5494_v29 = vpop.eup %3909  ;;  %v1227_v20 = vmul.f32 1.442695, %v1013_v61 }
 0x220   :  { %v5496_v54 = vpop.f32.mrf.mxu1  ;;  %v1293_v48 = vsel %vm1283_vm5, %v5494_v29, 0.0  ;;  %v5502_v58 = vpop.eup %3911 }
 0x221   :  { %1288 = vadd.xlane.f32.xlu1 %v1287_v3  ;;  %1294 = vadd.xlane.f32.xlu2 %v1293_v48  ;;  %v1335_v14 = vsel %vm1283_vm5, %v5502_v58, 0.0  ;;  %v914_v48 = vld [vmem:[#allocation3 + $0x58] sm:$0xff] }
 0x223   :  { %v5504_v26 = vpop.eup %3913 }
 0x224   :  { %v1015_v44 = vpop.f32.mrf.mxu3  ;;  %v1338_v47 = vsel %vm1283_vm5, %v5504_v26, 0.0 }
 0x225   :  { %v1016_v41 = vadd.f32 %v1015_v44, %v908_v60  ;;  %v930_v60 = vld [vmem:[#allocation3 + $0xd8] sm:$0xff] }
 0x227   :  { %v1229_v61 = vmul.f32 1.442695, %v1016_v41 }
 0x228   :  { %v5506_v13 = vpop.f32.mrf.mxu1 }
 0x229   :  { %1336 = vadd.xlane.f32.xlu1 %v1335_v14  ;;  %1339 = vadd.xlane.f32.xlu2 %v1338_v47  ;;  %v922_v14 = vld [vmem:[#allocation3 + $0x98] sm:$0xff] }
 0x22c   :  { %v5512_v34 = vpop.f32.mrf.mxu3 }
 0x230   :  { %v5514_v27 = vpop.f32.mrf.mxu1 }
 0x234   :  { %v5516_v1 = vpop.f32.mrf.mxu3 }
 0x238   :  { %v5518_v28 = vpop.f32.mrf.mxu1 }
 0x23c   :  { %v1065_v5 = vpop.f32.mrf.mxu3 }
 0x23d   :  { %v1066_v45 = vadd.f32 %v1065_v5, %v911_v9  ;;  %v929_v5 = vld [vmem:[#allocation3 + $0xd0] sm:$0xff] }
 0x23f   :  { %v1235_v12 = vmul.f32 1.442695, %v1066_v45  ;;  %v5540_v45 = vpop.f32.mrf.mxu2 }
 0x240   :  { %v5520_v15 = vpop.f32.mrf.mxu1 }
 0x241   :  { %3915 = vpow2.f32 %v1235_v12  ;;  %v909_v12 = vld [vmem:[#allocation3 + $0x30] sm:$0xff] }
 0x242   :  { %3917 = vpow2.f32 %v1227_v20  ;;  %v1140_v20 = vadd.f32 %v5496_v54, %v922_v14 }
 0x244   :  { %v1068_v46 = vpop.f32.mrf.mxu3  ;;  %v1257_v54 = vmul.f32 1.442695, %v1140_v20 }
 0x245   :  { %v1069_v22 = vadd.f32 %v1068_v46, %v912_v52 }
 0x247   :  { %v5524_v2 = vpop.eup %3915  ;;  %v1237_v49 = vmul.f32 1.442695, %v1069_v22 }
 0x248   :  { %v1195_v32 = vpop.f32.mrf.mxu1  ;;  %v1308_v23 = vsel %vm1283_vm5, %v5524_v2, 0.0  ;;  %v5530_v36 = vpop.eup %3917 }
 0x249   :  { %v1196_v17 = vadd.f32 %v1195_v32, %v927_v51  ;;  %3919 = vpow2.f32 %v1237_v49  ;;  %1309 = vadd.xlane.f32.xlu0 %v1308_v23  ;;  %v1296_v62 = vsel %vm1283_vm5, %v5530_v36, 0.0  ;;  %v1019_v32 = vadd.f32 %v5512_v34, %v909_v12 }
 0x24b   :  { %v1267_v38 = vmul.f32 1.442695, %v1196_v17 }
 0x24c   :  { %v1071_v33 = vpop.f32.mrf.mxu3 }
 0x24d   :  { %v1072_v11 = vadd.f32 %v1071_v33, %v913_v25  ;;  %3921 = vpow2.f32 %v1267_v38  ;;  %v915_v25 = vld [vmem:[#allocation3 + $0x60] sm:$0xff] }
 0x24f   :  { %v5532_v35 = vpop.eup %3919  ;;  %v1239_v53 = vmul.f32 1.442695, %v1072_v11  ;;  %v1231_v11 = vmul.f32 1.442695, %v1019_v32 }
 0x250   :  { %v1198_v6 = vpop.f32.mrf.mxu1  ;;  %v1311_v37 = vsel %vm1283_vm5, %v5532_v35, 0.0 }
 0x251   :  { %v1199_v57 = vadd.f32 %v1198_v6, %v928_v59  ;;  %3923 = vpow2.f32 %v1239_v53  ;;  %1297 = vadd.xlane.f32.xlu0 %v1296_v62  ;;  %1312 = vadd.xlane.f32.xlu2 %v1311_v37  ;;  %v923_v53 = vld [vmem:[#allocation3 + $0xa0] sm:$0xff]  ;;  %v5558_v37 = vpop.f32.mrf.mxu2 }
 0x253   :  { %v1269_v3 = vmul.f32 1.442695, %v1199_v57  ;;  %v5538_v9 = vpop.eup %3921 }
 0x254   :  { %v1074_v47 = vpop.f32.mrf.mxu3  ;;  %v1356_v51 = vsel %vm1283_vm5, %v5538_v9, 0.0 }
 0x255   :  { %3925 = vpow2.f32 %v1269_v3  ;;  %v1075_v7 = vadd.f32 %v1074_v47, %v914_v48  ;;  %v1143_v48 = vadd.f32 %v5506_v13, %v923_v53  ;;  %v916_v47 = vld [vmem:[#allocation3 + $0x68] sm:$0xff] }
 0x256   :  { %v924_v13 = vld [vmem:[#allocation3 + $0xa8] sm:$0xff] }
 0x257   :  { %v5542_v52 = vpop.eup %3923  ;;  %v1241_v46 = vmul.f32 1.442695, %v1075_v7 }
 0x258   :  { %v1201_v22 = vpop.f32.mrf.mxu1  ;;  %v1314_v49 = vsel %vm1283_vm5, %v5542_v52, 0.0 }
 0x259   :  { %v1202_v44 = vadd.f32 %v1201_v22, %v929_v5  ;;  %3927 = vpow2.f32 %v1241_v46  ;;  %1357 = vadd.xlane.f32.xlu0 %v1356_v51  ;;  %1315 = vadd.xlane.f32.xlu2 %v1314_v49  ;;  %v1259_v46 = vmul.f32 1.442695, %v1143_v48  ;;  %v931_v49 = vld [vmem:[#allocation3 + $0xe0] sm:$0xff]  ;;  %v932_v48 = vld [vmem:[#allocation3 + $0xe8] sm:$0xff] }
 0x25a   :  { %3929 = vpow2.f32 %v1229_v61 }
 0x25b   :  { %v5550_v17 = vpop.eup %3925  ;;  %v1271_v23 = vmul.f32 1.442695, %v1202_v44 }
 0x25c   :  { %v1359_v38 = vsel %vm1283_vm5, %v5550_v17, 0.0  ;;  %v1077_v33 = vpop.f32.mrf.mxu3 }
 0x25d   :  { %3931 = vpow2.f32 %v1271_v23  ;;  %1360 = vadd.xlane.f32.xlu1 %v1359_v38  ;;  %v1078_v59 = vadd.f32 %v1077_v33, %v915_v25  ;;  %v1146_v25 = vadd.f32 %v5514_v27, %v924_v13  ;;  %v5578_v38 = vpop.f32.mrf.mxu2 }
 0x25e   :  { %3933 = vpow2.f32 %v1257_v54 }
 0x25f   :  { %v5554_v34 = vpop.eup %3927  ;;  %v1243_v6 = vmul.f32 1.442695, %v1078_v59  ;;  %3935 = vpow2.f32 %v1231_v11  ;;  %v917_v11 = vld [vmem:[#allocation3 + $0x70] sm:$0xff]  ;;  %v1261_v53 = vmul.f32 1.442695, %v1146_v25 }
 0x260   :  { %v1204_v57 = vpop.f32.mrf.mxu1  ;;  %v5556_v62 = vpop.eup %3929  ;;  %v1317_v3 = vsel %vm1283_vm5, %v5554_v34, 0.0  ;;  %v925_v25 = vld [vmem:[#allocation3 + $0xb0] sm:$0xff] }
 0x261   :  { %v1205_v41 = vadd.f32 %v1204_v57, %v930_v60  ;;  %1318 = vadd.xlane.f32.xlu0 %v1317_v3  ;;  %3937 = vpow2.f32 %v1243_v6  ;;  %v1299_v5 = vsel %vm1283_vm5, %v5556_v62, 0.0  ;;  %v910_v6 = vld [vmem:[#allocation3 + $0x38] sm:$0xff] }
 0x263   :  { %v5563_v14 = vpop.eup %3931  ;;  %v1273_v7 = vmul.f32 1.442695, %v1205_v41 }
 0x264   :  { %v1362_v61 = vsel %vm1283_vm5, %v5563_v14, 0.0  ;;  %v1080_v12 = vpop.f32.mrf.mxu3  ;;  %v5569_v20 = vpop.eup %3933 }
 0x265   :  { %1300 = vadd.xlane.f32.xlu1 %v1299_v5  ;;  %1363 = vadd.xlane.f32.xlu2 %v1362_v61  ;;  %v1081_v22 = vadd.f32 %v1080_v12, %v916_v47  ;;  %v5571_v44 = vpop.eup %3935  ;;  %3939 = vpow2.f32 %v1273_v7  ;;  %v1341_v54 = vsel %vm1283_vm5, %v5569_v20, 0.0  ;;  %v1022_v7 = vadd.f32 %v5516_v1, %v910_v6 }
 0x266   :  { %3941 = vpow2.f32 %v1259_v46  ;;  %v1302_v60 = vsel %vm1283_vm5, %v5571_v44, 0.0  ;;  %v1149_v6 = vadd.f32 %v5518_v28, %v925_v25 }
 0x267   :  { %v1245_v51 = vmul.f32 1.442695, %v1081_v22  ;;  %v5573_v23 = vpop.eup %3937  ;;  %v918_v22 = vld [vmem:[#allocation3 + $0x78] sm:$0xff] }
 0x268   :  { %v1207_v32 = vpop.f32.mrf.mxu1  ;;  %v1320_v59 = vsel %vm1283_vm5, %v5573_v23, 0.0 }
 0x269   :  { %1342 = vadd.xlane.f32.xlu0 %v1341_v54  ;;  %3943 = vpow2.f32 %v1245_v51  ;;  %v1208_v33 = vadd.f32 %v1207_v32, %v931_v49  ;;  %v1233_v51 = vmul.f32 1.442695, %v1022_v7  ;;  %v5597_v32 = vpop.f32.mrf.mxu2 }
 0x26a   :  { %3945 = vpow2.f32 %v1261_v53 }
 0x26b   :  { %v5584_v57 = vpop.eup %3939  ;;  %v1275_v3 = vmul.f32 1.442695, %v1208_v33 }
 0x26c   :  { %v1083_v27 = vpop.f32.mrf.mxu3  ;;  %v5586_v47 = vpop.eup %3941  ;;  %v1365_v46 = vsel %vm1283_vm5, %v5584_v57, 0.0 }
 0x26d   :  { %1321 = vadd.xlane.f32.xlu1 %v1320_v59  ;;  %1303 = vadd.xlane.f32.xlu2 %v1302_v60  ;;  %v1084_v41 = vadd.f32 %v1083_v27, %v917_v11  ;;  %v1344_v49 = vsel %vm1283_vm5, %v5586_v47, 0.0  ;;  %v926_v60 = vld [vmem:[#allocation3 + $0xb8] sm:$0xff] }
 0x26f   :  { %v1247_v5 = vmul.f32 1.442695, %v1084_v41  ;;  %v5589_v12 = vpop.eup %3943  ;;  %v933_v41 = vld [vmem:[#allocation3 + $0xf0] sm:$0xff] }
 0x270   :  { %v1210_v61 = vpop.f32.mrf.mxu1  ;;  %v1323_v1 = vsel %vm1283_vm5, %v5589_v12, 0.0  ;;  %v5599_v59 = vpop.eup %3945 }
 0x271   :  { %3947 = vpow2.f32 %v1247_v5  ;;  %v1211_v13 = vadd.f32 %v1210_v61, %v932_v48  ;;  %1366 = vadd.xlane.f32.xlu0 %v1365_v46  ;;  %v1152_v5 = vadd.f32 %v5520_v15, %v926_v60  ;;  %v1263_v46 = vmul.f32 1.442695, %v1149_v6 }
 0x272   :  { %3949 = vpow2.f32 %v1275_v3  ;;  %v1347_v28 = vsel %vm1283_vm5, %v5599_v59, 0.0 }
 0x273   :  { %v1277_v33 = vmul.f32 1.442695, %v1211_v13  ;;  %3951 = vpow2.f32 %v1233_v51  ;;  %v1265_v51 = vmul.f32 1.442695, %v1152_v5 }
 0x274   :  { %v1086_v54 = vpop.f32.mrf.mxu3 }
 0x275   :  { %1345 = vadd.xlane.f32.xlu1 %v1344_v49  ;;  %1324 = vadd.xlane.f32.xlu2 %v1323_v1  ;;  %v1087_v11 = vadd.f32 %v1086_v54, %v918_v22  ;;  %3953 = vpow2.f32 %v1277_v33  ;;  %v934_v49 = vld [vmem:[#allocation3 + $0xf8] sm:$0xff]  ;;  %v756_v1 = vpop.f32.mrf.mxu2 }
 0x277   :  { %v5601_v53 = vpop.eup %3947  ;;  %v1249_v27 = vmul.f32 1.442695, %v1087_v11 }
 0x278   :  { %v1213_v3 = vpop.f32.mrf.mxu1  ;;  %v5604_v48 = vpop.eup %3949  ;;  %v1326_v7 = vsel %vm1283_vm5, %v5601_v53, 0.0 }
 0x279   :  { %1327 = vadd.xlane.f32.xlu0 %v1326_v7  ;;  %3955 = vpow2.f32 %v1249_v27  ;;  %v1214_v61 = vadd.f32 %v1213_v3, %v933_v41  ;;  %v1368_v13 = vsel %vm1283_vm5, %v5604_v48, 0.0  ;;  %v5613_v22 = vpop.eup %3951 }
 0x27a   :  { %3957 = vpow2.f32 %v1263_v46  ;;  %v1305_v60 = vsel %vm1283_vm5, %v5613_v22, 0.0 }
 0x27b   :  { %v1279_v25 = vmul.f32 1.442695, %v1214_v61  ;;  %v5615_v15 = vpop.eup %3953  ;;  %3959 = vpow2.f32 %v1265_v51  ;;  %v4221_v51 = vld [vmem:[%s6651_s2 + $0x6] ss:$0 sm:$0xff] }
 0x27c   :  { %v1371_v41 = vsel %vm1283_vm5, %v5615_v15, 0.0 }
 0x27d   :  { %1369 = vadd.xlane.f32.xlu1 %v1368_v13  ;;  %1348 = vadd.xlane.f32.xlu2 %v1347_v28  ;;  %3961 = vpow2.f32 %v1279_v25  ;;  %v759_v13 = vpop.f32.mrf.mxu2 }
 0x27f   :  { %v5617_v33 = vpop.eup %3955 }
 0x280   :  { %v1216_v54 = vpop.f32.mrf.mxu1  ;;  %v1329_v27 = vsel %vm1283_vm5, %v5617_v33, 0.0  ;;  %v5625_v3 = vpop.eup %3957 }
 0x281   :  { %v1217_v11 = vadd.f32 %v1216_v54, %v934_v49  ;;  %1306 = vadd.xlane.f32.xlu0 %v1305_v60  ;;  %v5627_v5 = vpop.eup %3959  ;;  %v1350_v28 = vsel %vm1283_vm5, %v5625_v3, 0.0  ;;  %v5636_v49 = vadd.f32 %v4221_v51, %v759_v13 }
 0x282   :  { %v1353_v54 = vsel %vm1283_vm5, %v5627_v5, 0.0 }
 0x283   :  { %v1281_v6 = vmul.f32 1.442695, %v1217_v11  ;;  %v5629_v46 = vpop.eup %3961 }
 0x284   :  { %v1374_v25 = vsel %vm1283_vm5, %v5629_v46, 0.0 }
 0x285   :  { %1330 = vadd.xlane.f32.xlu1 %v1329_v27  ;;  %1372 = vadd.xlane.f32.xlu2 %v1371_v41  ;;  %3963 = vpow2.f32 %v1281_v6  ;;  %v1286_v7 = vpop.xlane.xlu2 %1285  ;;  %v5644_v27 = vadd.f32 %v4221_v51, %v756_v1  ;;  %v5667_v1 = vadd.f32 %v4221_v51, %v5558_v37 }
 0x286   :  { %3965 = vrcp.f32 %v1286_v7 }
 0x288   :  { %v1334_v61 = vpop.xlane.xlu0 %1333 }
 0x289   :  { %3967 = vrcp.f32 %v1334_v61  ;;  %1351 = vadd.xlane.f32.xlu0 %v1350_v28  ;;  %v5648_v61 = vadd.f32 %v4221_v51, %v5597_v32  ;;  %v854_v28 = vmul.f32 %v5033_v21, %v5636_v49  ;;  %v885_v32 = vmul.f32 %v5040_v42, %v5644_v27 }
 0x28b   :  { %v5642_v11 = vpop.eup %3963 }
 0x28c   :  { %v1292_v60 = vpop.xlane.xlu1 %1291  ;;  %v3966_v6 = vpop.eup %3965 }
 0x28d   :  { %1375 = vadd.xlane.f32.xlu1 %v1374_v25  ;;  %1354 = vadd.xlane.f32.xlu2 %v1353_v54  ;;  %v1412_v7 = vmul.f32 %v3966_v6, %v5480_v24  ;;  %v886_v25 = vmul.f32 %v5040_v42, %v5636_v49  ;;  %v5657_v54 = vadd.f32 %v4221_v51, %v5578_v38  ;;  %v1377_v24 = vsel %vm1283_vm5, %v5642_v11, 0.0 }
 0x28e   :  { %v852_v38 = vmul.f32 %v5033_v21, %v5648_v61  ;;  %v884_v6 = vmul.f32 %v5040_v42, %v5648_v61 }
 0x28f   :  { %v3968_v41 = vpop.eup %3967  ;;  %3676 = vmatmul.msk.f32.vlgmr.msrb.gmra.mxu2 %vm1283_vm5, %v1412_v7  ;;  %v5674_v7 = vadd.f32 %v4221_v51, %v5540_v45  ;;  %v883_v37 = vmul.f32 %v5040_v42, %v5657_v54  ;;  %v882_v45 = vmul.f32 %v5040_v42, %v5667_v1 }
 0x290   :  { %v1428_v13 = vmul.f32 %v3968_v41, %v5482_v55  ;;  %2308 = vmatpush.msrb.mxu2 %v854_v28  ;;  %v853_v55 = vmul.f32 %v5033_v21, %v5644_v27  ;;  %v5681_v28 = vadd.f32 %v4221_v51, %v5528_v30 }
 0x291   :  { %1378 = vadd.xlane.f32.xlu0 %v1377_v24  ;;  %v850_v24 = vmul.f32 %v5033_v21, %v5667_v1  ;;  %v881_v30 = vmul.f32 %v5040_v42, %v5674_v7 }
 0x292   :  { %3692 = vmatmul.msk.f32.vlgmr.msra.gmra.mxu0 %vm1283_vm5, %v1428_v13  ;;  %2309 = vmatpush.msrb.mxu2 %v853_v55  ;;  %v851_v13 = vmul.f32 %v5033_v21, %v5657_v54  ;;  %v849_v55 = vmul.f32 %v5033_v21, %v5674_v7 }
 0x293   :  { %2438 = vmatpush.msra.mxu0 %v886_v25 }
 0x294   :  { %v1289_v41 = vpop.xlane.xlu1 %1288  ;;  %2310 = vmatpush.msrb.mxu2 %v852_v38  ;;  %v1295_v25 = vpop.xlane.xlu2 %1294  ;;  %v848_v38 = vmul.f32 %v5033_v21, %v5681_v28 }
 0x295   :  { %2439 = vmatpush.msra.mxu0 %v885_v32  ;;  %3969 = vrcp.f32 %v1289_v41  ;;  %v5690_v32 = vadd.f32 %v4221_v51, %v5522_v19  ;;  %v880_v41 = vmul.f32 %v5040_v42, %v5681_v28 }
 0x296   :  { %2311 = vmatpush.msrb.mxu2 %v851_v13  ;;  %3971 = vrcp.f32 %v1292_v60 }
 0x297   :  { %2440 = vmatpush.msra.mxu0 %v884_v6  ;;  %v847_v19 = vmul.f32 %v5033_v21, %v5690_v32  ;;  %v879_v51 = vmul.f32 %v5040_v42, %v5690_v32 }
 0x298   :  { %2312 = vmatpush.msrb.mxu2 %v850_v24 }
 0x299   :  { %2441 = vmatpush.msra.mxu0 %v883_v37 }
 0x29a   :  { %2313 = vmatpush.msrb.mxu2 %v849_v55 }
 0x29b   :  { %2442 = vmatpush.msra.mxu0 %v882_v45  ;;  %v3970_v6 = vpop.eup %3969 }
 0x29c   :  { %v1337_v13 = vpop.xlane.xlu1 %1336  ;;  %2314 = vmatpush.msrb.mxu2 %v848_v38  ;;  %v1413_v37 = vmul.f32 %v3970_v6, %v5492_v39  ;;  %v1340_v60 = vpop.xlane.xlu2 %1339 }
 0x29d   :  { %2443 = vmatpush.msra.mxu0 %v881_v30  ;;  %3973 = vrcp.f32 %v1337_v13  ;;  %v3972_v24 = vpop.eup %3971  ;;  %v870_v13 = vmul.f32 %v5158_v0, %v5636_v49 }
 0x29e   :  { %3677 = vmatmul.msk.f32.gmra.mxu2 %vm1283_vm5, %v1413_v37  ;;  %3975 = vrcp.f32 %v1295_v25  ;;  %v1414_v55 = vmul.f32 %v3972_v24, %v5488_v50 }
 0x29f   :  { %2444 = vmatpush.msra.mxu0 %v880_v41  ;;  %2315 = vmatpush.msrb.mxu2 %v847_v19  ;;  %3977 = vrcp.f32 %v1340_v60 }
 0x2a1   :  { %2445 = vmatpush.msra.mxu0 %v879_v51 }
 0x2a3   :  { %v3974_v45 = vpop.eup %3973 }
 0x2a4   :  { %v1429_v39 = vmul.f32 %v3974_v45, %v5502_v58  ;;  %v3976_v21 = vpop.eup %3975 }
 0x2a5   :  { %v3978_v30 = vpop.eup %3977  ;;  %v1415_v42 = vmul.f32 %v3976_v21, %v5494_v29  ;;  %v869_v29 = vmul.f32 %v5158_v0, %v5644_v27  ;;  %v865_v21 = vmul.f32 %v5158_v0, %v5674_v7 }
 0x2a6   :  { %3678 = vmatmul.msk.f32.gmra.mxu2 %vm1283_vm5, %v1414_v55  ;;  %3693 = vmatmul.msk.f32.gmra.mxu0 %vm1283_vm5, %v1429_v39  ;;  %v1430_v38 = vmul.f32 %v3978_v30, %v5504_v26  ;;  %v868_v26 = vmul.f32 %v5158_v0, %v5648_v61  ;;  %v866_v55 = vmul.f32 %v5158_v0, %v5667_v1 }
 0x2ae   :  { %3679 = vmatmul.msk.f32.gmra.mxu2 %vm1283_vm5, %v1415_v42  ;;  %3694 = vmatmul.msk.f32.gmra.mxu0 %vm1283_vm5, %v1430_v38 }
 0x2bc   :  { %v1310_v25 = vpop.xlane.xlu0 %1309 }
 0x2bd   :  { %3979 = vrcp.f32 %v1310_v25  ;;  %v863_v25 = vmul.f32 %v5158_v0, %v5690_v32 }
 0x2c3   :  { %v3980_v6 = vpop.eup %3979 }
 0x2c4   :  { %v1420_v50 = vmul.f32 %v3980_v6, %v5524_v2  ;;  %v1298_v58 = vpop.xlane.xlu0 %1297  ;;  %v1313_v41 = vpop.xlane.xlu2 %1312  ;;  %v867_v2 = vmul.f32 %v5158_v0, %v5657_v54 }
 0x2c5   :  { %3981 = vrcp.f32 %v1298_v58 }
 0x2c6   :  { %3983 = vrcp.f32 %v1313_v41  ;;  %3684 = vmatmul.msk.f32.vlgmr.msra.gmra.mxu3 %vm1283_vm5, %v1420_v50  ;;  %v902_v50 = vmul.f32 %v5160_v56, %v5636_v49  ;;  %v899_v49 = vmul.f32 %v5160_v56, %v5657_v54  ;;  %v897_v54 = vmul.f32 %v5160_v56, %v5674_v7 }
 0x2c7   :  { %2373 = vmatpush.msra.mxu3 %v870_v13 }
 0x2c9   :  { %2374 = vmatpush.msra.mxu3 %v869_v29 }
 0x2cb   :  { %v3982_v37 = vpop.eup %3981  ;;  %2375 = vmatpush.msra.mxu3 %v868_v26 }
 0x2cc   :  { %v3984_v19 = vpop.eup %3983  ;;  %v1358_v51 = vpop.xlane.xlu0 %1357  ;;  %v1416_v24 = vmul.f32 %v3982_v37, %v5530_v36  ;;  %v864_v36 = vmul.f32 %v5158_v0, %v5681_v28  ;;  %v900_v0 = vmul.f32 %v5160_v56, %v5648_v61 }
 0x2cd   :  { %v1316_v60 = vpop.xlane.xlu2 %1315  ;;  %3985 = vrcp.f32 %v1358_v51  ;;  %2376 = vmatpush.msra.mxu3 %v867_v2  ;;  %v1421_v45 = vmul.f32 %v3984_v19, %v5532_v35 }
 0x2ce   :  { %3987 = vrcp.f32 %v1316_v60  ;;  %3680 = vmatmul.msk.f32.gmra.mxu2 %vm1283_vm5, %v1416_v24  ;;  %v895_v60 = vmul.f32 %v5160_v56, %v5690_v32 }
 0x2cf   :  { %3685 = vmatmul.msk.f32.gmra.mxu3 %vm1283_vm5, %v1421_v45 }
 0x2d0   :  { %v1361_v39 = vpop.xlane.xlu1 %1360  ;;  %2377 = vmatpush.msra.mxu3 %v866_v55 }
 0x2d1   :  { %3989 = vrcp.f32 %v1361_v39 }
 0x2d2   :  { %2378 = vmatpush.msra.mxu3 %v865_v21 }
 0x2d3   :  { %v3986_v30 = vpop.eup %3985 }
 0x2d4   :  { %v3988_v35 = vpop.eup %3987  ;;  %v1436_v42 = vmul.f32 %v3986_v30, %v5538_v9  ;;  %2379 = vmatpush.msra.mxu3 %v864_v36  ;;  %v1319_v38 = vpop.xlane.xlu0 %1318  ;;  %v901_v9 = vmul.f32 %v5160_v56, %v5644_v27  ;;  %v898_v27 = vmul.f32 %v5160_v56, %v5667_v1  ;;  %v896_v1 = vmul.f32 %v5160_v56, %v5681_v28 }
 0x2d5   :  { %3991 = vrcp.f32 %v1319_v38  ;;  %v1422_v6 = vmul.f32 %v3988_v35, %v5542_v52 }
 0x2d6   :  { %2380 = vmatpush.msra.mxu3 %v863_v25  ;;  %3700 = vmatmul.msk.f32.vlgmr.msra.gmra.mxu1 %vm1283_vm5, %v1436_v42 }
 0x2d7   :  { %3686 = vmatmul.msk.f32.gmra.mxu3 %vm1283_vm5, %v1422_v6  ;;  %2503 = vmatpush.msra.mxu1 %v902_v50  ;;  %v3990_v13 = vpop.eup %3989 }
 0x2d8   :  { %v1364_v58 = vpop.xlane.xlu2 %1363  ;;  %v1301_v41 = vpop.xlane.xlu1 %1300  ;;  %v1437_v37 = vmul.f32 %v3990_v13, %v5550_v17 }
 0x2d9   :  { %3993 = vrcp.f32 %v1301_v41  ;;  %2504 = vmatpush.msra.mxu1 %v901_v9 }
 0x2da   :  { %3995 = vrcp.f32 %v1364_v58 }
 0x2db   :  { %v3992_v52 = vpop.eup %3991  ;;  %2505 = vmatpush.msra.mxu1 %v900_v0 }
 0x2dc   :  { %v1343_v29 = vpop.xlane.xlu0 %1342  ;;  %v1423_v26 = vmul.f32 %v3992_v52, %v5554_v34 }
 0x2dd   :  { %3997 = vrcp.f32 %v1343_v29  ;;  %2506 = vmatpush.msra.mxu1 %v899_v49 }
 0x2de   :  { %3701 = vmatmul.msk.f32.gmra.mxu1 %vm1283_vm5, %v1437_v37 }
 0x2df   :  { %v3994_v2 = vpop.eup %3993  ;;  %3687 = vmatmul.msk.f32.gmra.mxu3 %vm1283_vm5, %v1423_v26  ;;  %2507 = vmatpush.msra.mxu1 %v898_v27 }
 0x2e0   :  { %v1304_v61 = vpop.xlane.xlu2 %1303  ;;  %v1322_v19 = vpop.xlane.xlu1 %1321  ;;  %v1417_v34 = vmul.f32 %v3994_v2, %v5556_v62 }
 0x2e1   :  { %3999 = vrcp.f32 %v1304_v61  ;;  %v3996_v17 = vpop.eup %3995  ;;  %2508 = vmatpush.msra.mxu1 %v897_v54 }
 0x2e2   :  { %4001 = vrcp.f32 %v1322_v19  ;;  %3681 = vmatmul.msk.f32.gmra.mxu2 %vm1283_vm5, %v1417_v34  ;;  %v1438_v7 = vmul.f32 %v3996_v17, %v5563_v14 }
 0x2e3   :  { %v3998_v51 = vpop.eup %3997  ;;  %2509 = vmatpush.msra.mxu1 %v896_v1 }
 0x2e4   :  { %v1367_v24 = vpop.xlane.xlu0 %1366  ;;  %v1431_v45 = vmul.f32 %v3998_v51, %v5569_v20 }
 0x2e5   :  { %4003 = vrcp.f32 %v1367_v24  ;;  %2510 = vmatpush.msra.mxu1 %v895_v60 }
 0x2e6   :  { %3695 = vmatmul.msk.f32.gmra.mxu0 %vm1283_vm5, %v1431_v45  ;;  %3702 = vmatmul.msk.f32.gmra.mxu1 %vm1283_vm5, %v1438_v7 }
 0x2e7   :  { %v4000_v62 = vpop.eup %3999 }
 0x2e8   :  { %v4002_v28 = vpop.eup %4001  ;;  %v1325_v55 = vpop.xlane.xlu2 %1324  ;;  %v1418_v21 = vmul.f32 %v4000_v62, %v5571_v44 }
 0x2e9   :  { %v1346_v39 = vpop.xlane.xlu1 %1345  ;;  %4005 = vrcp.f32 %v1325_v55  ;;  %v1424_v56 = vmul.f32 %v4002_v28, %v5573_v23 }
 0x2ea   :  { %4007 = vrcp.f32 %v1346_v39  ;;  %3682 = vmatmul.msk.f32.gmra.mxu2 %vm1283_vm5, %v1418_v21 }
 0x2eb   :  { %3688 = vmatmul.msk.f32.gmra.mxu3 %vm1283_vm5, %v1424_v56  ;;  %v4004_v14 = vpop.eup %4003 }
 0x2ec   :  { %v1328_v20 = vpop.xlane.xlu0 %1327  ;;  %v1439_v32 = vmul.f32 %v4004_v14, %v5584_v57 }
 0x2ed   :  { %4009 = vrcp.f32 %v1328_v20 }
 0x2ee   :  { %3703 = vmatmul.msk.f32.gmra.mxu1 %vm1283_vm5, %v1439_v32 }
 0x2ef   :  { %v4006_v36 = vpop.eup %4005 }
 0x2f0   :  { %v4008_v30 = vpop.eup %4007  ;;  %v1349_v35 = vpop.xlane.xlu2 %1348  ;;  %v1425_v44 = vmul.f32 %v4006_v36, %v5589_v12 }
 0x2f1   :  { %v1370_v42 = vpop.xlane.xlu1 %1369  ;;  %4011 = vrcp.f32 %v1349_v35  ;;  %v1432_v23 = vmul.f32 %v4008_v30, %v5586_v47 }
 0x2f2   :  { %4013 = vrcp.f32 %v1370_v42 }
 0x2f3   :  { %3689 = vmatmul.msk.f32.gmra.mxu3 %vm1283_vm5, %v1425_v44  ;;  %3696 = vmatmul.msk.f32.gmra.mxu0 %vm1283_vm5, %v1432_v23  ;;  %v4010_v25 = vpop.eup %4009 }
 0x2f4   :  { %v1307_v38 = vpop.xlane.xlu0 %1306  ;;  %v1426_v12 = vmul.f32 %v4010_v25, %v5601_v53 }
 0x2f5   :  { %4015 = vrcp.f32 %v1307_v38 }
 0x2f7   :  { %v4012_v57 = vpop.eup %4011 }
 0x2f8   :  { %v4014_v6 = vpop.eup %4013  ;;  %v1373_v50 = vpop.xlane.xlu2 %1372  ;;  %v1433_v41 = vmul.f32 %v4012_v57, %v5599_v59 }
 0x2f9   :  { %v1331_v58 = vpop.xlane.xlu1 %1330  ;;  %4017 = vrcp.f32 %v1373_v50  ;;  %v1440_v9 = vmul.f32 %v4014_v6, %v5604_v48 }
 0x2fa   :  { %4019 = vrcp.f32 %v1331_v58 }
 0x2fb   :  { %3690 = vmatmul.msk.f32.gmra.mxu3 %vm1283_vm5, %v1426_v12  ;;  %3697 = vmatmul.msk.f32.gmra.mxu0 %vm1283_vm5, %v1433_v41  ;;  %v4016_v47 = vpop.eup %4015 }
 0x2fc   :  { %3704 = vmatmul.msk.f32.gmra.mxu1 %vm1283_vm5, %v1440_v9  ;;  %v1352_v13 = vpop.xlane.xlu0 %1351  ;;  %v1419_v0 = vmul.f32 %v4016_v47, %v5613_v22  ;;  %v4222_v22 = vld [vmem:[%s6651_s2 + $0x4] ss:$0 sm:$0xff] }
 0x2fd   :  { %4021 = vrcp.f32 %v1352_v13  ;;  %v595_v37 = vadd.f32 %v4222_v22, %v5398_v43  ;;  %v598_v19 = vadd.f32 %v4222_v22, %v5422_v63  ;;  %v604_v63 = vadd.f32 %v4222_v22, %v5452_v18 }
 0x2fe   :  { %3683 = vmatmul.msk.f32.gmra.mxu2 %vm1283_vm5, %v1419_v0  ;;  %v610_v18 = vadd.f32 %v4222_v22, %v5472_v4  ;;  %v616_v4 = vadd.f32 %v4222_v22, %v5004_v40 }
 0x2ff   :  { %v4018_v52 = vpop.eup %4017 }
 0x300   :  { %v4020_v59 = vpop.eup %4019  ;;  %v1441_v53 = vmul.f32 %v4018_v52, %v5615_v15  ;;  %v1355_v48 = vpop.xlane.xlu2 %1354 }
 0x301   :  { %v1376_v49 = vpop.xlane.xlu1 %1375  ;;  %v1427_v29 = vmul.f32 %v4020_v59, %v5617_v33 }
 0x302   :  { %4023 = vrcp.f32 %v1376_v49 }
 0x303   :  { %3691 = vmatmul.msk.f32.gmra.mxu3 %vm1283_vm5, %v1427_v29  ;;  %v4022_v26 = vpop.eup %4021  ;;  %4025 = vrcp.f32 %v1355_v48 }
 0x304   :  { %3705 = vmatmul.msk.f32.gmra.mxu1 %vm1283_vm5, %v1441_v53  ;;  %v1434_v27 = vmul.f32 %v4022_v26, %v5625_v3  ;;  %v1379_v2 = vpop.xlane.xlu0 %1378 }
 0x305   :  { %4027 = vrcp.f32 %v1379_v2 }
 0x306   :  { %3698 = vmatmul.msk.f32.gmra.mxu0 %vm1283_vm5, %v1434_v27  ;;  %3716 = vmatmul.msk.f32.vlgmr.msra.gmra.mxu2 %vm73_vm0, %v595_v37 }
 0x308   :  { %v4024_v15 = vpop.eup %4023 }
 0x309   :  { %v1442_v33 = vmul.f32 %v4024_v15, %v5629_v46  ;;  %v4026_v61 = vpop.eup %4025  ;;  %v601_v46 = vadd.f32 %v4222_v22, %v5439_v8  ;;  %v607_v8 = vadd.f32 %v4222_v22, %v5466_v10  ;;  %v613_v10 = vadd.f32 %v4222_v22, %v5476_v31 }
 0x30a   :  { %v1435_v43 = vmul.f32 %v4026_v61, %v5627_v5 }
 0x30b   :  { %3732 = vmatmul.msk.f32.vlgmr.msrb.gmra.mxu3 %vm73_vm0, %v595_v37  ;;  %v4028_v54 = vpop.eup %4027 }
 0x30c   :  { %3706 = vmatmul.msk.f32.gmra.mxu1 %vm1283_vm5, %v1442_v33  ;;  %v1443_v3 = vmul.f32 %v4028_v54, %v5642_v11 }
 0x30e   :  { %3699 = vmatmul.msk.f32.gmra.mxu0 %vm1283_vm5, %v1435_v43  ;;  %3717 = vmatmul.msk.f32.gmra.mxu2 %vm73_vm0, %v598_v19 }
 0x30f   :  { %v1615_v11 = vpop.f32.mrf.mxu0 }
 0x310   :  { %v1707_v51 = vsel %vm73_vm0, %v1615_v11, 0.0 }
 0x312   :  { %v1485_v5 = vpop.f32.mrf.mxu2 }
 0x313   :  { %3733 = vmatmul.msk.f32.gmra.mxu3 %vm73_vm0, %v598_v19  ;;  %v1704_v40 = vsel %vm73_vm0, %v1485_v5, 0.0 }
 0x314   :  { %3707 = vmatmul.msk.f32.gmra.mxu1 %vm1283_vm5, %v1443_v3 }
 0x316   :  { %3718 = vmatmul.msk.f32.gmra.mxu2 %vm73_vm0, %v601_v46  ;;  %3748 = vmatmul.msk.f32.vlgmr.msrb.gmra.mxu0 %vm73_vm0, %v595_v37 }
 0x31b   :  { %3734 = vmatmul.msk.f32.gmra.mxu3 %vm73_vm0, %v601_v46 }
 0x31c   :  { %3764 = vmatmul.msk.f32.vlgmr.msrb.gmra.mxu1 %vm73_vm0, %v595_v37 }
 0x31e   :  { %3719 = vmatmul.msk.f32.gmra.mxu2 %vm73_vm0, %v604_v63  ;;  %3749 = vmatmul.msk.f32.gmra.mxu0 %vm73_vm0, %v598_v19 }
 0x321   :  { %v1488_v34 = vpop.f32.mrf.mxu2 }
 0x322   :  { %v1711_v21 = vsel %vm73_vm0, %v1488_v34, 0.0 }
 0x323   :  { %3735 = vmatmul.msk.f32.gmra.mxu3 %vm73_vm0, %v604_v63  ;;  %v1618_v24 = vpop.f32.mrf.mxu0 }
 0x324   :  { %3765 = vmatmul.msk.f32.gmra.mxu1 %vm73_vm0, %v598_v19  ;;  %v1714_v14 = vsel %vm73_vm0, %v1618_v24, 0.0 }
 0x326   :  { %3720 = vmatmul.msk.f32.gmra.mxu2 %vm73_vm0, %v607_v8  ;;  %3750 = vmatmul.msk.f32.gmra.mxu0 %vm73_vm0, %v601_v46 }
 0x329   :  { %v1491_v55 = vpop.f32.mrf.mxu2 }
 0x32a   :  { %v1718_v23 = vsel %vm73_vm0, %v1491_v55, 0.0 }
 0x32b   :  { %3736 = vmatmul.msk.f32.gmra.mxu3 %vm73_vm0, %v607_v8  ;;  %v1621_v42 = vpop.f32.mrf.mxu0 }
 0x32c   :  { %3766 = vmatmul.msk.f32.gmra.mxu1 %vm73_vm0, %v601_v46  ;;  %v1721_v57 = vsel %vm73_vm0, %v1621_v42, 0.0 }
 0x32e   :  { %3721 = vmatmul.msk.f32.gmra.mxu2 %vm73_vm0, %v610_v18  ;;  %3751 = vmatmul.msk.f32.gmra.mxu0 %vm73_vm0, %v604_v63 }
 0x331   :  { %v1494_v38 = vpop.f32.mrf.mxu2 }
 0x332   :  { %v1725_v13 = vsel %vm73_vm0, %v1494_v38, 0.0 }
 0x333   :  { %3737 = vmatmul.msk.f32.gmra.mxu3 %vm73_vm0, %v610_v18 }
 0x334   :  { %3767 = vmatmul.msk.f32.gmra.mxu1 %vm73_vm0, %v604_v63 }
 0x336   :  { %3722 = vmatmul.msk.f32.gmra.mxu2 %vm73_vm0, %v613_v10  ;;  %3752 = vmatmul.msk.f32.gmra.mxu0 %vm73_vm0, %v607_v8 }
 0x33b   :  { %3738 = vmatmul.msk.f32.gmra.mxu3 %vm73_vm0, %v613_v10 }
 0x33c   :  { %3768 = vmatmul.msk.f32.gmra.mxu1 %vm73_vm0, %v607_v8 }
 0x33e   :  { %3723 = vmatmul.msk.f32.gmra.mxu2 %vm73_vm0, %v616_v4  ;;  %3753 = vmatmul.msk.f32.gmra.mxu0 %vm73_vm0, %v610_v18 }
 0x343   :  { %3739 = vmatmul.msk.f32.gmra.mxu3 %vm73_vm0, %v616_v4 }
 0x344   :  { %3769 = vmatmul.msk.f32.gmra.mxu1 %vm73_vm0, %v610_v18 }
 0x346   :  { %3754 = vmatmul.msk.f32.gmra.mxu0 %vm73_vm0, %v613_v10 }
 0x349   :  { %v1550_v31 = vpop.f32.mrf.mxu3 }
 0x34a   :  { %v1705_v17 = vsel %vm73_vm0, %v1550_v31, 0.0 }
 0x34b   :  { %v1706_v1 = vadd.f32 %v1705_v17, %v1704_v40 }
 0x34c   :  { %3770 = vmatmul.msk.f32.gmra.mxu1 %vm73_vm0, %v613_v10 }
 0x34d   :  { %v1708_v7 = vadd.f32 %v1707_v51, %v1706_v1 }
 0x34e   :  { %3755 = vmatmul.msk.f32.gmra.mxu0 %vm73_vm0, %v616_v4 }
 0x351   :  { %v1497_v0 = vpop.f32.mrf.mxu2 }
 0x352   :  { %v1553_v60 = vpop.f32.mrf.mxu3  ;;  %v1732_v2 = vsel %vm73_vm0, %v1497_v0, 0.0 }
 0x353   :  { %v1680_v45 = vpop.f32.mrf.mxu1  ;;  %v1712_v62 = vsel %vm73_vm0, %v1553_v60, 0.0 }
 0x354   :  { %3771 = vmatmul.msk.f32.gmra.mxu1 %vm73_vm0, %v616_v4  ;;  %v1709_v28 = vsel %vm73_vm0, %v1680_v45, 0.0  ;;  %v1713_v56 = vadd.f32 %v1712_v62, %v1711_v21 }
 0x355   :  { %v1710_v39 = vadd.f32 %v1709_v28, %v1708_v7 }
 0x356   :  { %v1715_v36 = vadd.f32 %v1714_v14, %v1713_v56  ;;  %v4223_v14 = vld [vmem:[#allocation3] sm:$0xff] }
 0x357   :  { %1760 = vst.msk [vmem:[#allocation2] sm:$0xff] %vm73_vm0, %v1710_v39 }
 0x35a   :  { %v1556_v20 = vpop.f32.mrf.mxu3 }
 0x35b   :  { %v1683_v32 = vpop.f32.mrf.mxu1  ;;  %v1719_v30 = vsel %vm73_vm0, %v1556_v20, 0.0 }
 0x35c   :  { %v1716_v35 = vsel %vm73_vm0, %v1683_v32, 0.0  ;;  %v1720_v25 = vadd.f32 %v1719_v30, %v1718_v23 }
 0x35d   :  { %v1717_v44 = vadd.f32 %v1716_v35, %v1715_v36 }
 0x35e   :  { %v1722_v58 = vadd.f32 %v1721_v57, %v1720_v25 }
 0x35f   :  { %1761 = vst.msk [vmem:[#allocation2 + $0x8] sm:$0xff] %vm73_vm0, %v1717_v44 }
 0x362   :  { %v1559_v6 = vpop.f32.mrf.mxu3 }
 0x363   :  { %v1686_v50 = vpop.f32.mrf.mxu1  ;;  %v1726_v41 = vsel %vm73_vm0, %v1559_v6, 0.0  ;;  %v1624_v9 = vpop.f32.mrf.mxu0 }
 0x364   :  { %v1723_v12 = vsel %vm73_vm0, %v1686_v50, 0.0  ;;  %v1727_v52 = vadd.f32 %v1726_v41, %v1725_v13  ;;  %v1728_v59 = vsel %vm73_vm0, %v1624_v9, 0.0  ;;  %v4224_v41 = vld [vmem:[#allocation3 + $0x80] sm:$0xff] }
 0x365   :  { %v1724_v47 = vadd.f32 %v1723_v12, %v1722_v58  ;;  %v1500_v22 = vpop.f32.mrf.mxu2 }
 0x366   :  { %v1729_v49 = vadd.f32 %v1728_v59, %v1727_v52  ;;  %v1739_v18 = vsel %vm73_vm0, %v1500_v22, 0.0 }
 0x367   :  { %1762 = vst.msk [vmem:[#allocation2 + $0x10] sm:$0xff] %vm73_vm0, %v1724_v47 }
 0x36b   :  { %v1689_v53 = vpop.f32.mrf.mxu1 }
 0x36c   :  { %v1730_v48 = vsel %vm73_vm0, %v1689_v53, 0.0 }
 0x36d   :  { %v1731_v26 = vadd.f32 %v1730_v48, %v1729_v49  ;;  %v1503_v54 = vpop.f32.mrf.mxu2  ;;  %v4225_v49 = vld [vmem:[#allocation3 + $0x88] sm:$0xff] }
 0x36e   :  { %v1562_v29 = vpop.f32.mrf.mxu3  ;;  %v1746_v51 = vsel %vm73_vm0, %v1503_v54, 0.0  ;;  %v4226_v48 = vld [vmem:[#allocation3 + $0x8] sm:$0xff] }
 0x36f   :  { %1763 = vst.msk [vmem:[#allocation2 + $0x18] sm:$0xff] %vm73_vm0, %v1731_v26  ;;  %v1733_v27 = vsel %vm73_vm0, %v1562_v29, 0.0 }
 0x370   :  { %v1627_v37 = vpop.f32.mrf.mxu0  ;;  %v1734_v15 = vadd.f32 %v1733_v27, %v1732_v2 }
 0x371   :  { %v1735_v33 = vsel %vm73_vm0, %v1627_v37, 0.0 }
 0x372   :  { %v1736_v19 = vadd.f32 %v1735_v33, %v1734_v15  ;;  %v4227_v15 = vld [vmem:[#allocation3 + $0x18] sm:$0xff] }
 0x376   :  { %v1565_v61 = vpop.f32.mrf.mxu3 }
 0x377   :  { %v1740_v3 = vsel %vm73_vm0, %v1565_v61, 0.0 }
 0x378   :  { %v1630_v63 = vpop.f32.mrf.mxu0  ;;  %v1741_v10 = vadd.f32 %v1740_v3, %v1739_v18 }
 0x379   :  { %v1692_v43 = vpop.f32.mrf.mxu1  ;;  %v1742_v4 = vsel %vm73_vm0, %v1630_v63, 0.0 }
 0x37a   :  { %v1737_v46 = vsel %vm73_vm0, %v1692_v43, 0.0  ;;  %v1743_v31 = vadd.f32 %v1742_v4, %v1741_v10  ;;  %v4228_v43 = vld [vmem:[#allocation3 + $0x40] sm:$0xff] }
 0x37b   :  { %v1738_v8 = vadd.f32 %v1737_v46, %v1736_v19  ;;  %v4229_v46 = vld [vmem:[#allocation3 + $0x90] sm:$0xff] }
 0x37d   :  { %1764 = vst.msk [vmem:[#allocation2 + $0x20] sm:$0xff] %vm73_vm0, %v1738_v8  ;;  %v4230_v8 = vld [vmem:[#allocation3 + $0x10] sm:$0xff] }
 0x37e   :  { %v1568_v5 = vpop.f32.mrf.mxu3 }
 0x37f   :  { %v1747_v34 = vsel %vm73_vm0, %v1568_v5, 0.0 }
 0x380   :  { %v1748_v24 = vadd.f32 %v1747_v34, %v1746_v51 }
 0x381   :  { %v1695_v11 = vpop.f32.mrf.mxu1  ;;  %v1506_v40 = vpop.f32.mrf.mxu2 }
 0x382   :  { %v1744_v17 = vsel %vm73_vm0, %v1695_v11, 0.0  ;;  %v1753_v32 = vsel %vm73_vm0, %v1506_v40, 0.0  ;;  %v4231_v40 = vld [vmem:[#allocation3 + $0x20] sm:$0xff] }
 0x383   :  { %v1745_v1 = vadd.f32 %v1744_v17, %v1743_v31  ;;  %v1633_v60 = vpop.f32.mrf.mxu0 }
 0x384   :  { %v1749_v45 = vsel %vm73_vm0, %v1633_v60, 0.0 }
 0x385   :  { %1765 = vst.msk [vmem:[#allocation2 + $0x28] sm:$0xff] %vm73_vm0, %v1745_v1  ;;  %v1750_v62 = vadd.f32 %v1749_v45, %v1748_v24 }
 0x386   :  { %v1571_v7 = vpop.f32.mrf.mxu3 }
 0x387   :  { %v1754_v55 = vsel %vm73_vm0, %v1571_v7, 0.0  ;;  %v4232_v7 = vld [vmem:[#allocation3 + $0x98] sm:$0xff] }
 0x388   :  { %v1755_v30 = vadd.f32 %v1754_v55, %v1753_v32 }
 0x389   :  { %v1698_v28 = vpop.f32.mrf.mxu1  ;;  %v1833_v21 = vpop.f32.mrf.mxu2 }
 0x38a   :  { %v1751_v39 = vsel %vm73_vm0, %v1698_v28, 0.0  ;;  %v1834_v20 = vadd.f32 %v4223_v14, %v1833_v21  ;;  %v4233_v28 = vld [vmem:[#allocation3 + $0x48] sm:$0xff]  ;;  %v4234_v14 = vld [vmem:[#allocation3 + $0xc0] sm:$0xff] }
 0x38b   :  { %v1752_v56 = vadd.f32 %v1751_v39, %v1750_v62  ;;  %v1636_v36 = vpop.f32.mrf.mxu0 }
 0x38c   :  { %v2052_v35 = vmul.f32 1.442695, %v1834_v20  ;;  %v1756_v42 = vsel %vm73_vm0, %v1636_v36, 0.0 }
 0x38d   :  { %1766 = vst.msk [vmem:[#allocation2 + $0x30] sm:$0xff] %vm73_vm0, %v1752_v56  ;;  %v1757_v44 = vadd.f32 %v1756_v42, %v1755_v30 }
 0x38e   :  { %4029 = vpow2.f32 %v2052_v35  ;;  %v1898_v23 = vpop.f32.mrf.mxu3 }
 0x38f   :  { %v1899_v54 = vadd.f32 %v4228_v43, %v1898_v23 }
 0x391   :  { %v1701_v38 = vpop.f32.mrf.mxu1  ;;  %v1836_v57 = vpop.f32.mrf.mxu2  ;;  %v2068_v11 = vmul.f32 1.442695, %v1899_v54  ;;  %v4240_v54 = vld [vmem:[#allocation3 + $0xa0] sm:$0xff] }
 0x392   :  { %v1758_v25 = vsel %vm73_vm0, %v1701_v38, 0.0  ;;  %v1837_v29 = vadd.f32 %v4226_v48, %v1836_v57  ;;  %v4235_v57 = vld [vmem:[#allocation3 + $0x50] sm:$0xff] }
 0x393   :  { %v1759_v6 = vadd.f32 %v1758_v25, %v1757_v44  ;;  %v1963_v50 = vpop.f32.mrf.mxu0 }
 0x394   :  { %v5876_v58 = vpop.eup %4029  ;;  %v1964_v12 = vadd.f32 %v4224_v41, %v1963_v50  ;;  %v2054_v27 = vmul.f32 1.442695, %v1837_v29  ;;  %v4236_v50 = vld [vmem:[#allocation3 + $0xc8] sm:$0xff] }
 0x395   :  { %1767 = vst.msk [vmem:[#allocation2 + $0x38] sm:$0xff] %vm73_vm0, %v1759_v6  ;;  %v2116_v9 = vsel %vm1283_vm5, %v5876_v58, 0.0 }
 0x396   :  { %v2084_v47 = vmul.f32 1.442695, %v1964_v12  ;;  %2117 = vadd.xlane.f32.xlu1 %v2116_v9  ;;  %v1901_v13 = vpop.f32.mrf.mxu3  ;;  %v4237_v9 = vld [vmem:[#allocation3 + $0x58] sm:$0xff] }
 0x397   :  { %v1902_v55 = vadd.f32 %v4233_v28, %v1901_v13  ;;  %v4243_v28 = vld [vmem:[#allocation3 + $0xd8] sm:$0xff] }
 0x398   :  { %4031 = vpow2.f32 %v2084_v47 }
 0x399   :  { %v1839_v0 = vpop.f32.mrf.mxu2  ;;  %v2028_v52 = vpop.f32.mrf.mxu1  ;;  %v2070_v42 = vmul.f32 1.442695, %v1902_v55 }
 0x39a   :  { %v1840_v18 = vadd.f32 %v4230_v8, %v1839_v0  ;;  %v2029_v20 = vadd.f32 %v4234_v14, %v2028_v52 }
 0x39b   :  { %v1966_v59 = vpop.f32.mrf.mxu0 }
 0x39c   :  { %v1967_v53 = vadd.f32 %v4225_v49, %v1966_v59  ;;  %v2056_v34 = vmul.f32 1.442695, %v1840_v18  ;;  %v2100_v23 = vmul.f32 1.442695, %v2029_v20 }
 0x39e   :  { %v5881_v26 = vpop.eup %4031  ;;  %v2086_v22 = vmul.f32 1.442695, %v1967_v53  ;;  %v1904_v61 = vpop.f32.mrf.mxu3 }
 0x39f   :  { %v2164_v37 = vsel %vm1283_vm5, %v5881_v26, 0.0  ;;  %v1905_v6 = vadd.f32 %v4235_v57, %v1904_v61  ;;  %v4239_v61 = vld [vmem:[#allocation3 + $0x28] sm:$0xff] }
 0x3a0   :  { %4033 = vpow2.f32 %v2086_v22  ;;  %2165 = vadd.xlane.f32.xlu2 %v2164_v37 }
 0x3a1   :  { %v1842_v2 = vpop.f32.mrf.mxu2  ;;  %4035 = vpow2.f32 %v2054_v27  ;;  %v2031_v10 = vpop.f32.mrf.mxu1  ;;  %v2072_v49 = vmul.f32 1.442695, %v1905_v6  ;;  %v4245_v6 = vld [vmem:[#allocation3 + $0xe0] sm:$0xff] }
 0x3a2   :  { %v1843_v33 = vadd.f32 %v4227_v15, %v1842_v2  ;;  %v2032_v41 = vadd.f32 %v4236_v50, %v2031_v10  ;;  %v4238_v15 = vld [vmem:[#allocation3 + $0xd0] sm:$0xff] }
 0x3a3   :  { %v1969_v19 = vpop.f32.mrf.mxu0 }
 0x3a4   :  { %v2058_v3 = vmul.f32 1.442695, %v1843_v33  ;;  %v1970_v63 = vadd.f32 %v4229_v46, %v1969_v19  ;;  %v2102_v53 = vmul.f32 1.442695, %v2032_v41 }
 0x3a6   :  { %v5885_v4 = vpop.eup %4033  ;;  %4037 = vpow2.f32 %v2058_v3  ;;  %v2088_v5 = vmul.f32 1.442695, %v1970_v63  ;;  %v1907_v39 = vpop.f32.mrf.mxu3 }
 0x3a7   :  { %v2167_v31 = vsel %vm1283_vm5, %v5885_v4, 0.0  ;;  %v5889_v51 = vpop.eup %4035  ;;  %v1908_v47 = vadd.f32 %v4237_v9, %v1907_v39  ;;  %v4246_v9 = vld [vmem:[#allocation3 + $0x70] sm:$0xff] }
 0x3a8   :  { %4039 = vpow2.f32 %v2088_v5  ;;  %2168 = vadd.xlane.f32.xlu0 %v2167_v31  ;;  %v2119_v30 = vsel %vm1283_vm5, %v5889_v51, 0.0 }
 0x3a9   :  { %v1845_v17 = vpop.f32.mrf.mxu2  ;;  %4041 = vpow2.f32 %v2068_v11  ;;  %v2034_v32 = vpop.f32.mrf.mxu1  ;;  %v2074_v22 = vmul.f32 1.442695, %v1908_v47 }
 0x3aa   :  { %v1846_v1 = vadd.f32 %v4231_v40, %v1845_v17  ;;  %4043 = vpow2.f32 %v2056_v34  ;;  %v2035_v33 = vadd.f32 %v4238_v15, %v2034_v32 }
 0x3ab   :  { %v1972_v60 = vpop.f32.mrf.mxu0 }
 0x3ac   :  { %v5891_v24 = vpop.eup %4037  ;;  %v2060_v45 = vmul.f32 1.442695, %v1846_v1  ;;  %v1973_v62 = vadd.f32 %v4232_v7, %v1972_v60  ;;  %v2104_v8 = vmul.f32 1.442695, %v2035_v33  ;;  %v4241_v1 = vld [vmem:[#allocation3 + $0x30] sm:$0xff]  ;;  %v4247_v33 = vld [vmem:[#allocation3 + $0xe8] sm:$0xff] }
 0x3ad   :  { %v2125_v21 = vsel %vm1283_vm5, %v5891_v24, 0.0 }
 0x3ae   :  { %v5895_v56 = vpop.eup %4039  ;;  %4045 = vpow2.f32 %v2060_v45  ;;  %2126 = vadd.xlane.f32.xlu2 %v2125_v21  ;;  %v2090_v35 = vmul.f32 1.442695, %v1973_v62  ;;  %v1910_v13 = vpop.f32.mrf.mxu3  ;;  %v4242_v45 = vld [vmem:[#allocation3 + $0x60] sm:$0xff] }
 0x3af   :  { %v2170_v36 = vsel %vm1283_vm5, %v5895_v56, 0.0  ;;  %v5901_v44 = vpop.eup %4041  ;;  %v1911_v7 = vadd.f32 %v4242_v45, %v1910_v13 }
 0x3b0   :  { %2171 = vadd.xlane.f32.xlu1 %v2170_v36  ;;  %2120 = vadd.xlane.f32.xlu0 %v2119_v30  ;;  %v5903_v38 = vpop.eup %4043  ;;  %4047 = vpow2.f32 %v2090_v35  ;;  %v2140_v12 = vsel %vm1283_vm5, %v5901_v44, 0.0 }
 0x3b1   :  { %4049 = vpow2.f32 %v2070_v42  ;;  %v1848_v0 = vpop.f32.mrf.mxu2  ;;  %v2122_v52 = vsel %vm1283_vm5, %v5903_v38, 0.0  ;;  %v2037_v48 = vpop.f32.mrf.mxu1  ;;  %v2076_v20 = vmul.f32 1.442695, %v1911_v7 }
 0x3b2   :  { %4051 = vpow2.f32 %v2100_v23  ;;  %v1849_v19 = vadd.f32 %v4239_v61, %v1848_v0  ;;  %v2038_v55 = vadd.f32 %v4243_v28, %v2037_v48  ;;  %v4244_v23 = vld [vmem:[#allocation3 + $0x68] sm:$0xff] }
 0x3b3   :  { %v1975_v27 = vpop.f32.mrf.mxu0  ;;  %4053 = vpow2.f32 %v2072_v49 }
 0x3b4   :  { %v5905_v25 = vpop.eup %4045  ;;  %4055 = vpow2.f32 %v2102_v53  ;;  %v1976_v3 = vadd.f32 %v4240_v54, %v1975_v27  ;;  %v2062_v18 = vmul.f32 1.442695, %v1849_v19  ;;  %v2106_v36 = vmul.f32 1.442695, %v2038_v55  ;;  %v4248_v19 = vld [vmem:[#allocation3 + $0xa8] sm:$0xff]  ;;  %v4251_v55 = vld [vmem:[#allocation3 + $0x78] sm:$0xff] }
 0x3b5   :  { %v2128_v59 = vsel %vm1283_vm5, %v5905_v25, 0.0  ;;  %4057 = vpow2.f32 %v2074_v22 }
 0x3b6   :  { %2141 = vadd.xlane.f32.xlu2 %v2140_v12  ;;  %v5913_v29 = vpop.eup %4047  ;;  %v1913_v10 = vpop.f32.mrf.mxu3  ;;  %v2092_v11 = vmul.f32 1.442695, %v1976_v3  ;;  %4059 = vpow2.f32 %v2104_v8  ;;  %v4249_v3 = vld [vmem:[#allocation3 + $0x38] sm:$0xff] }
 0x3b7   :  { %v5915_v37 = vpop.eup %4049  ;;  %v2173_v43 = vsel %vm1283_vm5, %v5913_v29, 0.0  ;;  %4061 = vpow2.f32 %v2062_v18  ;;  %v1914_v57 = vadd.f32 %v4244_v23, %v1913_v10 }
 0x3b8   :  { %2123 = vadd.xlane.f32.xlu1 %v2122_v52  ;;  %2129 = vadd.xlane.f32.xlu0 %v2128_v59  ;;  %v5917_v2 = vpop.eup %4051  ;;  %v2143_v46 = vsel %vm1283_vm5, %v5915_v37, 0.0  ;;  %4063 = vpow2.f32 %v2092_v11 }
 0x3b9   :  { %v2188_v63 = vsel %vm1283_vm5, %v5917_v2, 0.0  ;;  %v1851_v5 = vpop.f32.mrf.mxu2  ;;  %v5925_v31 = vpop.eup %4053  ;;  %v2078_v59 = vmul.f32 1.442695, %v1914_v57 }
 0x3ba   :  { %v5927_v34 = vpop.eup %4055  ;;  %v2040_v17 = vpop.f32.mrf.mxu1  ;;  %v1852_v60 = vadd.f32 %v4241_v1, %v1851_v5  ;;  %v2146_v62 = vsel %vm1283_vm5, %v5925_v31, 0.0 }
 0x3bb   :  { %v5929_v40 = vpop.eup %4057  ;;  %v2191_v39 = vsel %vm1283_vm5, %v5927_v34, 0.0  ;;  %v2041_v50 = vadd.f32 %v4245_v6, %v2040_v17  ;;  %v1978_v13 = vpop.f32.mrf.mxu0 }
 0x3bc   :  { %v2149_v21 = vsel %vm1283_vm5, %v5929_v40, 0.0  ;;  %v2064_v14 = vmul.f32 1.442695, %v1852_v60  ;;  %v5937_v32 = vpop.eup %4059 }
 0x3bd   :  { %v5939_v30 = vpop.eup %4061  ;;  %v2194_v12 = vsel %vm1283_vm5, %v5937_v32, 0.0  ;;  %v2108_v49 = vmul.f32 1.442695, %v2041_v50 }
 0x3be   :  { %2174 = vadd.xlane.f32.xlu2 %v2173_v43  ;;  %v1916_v35 = vpop.f32.mrf.mxu3  ;;  %v5941_v42 = vpop.eup %4063  ;;  %4065 = vpow2.f32 %v2064_v14  ;;  %v2131_v0 = vsel %vm1283_vm5, %v5939_v30, 0.0  ;;  %v1979_v43 = vadd.f32 %v4248_v19, %v1978_v13  ;;  %v4252_v14 = vld [vmem:[#allocation3 + $0xf0] sm:$0xff]  ;;  %v4253_v13 = vld [vmem:[#allocation3 + $0xf8] sm:$0xff] }
 0x3bf   :  { %4067 = vpow2.f32 %v2076_v20  ;;  %v1917_v47 = vadd.f32 %v4246_v9, %v1916_v35  ;;  %v2176_v52 = vsel %vm1283_vm5, %v5941_v42, 0.0 }
 0x3c0   :  { %2144 = vadd.xlane.f32.xlu1 %v2143_v46  ;;  %2189 = vadd.xlane.f32.xlu0 %v2188_v63  ;;  %4069 = vpow2.f32 %v2106_v36  ;;  %v2094_v5 = vmul.f32 1.442695, %v1979_v43 }
 0x3c1   :  { %v2080_v48 = vmul.f32 1.442695, %v1917_v47  ;;  %v1854_v27 = vpop.f32.mrf.mxu2  ;;  %4071 = vpow2.f32 %v2078_v59  ;;  %v4254_v59 = vld [vmem:[#allocation3 + $0xb8] sm:$0xff] }
 0x3c2   :  { %v2043_v41 = vpop.f32.mrf.mxu1  ;;  %4073 = vpow2.f32 %v2108_v49  ;;  %v1855_v46 = vadd.f32 %v4249_v3, %v1854_v27 }
 0x3c3   :  { %v2044_v61 = vadd.f32 %v4247_v33, %v2043_v41  ;;  %4075 = vpow2.f32 %v2080_v48  ;;  %v1981_v11 = vpop.f32.mrf.mxu0 }
 0x3c4   :  { %v5949_v53 = vpop.eup %4065  ;;  %v2066_v1 = vmul.f32 1.442695, %v1855_v46 }
 0x3c5   :  { %v5951_v22 = vpop.eup %4067  ;;  %v2134_v54 = vsel %vm1283_vm5, %v5949_v53, 0.0  ;;  %v2110_v10 = vmul.f32 1.442695, %v2044_v61 }
 0x3c6   :  { %2147 = vadd.xlane.f32.xlu2 %v2146_v62  ;;  %v5953_v15 = vpop.eup %4069  ;;  %v2152_v8 = vsel %vm1283_vm5, %v5951_v22, 0.0  ;;  %v1919_v60 = vpop.f32.mrf.mxu3  ;;  %v4250_v62 = vld [vmem:[#allocation3 + $0xb0] sm:$0xff] }
 0x3c7   :  { %v2197_v18 = vsel %vm1283_vm5, %v5953_v15, 0.0  ;;  %v5961_v17 = vpop.eup %4071  ;;  %4077 = vpow2.f32 %v2110_v10  ;;  %v1982_v28 = vadd.f32 %v4250_v62, %v1981_v11 }
 0x3c8   :  { %2192 = vadd.xlane.f32.xlu1 %v2191_v39  ;;  %2150 = vadd.xlane.f32.xlu0 %v2149_v21  ;;  %v5963_v45 = vpop.eup %4073  ;;  %4079 = vpow2.f32 %v2094_v5  ;;  %v1920_v39 = vadd.f32 %v4251_v55, %v1919_v60  ;;  %v2155_v21 = vsel %vm1283_vm5, %v5961_v17, 0.0 }
 0x3c9   :  { %v5965_v7 = vpop.eup %4075  ;;  %4081 = vpow2.f32 %v2066_v1  ;;  %v2200_v36 = vsel %vm1283_vm5, %v5963_v45, 0.0  ;;  %v2096_v23 = vmul.f32 1.442695, %v1982_v28 }
 0x3ca   :  { %v2046_v63 = vpop.f32.mrf.mxu1  ;;  %v2158_v35 = vsel %vm1283_vm5, %v5965_v7, 0.0  ;;  %v2082_v57 = vmul.f32 1.442695, %v1920_v39 }
 0x3cb   :  { %v2047_v20 = vadd.f32 %v4252_v14, %v2046_v63  ;;  %v1984_v9 = vpop.f32.mrf.mxu0  ;;  %4083 = vpow2.f32 %v2096_v23 }
 0x3cc   :  { %4085 = vpow2.f32 %v2082_v57  ;;  %v1985_v49 = vadd.f32 %v4254_v59, %v1984_v9 }
 0x3cd   :  { %v5973_v50 = vpop.eup %4077  ;;  %v2112_v41 = vmul.f32 1.442695, %v2047_v20 }
 0x3ce   :  { %2195 = vadd.xlane.f32.xlu2 %v2194_v12  ;;  %v5975_v12 = vpop.eup %4079  ;;  %v2098_v19 = vmul.f32 1.442695, %v1985_v49 }
 0x3cf   :  { %v5977_v47 = vpop.eup %4081  ;;  %4087 = vpow2.f32 %v2112_v41  ;;  %v2179_v48 = vsel %vm1283_vm5, %v5975_v12, 0.0 }
 0x3d0   :  { %2132 = vadd.xlane.f32.xlu1 %v2131_v0  ;;  %2177 = vadd.xlane.f32.xlu0 %v2176_v52  ;;  %v2203_v52 = vsel %vm1283_vm5, %v5973_v50, 0.0  ;;  %v2137_v27 = vsel %vm1283_vm5, %v5977_v47, 0.0 }
 0x3d1   :  { %v5985_v61 = vpop.eup %4083 }
 0x3d2   :  { %v2049_v6 = vpop.f32.mrf.mxu1  ;;  %v5987_v43 = vpop.eup %4085  ;;  %v2182_v3 = vsel %vm1283_vm5, %v5985_v61, 0.0 }
 0x3d3   :  { %v2050_v0 = vadd.f32 %v4253_v13, %v2049_v6  ;;  %v2161_v46 = vsel %vm1283_vm5, %v5987_v43, 0.0 }
 0x3d5   :  { %v2114_v33 = vmul.f32 1.442695, %v2050_v0 }
 0x3d6   :  { %2135 = vadd.xlane.f32.xlu2 %v2134_v54  ;;  %v5989_v54 = vpop.eup %4087 }
 0x3d7   :  { %4089 = vpow2.f32 %v2114_v33  ;;  %v2206_v63 = vsel %vm1283_vm5, %v5989_v54, 0.0 }
 0x3d8   :  { %2153 = vadd.xlane.f32.xlu1 %v2152_v8  ;;  %2198 = vadd.xlane.f32.xlu0 %v2197_v18  ;;  %4091 = vpow2.f32 %v2098_v19 }
 0x3dd   :  { %v5997_v8 = vpop.eup %4089 }
 0x3de   :  { %2156 = vadd.xlane.f32.xlu2 %v2155_v21  ;;  %v5999_v18 = vpop.eup %4091  ;;  %v2209_v10 = vsel %vm1283_vm5, %v5997_v8, 0.0 }
 0x3df   :  { %v2185_v5 = vsel %vm1283_vm5, %v5999_v18, 0.0 }
 0x3e0   :  { %2201 = vadd.xlane.f32.xlu1 %v2200_v36  ;;  %2159 = vadd.xlane.f32.xlu0 %v2158_v35 }
 0x3e6   :  { %2204 = vadd.xlane.f32.xlu2 %v2203_v52 }
 0x3e8   :  { %2180 = vadd.xlane.f32.xlu1 %v2179_v48  ;;  %2138 = vadd.xlane.f32.xlu0 %v2137_v27 }
 0x3ee   :  { %2183 = vadd.xlane.f32.xlu2 %v2182_v3 }
 0x3f0   :  { %2162 = vadd.xlane.f32.xlu1 %v2161_v46  ;;  %2207 = vadd.xlane.f32.xlu0 %v2206_v63 }
 0x3f6   :  { %2210 = vadd.xlane.f32.xlu2 %v2209_v10 }
 0x3f8   :  { %2186 = vadd.xlane.f32.xlu1 %v2185_v5 }
 0x409   :  { %v2118_v11 = vpop.xlane.xlu1 %2117 }
 0x40a   :  { %4093 = vrcp.f32 %v2118_v11 }
 0x410   :  { %v4094_v1 = vpop.eup %4093 }
 0x411   :  { %v2244_v60 = vmul.f32 %v4094_v1, %v5876_v58 }
 0x413   :  { %v2166_v62 = vpop.xlane.xlu2 %2165  ;;  %3772 = vmatmul.msk.f32.vlgmr.msrb.gmra.mxu2 %vm1283_vm5, %v2244_v60 }
 0x414   :  { %4095 = vrcp.f32 %v2166_v62 }
 0x41a   :  { %v4096_v28 = vpop.eup %4095 }
 0x41b   :  { %v2260_v55 = vmul.f32 %v4096_v28, %v5881_v26  ;;  %v2169_v39 = vpop.xlane.xlu0 %2168  ;;  %v3807_v28 = vld [vmem:[%s6652_s3 + $0x78] sm:$0xff] }
 0x41c   :  { %4097 = vrcp.f32 %v2169_v39  ;;  %2683 = vmatpush.msra.mxu2 %v3807_v28 }
 0x41d   :  { %3788 = vmatmul.msk.f32.vlgmr.msra.gmra.mxu0 %vm1283_vm5, %v2260_v55  ;;  %v3806_v55 = vld [vmem:[%s6652_s3 + $0x70] sm:$0xff] }
 0x41e   :  { %2684 = vmatpush.msra.mxu2 %v3806_v55 }
 0x421   :  { %v2127_v21 = vpop.xlane.xlu2 %2126 }
 0x422   :  { %v4098_v14 = vpop.eup %4097 }
 0x423   :  { %v2121_v20 = vpop.xlane.xlu0 %2120  ;;  %v2172_v36 = vpop.xlane.xlu1 %2171  ;;  %v2261_v35 = vmul.f32 %v4098_v14, %v5885_v4 }
 0x424   :  { %4099 = vrcp.f32 %v2121_v20 }
 0x425   :  { %4101 = vrcp.f32 %v2172_v36  ;;  %3789 = vmatmul.msk.f32.gmra.mxu0 %vm1283_vm5, %v2261_v35 }
 0x429   :  { %v2142_v58 = vpop.xlane.xlu2 %2141 }
 0x42a   :  { %v4100_v23 = vpop.eup %4099  ;;  %4103 = vrcp.f32 %v2142_v58 }
 0x42b   :  { %v4102_v57 = vpop.eup %4101  ;;  %v2130_v6 = vpop.xlane.xlu0 %2129  ;;  %v2245_v41 = vmul.f32 %v4100_v23, %v5889_v51 }
 0x42c   :  { %v2124_v26 = vpop.xlane.xlu1 %2123  ;;  %v2262_v9 = vmul.f32 %v4102_v57, %v5895_v56  ;;  %v3804_v57 = vld [vmem:[%s6652_s3 + $0x60] sm:$0xff] }
 0x42d   :  { %4105 = vrcp.f32 %v2124_v26  ;;  %3773 = vmatmul.msk.f32.gmra.mxu2 %vm1283_vm5, %v2245_v41 }
 0x42e   :  { %3790 = vmatmul.msk.f32.gmra.mxu0 %vm1283_vm5, %v2262_v9 }
 0x430   :  { %v4104_v4 = vpop.eup %4103 }
 0x431   :  { %v2252_v13 = vmul.f32 %v4104_v4, %v5901_v44  ;;  %v2175_v0 = vpop.xlane.xlu2 %2174 }
 0x432   :  { %4107 = vrcp.f32 %v2175_v0 }
 0x433   :  { %v4106_v52 = vpop.eup %4105  ;;  %4109 = vrcp.f32 %v2127_v21  ;;  %3780 = vmatmul.msk.f32.vlgmr.msra.gmra.mxu3 %vm1283_vm5, %v2252_v13  ;;  %v2190_v59 = vpop.xlane.xlu0 %2189  ;;  %v3805_v21 = vld [vmem:[%s6652_s3 + $0x68] sm:$0xff] }
 0x434   :  { %v2145_v49 = vpop.xlane.xlu1 %2144  ;;  %4111 = vrcp.f32 %v2190_v59  ;;  %v2246_v51 = vmul.f32 %v4106_v52, %v5903_v38  ;;  %2685 = vmatpush.msra.mxu2 %v3805_v21 }
 0x435   :  { %4113 = vrcp.f32 %v2145_v49 }
 0x436   :  { %3774 = vmatmul.msk.f32.gmra.mxu2 %vm1283_vm5, %v2246_v51  ;;  %4115 = vrcp.f32 %v2130_v6 }
 0x437   :  { %2686 = vmatpush.msra.mxu2 %v3804_v57 }
 0x438   :  { %v4108_v56 = vpop.eup %4107 }
 0x439   :  { %v4110_v48 = vpop.eup %4109  ;;  %v2148_v27 = vpop.xlane.xlu2 %2147  ;;  %v2263_v33 = vmul.f32 %v4108_v56, %v5913_v29 }
 0x43a   :  { %v4112_v44 = vpop.eup %4111  ;;  %4117 = vrcp.f32 %v2148_v27  ;;  %v2247_v38 = vmul.f32 %v4110_v48, %v5891_v24 }
 0x43b   :  { %v4114_v19 = vpop.eup %4113  ;;  %v2268_v3 = vmul.f32 %v4112_v44, %v5917_v2  ;;  %v2151_v46 = vpop.xlane.xlu0 %2150  ;;  %3791 = vmatmul.msk.f32.gmra.mxu0 %vm1283_vm5, %v2263_v33 }
 0x43c   :  { %v2193_v63 = vpop.xlane.xlu1 %2192  ;;  %v2253_v10 = vmul.f32 %v4114_v19, %v5915_v37  ;;  %v4116_v29 = vpop.eup %4115 }
 0x43d   :  { %4119 = vrcp.f32 %v2193_v63  ;;  %3796 = vmatmul.msk.f32.vlgmr.msra.gmra.mxu1 %vm1283_vm5, %v2268_v3  ;;  %v2248_v24 = vmul.f32 %v4116_v29, %v5905_v25 }
 0x43e   :  { %3775 = vmatmul.msk.f32.gmra.mxu2 %vm1283_vm5, %v2247_v38  ;;  %3781 = vmatmul.msk.f32.gmra.mxu3 %vm1283_vm5, %v2253_v10  ;;  %4121 = vrcp.f32 %v2151_v46 }
 0x440   :  { %v4118_v5 = vpop.eup %4117 }
 0x441   :  { %v2196_v11 = vpop.xlane.xlu2 %2195  ;;  %v2254_v37 = vmul.f32 %v4118_v5, %v5925_v31 }
 0x442   :  { %4123 = vrcp.f32 %v2196_v11 }
 0x443   :  { %v4120_v2 = vpop.eup %4119  ;;  %v2178_v1 = vpop.xlane.xlu0 %2177 }
 0x444   :  { %v2133_v60 = vpop.xlane.xlu1 %2132  ;;  %4125 = vrcp.f32 %v2178_v1  ;;  %v2269_v62 = vmul.f32 %v4120_v2, %v5927_v34  ;;  %v4122_v25 = vpop.eup %4121 }
 0x445   :  { %4127 = vrcp.f32 %v2133_v60  ;;  %v2255_v23 = vmul.f32 %v4122_v25, %v5929_v40  ;;  %v2601_v60 = vld [vmem:[#allocation2 + $0x8] sm:$0xff] }
 0x446   :  { %3776 = vmatmul.msk.f32.gmra.mxu2 %vm1283_vm5, %v2248_v24  ;;  %3782 = vmatmul.msk.f32.gmra.mxu3 %vm1283_vm5, %v2254_v37  ;;  %v2604_v24 = vld [vmem:[#allocation2 + $0x20] sm:$0xff]  ;;  %v2605_v37 = vld [vmem:[#allocation2 + $0x28] sm:$0xff] }
 0x447   :  { %3797 = vmatmul.msk.f32.gmra.mxu1 %vm1283_vm5, %v2269_v62 }
 0x448   :  { %v4124_v31 = vpop.eup %4123 }
 0x449   :  { %v2136_v39 = vpop.xlane.xlu2 %2135  ;;  %v2270_v6 = vmul.f32 %v4124_v31, %v5937_v32 }
 0x44a   :  { %v4126_v34 = vpop.eup %4125  ;;  %4129 = vrcp.f32 %v2136_v39 }
 0x44b   :  { %v4128_v14 = vpop.eup %4127  ;;  %v2199_v20 = vpop.xlane.xlu0 %2198  ;;  %v2264_v35 = vmul.f32 %v4126_v34, %v5941_v42 }
 0x44c   :  { %v2154_v36 = vpop.xlane.xlu1 %2153  ;;  %4131 = vrcp.f32 %v2199_v20  ;;  %v2249_v58 = vmul.f32 %v4128_v14, %v5939_v30 }
 0x44d   :  { %4133 = vrcp.f32 %v2154_v36  ;;  %3792 = vmatmul.msk.f32.gmra.mxu0 %vm1283_vm5, %v2264_v35 }
 0x44e   :  { %3777 = vmatmul.msk.f32.gmra.mxu2 %vm1283_vm5, %v2249_v58  ;;  %3783 = vmatmul.msk.f32.gmra.mxu3 %vm1283_vm5, %v2255_v23 }
 0x44f   :  { %3798 = vmatmul.msk.f32.gmra.mxu1 %vm1283_vm5, %v2270_v6 }
 0x450   :  { %v4130_v30 = vpop.eup %4129 }
 0x451   :  { %v2157_v42 = vpop.xlane.xlu2 %2156  ;;  %v2250_v13 = vmul.f32 %v4130_v30, %v5949_v53 }
 0x452   :  { %v4132_v40 = vpop.eup %4131  ;;  %4135 = vrcp.f32 %v2157_v42 }
 0x453   :  { %v4134_v26 = vpop.eup %4133  ;;  %v2160_v41 = vpop.xlane.xlu0 %2159  ;;  %v2271_v4 = vmul.f32 %v4132_v40, %v5953_v15 }
 0x454   :  { %v2202_v9 = vpop.xlane.xlu1 %2201  ;;  %v2256_v32 = vmul.f32 %v4134_v26, %v5951_v22 }
 0x455   :  { %4137 = vrcp.f32 %v2202_v9 }
 0x456   :  { %3778 = vmatmul.msk.f32.gmra.mxu2 %vm1283_vm5, %v2250_v13  ;;  %3784 = vmatmul.msk.f32.gmra.mxu3 %vm1283_vm5, %v2256_v32  ;;  %4139 = vrcp.f32 %v2160_v41 }
 0x457   :  { %3799 = vmatmul.msk.f32.gmra.mxu1 %vm1283_vm5, %v2271_v4 }
 0x458   :  { %v4136_v0 = vpop.eup %4135 }
 0x459   :  { %v2205_v52 = vpop.xlane.xlu2 %2204  ;;  %v2257_v15 = vmul.f32 %v4136_v0, %v5961_v17 }
 0x45a   :  { %4141 = vrcp.f32 %v2205_v52 }
 0x45b   :  { %v4138_v59 = vpop.eup %4137  ;;  %v2139_v49 = vpop.xlane.xlu0 %2138 }
 0x45c   :  { %v2181_v51 = vpop.xlane.xlu1 %2180  ;;  %4143 = vrcp.f32 %v2139_v49  ;;  %v2272_v53 = vmul.f32 %v4138_v59, %v5963_v45  ;;  %v4140_v22 = vpop.eup %4139 }
 0x45d   :  { %4145 = vrcp.f32 %v2181_v51  ;;  %v2258_v17 = vmul.f32 %v4140_v22, %v5965_v7 }
 0x45e   :  { %3785 = vmatmul.msk.f32.gmra.mxu3 %vm1283_vm5, %v2257_v15 }
 0x45f   :  { %3800 = vmatmul.msk.f32.gmra.mxu1 %vm1283_vm5, %v2272_v53 }
 0x460   :  { %v4142_v56 = vpop.eup %4141 }
 0x461   :  { %v2184_v48 = vpop.xlane.xlu2 %2183  ;;  %v2273_v46 = vmul.f32 %v4142_v56, %v5973_v50  ;;  %v2600_v50 = vld [vmem:[#allocation2] sm:$0xff] }
 0x462   :  { %v4144_v27 = vpop.eup %4143  ;;  %4147 = vrcp.f32 %v2184_v48 }
 0x463   :  { %v4146_v33 = vpop.eup %4145  ;;  %v2208_v44 = vpop.xlane.xlu0 %2207  ;;  %v2251_v3 = vmul.f32 %v4144_v27, %v5977_v47 }
 0x464   :  { %v2163_v19 = vpop.xlane.xlu1 %2162  ;;  %4149 = vrcp.f32 %v2208_v44  ;;  %v2265_v45 = vmul.f32 %v4146_v33, %v5975_v12 }
 0x465   :  { %4151 = vrcp.f32 %v2163_v19  ;;  %3779 = vmatmul.msk.f32.gmra.mxu2 %vm1283_vm5, %v2251_v3 }
 0x466   :  { %3786 = vmatmul.msk.f32.gmra.mxu3 %vm1283_vm5, %v2258_v17  ;;  %3793 = vmatmul.msk.f32.gmra.mxu0 %vm1283_vm5, %v2265_v45 }
 0x467   :  { %3801 = vmatmul.msk.f32.gmra.mxu1 %vm1283_vm5, %v2273_v46 }
 0x468   :  { %v4148_v63 = vpop.eup %4147 }
 0x469   :  { %v2211_v38 = vpop.xlane.xlu2 %2210  ;;  %v2266_v5 = vmul.f32 %v4148_v63, %v5985_v61  ;;  %v2602_v61 = vld [vmem:[#allocation2 + $0x10] sm:$0xff] }
 0x46a   :  { %v4150_v10 = vpop.eup %4149  ;;  %4153 = vrcp.f32 %v2211_v38 }
 0x46b   :  { %v4152_v47 = vpop.eup %4151  ;;  %v2274_v7 = vmul.f32 %v4150_v10, %v5989_v54 }
 0x46c   :  { %v2187_v29 = vpop.xlane.xlu1 %2186  ;;  %v2259_v12 = vmul.f32 %v4152_v47, %v5987_v43  ;;  %v2603_v43 = vld [vmem:[#allocation2 + $0x18] sm:$0xff] }
 0x46d   :  { %4155 = vrcp.f32 %v2187_v29  ;;  %3808 = vmatmul.msk.f32.vlgmr.msra.gmra.mxu2 %vm73_vm0, %v2600_v50 }
 0x46e   :  { %3787 = vmatmul.msk.f32.gmra.mxu3 %vm1283_vm5, %v2259_v12  ;;  %3794 = vmatmul.msk.f32.gmra.mxu0 %vm1283_vm5, %v2266_v5 }
 0x46f   :  { %3802 = vmatmul.msk.f32.gmra.mxu1 %vm1283_vm5, %v2274_v7 }
 0x470   :  { %v4154_v11 = vpop.eup %4153 }
 0x471   :  { %v2275_v54 = vmul.f32 %v4154_v11, %v5997_v8  ;;  %v2607_v8 = vld [vmem:[#allocation2 + $0x38] sm:$0xff] }
 0x473   :  { %v4156_v2 = vpop.eup %4155 }
 0x474   :  { %v2267_v1 = vmul.f32 %v4156_v2, %v5999_v18  ;;  %v2606_v18 = vld [vmem:[#allocation2 + $0x30] sm:$0xff] }
 0x475   :  { %3809 = vmatmul.msk.f32.gmra.mxu2 %vm73_vm0, %v2601_v60 }
 0x476   :  { %3795 = vmatmul.msk.f32.gmra.mxu0 %vm1283_vm5, %v2267_v1 }
 0x477   :  { %3803 = vmatmul.msk.f32.gmra.mxu1 %vm1283_vm5, %v2275_v54 }
 0x47d   :  { %3810 = vmatmul.msk.f32.gmra.mxu2 %vm73_vm0, %v2602_v61 }
 0x485   :  { %3811 = vmatmul.msk.f32.gmra.mxu2 %vm73_vm0, %v2603_v43 }
 0x48d   :  { %3812 = vmatmul.msk.f32.gmra.mxu2 %vm73_vm0, %v2604_v24 }
 0x495   :  { %3813 = vmatmul.msk.f32.gmra.mxu2 %vm73_vm0, %v2605_v37 }
 0x496   :  { %v2317_v62 = vpop.f32.mrf.mxu2 }
 0x497   :  { %v2536_v31 = vsel %vm73_vm0, %v2317_v62, 0.0 }
 0x49a   :  { %v2447_v55 = vpop.f32.mrf.mxu0 }
 0x49b   :  { %v2539_v21 = vsel %vm73_vm0, %v2447_v55, 0.0 }
 0x49d   :  { %3814 = vmatmul.msk.f32.gmra.mxu2 %vm73_vm0, %v2606_v18 }
 0x4a2   :  { %v2450_v23 = vpop.f32.mrf.mxu0 }
 0x4a3   :  { %v2546_v26 = vsel %vm73_vm0, %v2450_v23, 0.0 }
 0x4a5   :  { %3815 = vmatmul.msk.f32.gmra.mxu2 %vm73_vm0, %v2607_v8 }
 0x4ab   :  { %v2453_v0 = vpop.f32.mrf.mxu0 }
 0x4ac   :  { %v2553_v15 = vsel %vm73_vm0, %v2453_v0, 0.0 }
 0x4b0   :  { %v2320_v28 = vpop.f32.mrf.mxu2 }
 0x4b1   :  { %v2543_v6 = vsel %vm73_vm0, %v2320_v28, 0.0 }
 0x4b6   :  { %v2382_v25 = vpop.f32.mrf.mxu3 }
 0x4b7   :  { %v2537_v39 = vsel %vm73_vm0, %v2382_v25, 0.0 }
 0x4b8   :  { %v2538_v34 = vadd.f32 %v2537_v39, %v2536_v31  ;;  %v2456_v44 = vpop.f32.mrf.mxu0 }
 0x4b9   :  { %v2323_v14 = vpop.f32.mrf.mxu2  ;;  %v2560_v46 = vsel %vm73_vm0, %v2456_v44, 0.0 }
 0x4ba   :  { %v2512_v20 = vpop.f32.mrf.mxu1  ;;  %v2540_v36 = vadd.f32 %v2539_v21, %v2538_v34  ;;  %v2550_v59 = vsel %vm73_vm0, %v2323_v14, 0.0 }
 0x4bb   :  { %v2541_v35 = vsel %vm73_vm0, %v2512_v20, 0.0 }
 0x4bc   :  { %v2542_v58 = vadd.f32 %v2541_v35, %v2540_v36 }
 0x4be   :  { %2592 = vst.msk [vmem:[#allocation2 + $0x40] sm:$0xff] %vm73_vm0, %v2542_v58 }
 0x4c1   :  { %v2385_v57 = vpop.f32.mrf.mxu3  ;;  %v2326_v30 = vpop.f32.mrf.mxu2 }
 0x4c2   :  { %v2544_v42 = vsel %vm73_vm0, %v2385_v57, 0.0  ;;  %v2557_v3 = vsel %vm73_vm0, %v2326_v30, 0.0 }
 0x4c3   :  { %v2545_v40 = vadd.f32 %v2544_v42, %v2543_v6 }
 0x4c4   :  { %v2515_v41 = vpop.f32.mrf.mxu1 }
 0x4c5   :  { %v2547_v9 = vadd.f32 %v2546_v26, %v2545_v40  ;;  %v2608_v4 = vld [vmem:[#allocation2 + $0x40] sm:$0xff]  ;;  %v2548_v13 = vsel %vm73_vm0, %v2515_v41, 0.0 }
 0x4c6   :  { %3816 = vmatmul.msk.f32.gmra.mxu2 %vm73_vm0, %v2608_v4  ;;  %v6130_v40 = vld [vmem:[%s6651_s2 + $0x7] ss:$0 sm:$0xff] }
 0x4c7   :  { %v2549_v32 = vadd.f32 %v2548_v13, %v2547_v9 }
 0x4c9   :  { %2593 = vst.msk [vmem:[#allocation2 + $0x48] sm:$0xff] %vm73_vm0, %v2549_v32  ;;  %v2388_v52 = vpop.f32.mrf.mxu3  ;;  %v2329_v53 = vpop.f32.mrf.mxu2 }
 0x4ca   :  { %v2551_v49 = vsel %vm73_vm0, %v2388_v52, 0.0  ;;  %v2459_v12 = vpop.f32.mrf.mxu0  ;;  %v2564_v50 = vsel %vm73_vm0, %v2329_v53, 0.0 }
 0x4cb   :  { %v2552_v51 = vadd.f32 %v2551_v49, %v2550_v59  ;;  %v2567_v1 = vsel %vm73_vm0, %v2459_v12, 0.0  ;;  %v4255_v49 = vld [vmem:[%s6649_s0] sm:$0xff] }
 0x4cc   :  { %v2518_v22 = vpop.f32.mrf.mxu1 }
 0x4cd   :  { %v2554_v56 = vadd.f32 %v2553_v15, %v2552_v51  ;;  %v2555_v48 = vsel %vm73_vm0, %v2518_v22, 0.0 }
 0x4cf   :  { %v2556_v27 = vadd.f32 %v2555_v48, %v2554_v56 }
 0x4d0   :  { %v2609_v33 = vld [vmem:[#allocation2 + $0x48] sm:$0xff] }
 0x4d1   :  { %2594 = vst.msk [vmem:[#allocation2 + $0x50] sm:$0xff] %vm73_vm0, %v2556_v27  ;;  %v2391_v19 = vpop.f32.mrf.mxu3  ;;  %3817 = vmatmul.msk.f32.gmra.mxu2 %vm73_vm0, %v2609_v33  ;;  %v2332_v10 = vpop.f32.mrf.mxu2 }
 0x4d2   :  { %v2558_v17 = vsel %vm73_vm0, %v2391_v19, 0.0  ;;  %v2571_v8 = vsel %vm73_vm0, %v2332_v10, 0.0 }
 0x4d3   :  { %v2559_v45 = vadd.f32 %v2558_v17, %v2557_v3 }
 0x4d4   :  { %v2521_v63 = vpop.f32.mrf.mxu1 }
 0x4d5   :  { %v2561_v38 = vadd.f32 %v2560_v46, %v2559_v45  ;;  %v2562_v47 = vsel %vm73_vm0, %v2521_v63, 0.0  ;;  %v4256_v46 = vld [vmem:[%s6649_s0 + $0x8] sm:$0xff] }
 0x4d7   :  { %v2563_v29 = vadd.f32 %v2562_v47, %v2561_v38 }
 0x4d8   :  { %v2610_v7 = vld [vmem:[#allocation2 + $0x50] sm:$0xff] }
 0x4d9   :  { %2595 = vst.msk [vmem:[#allocation2 + $0x58] sm:$0xff] %vm73_vm0, %v2563_v29  ;;  %v2394_v5 = vpop.f32.mrf.mxu3  ;;  %3818 = vmatmul.msk.f32.gmra.mxu2 %vm73_vm0, %v2610_v7  ;;  %v2335_v24 = vpop.f32.mrf.mxu2 }
 0x4da   :  { %v2565_v11 = vsel %vm73_vm0, %v2394_v5, 0.0  ;;  %v2578_v35 = vsel %vm73_vm0, %v2335_v24, 0.0  ;;  %v4257_v5 = vld [vmem:[%s6649_s0 + $0x10] sm:$0xff] }
 0x4db   :  { %v2566_v2 = vadd.f32 %v2565_v11, %v2564_v50 }
 0x4dc   :  { %v2524_v60 = vpop.f32.mrf.mxu1 }
 0x4dd   :  { %v2568_v54 = vadd.f32 %v2567_v1, %v2566_v2  ;;  %v2569_v61 = vsel %vm73_vm0, %v2524_v60, 0.0 }
 0x4df   :  { %v2570_v43 = vadd.f32 %v2569_v61, %v2568_v54  ;;  %v4258_v61 = vld [vmem:[%s6649_s0 + $0x18] sm:$0xff] }
 0x4e0   :  { %v2611_v37 = vld [vmem:[#allocation2 + $0x58] sm:$0xff] }
 0x4e1   :  { %2596 = vst.msk [vmem:[#allocation2 + $0x60] sm:$0xff] %vm73_vm0, %v2570_v43  ;;  %v2397_v18 = vpop.f32.mrf.mxu3  ;;  %3819 = vmatmul.msk.f32.gmra.mxu2 %vm73_vm0, %v2611_v37 }
 0x4e2   :  { %v2572_v62 = vsel %vm73_vm0, %v2397_v18, 0.0 }
 0x4e3   :  { %v2573_v28 = vadd.f32 %v2572_v62, %v2571_v8  ;;  %v2462_v55 = vpop.f32.mrf.mxu0 }
 0x4e4   :  { %v2574_v25 = vsel %vm73_vm0, %v2462_v55, 0.0  ;;  %v2527_v31 = vpop.f32.mrf.mxu1 }
 0x4e5   :  { %v2575_v39 = vadd.f32 %v2574_v25, %v2573_v28  ;;  %v2576_v34 = vsel %vm73_vm0, %v2527_v31, 0.0  ;;  %v4259_v28 = vld [vmem:[%s6649_s0 + $0x20] sm:$0xff] }
 0x4e7   :  { %v2577_v21 = vadd.f32 %v2576_v34, %v2575_v39 }
 0x4e8   :  { %v2338_v14 = vpop.f32.mrf.mxu2  ;;  %v2612_v20 = vld [vmem:[#allocation2 + $0x60] sm:$0xff] }
 0x4e9   :  { %2597 = vst.msk [vmem:[#allocation2 + $0x68] sm:$0xff] %vm73_vm0, %v2577_v21  ;;  %v2400_v36 = vpop.f32.mrf.mxu3  ;;  %3820 = vmatmul.msk.f32.gmra.mxu2 %vm73_vm0, %v2612_v20  ;;  %v2585_v0 = vsel %vm73_vm0, %v2338_v14, 0.0  ;;  %v4260_v14 = vld [vmem:[%s6649_s0 + $0x28] sm:$0xff] }
 0x4ea   :  { %v2579_v58 = vsel %vm73_vm0, %v2400_v36, 0.0 }
 0x4eb   :  { %v2580_v23 = vadd.f32 %v2579_v58, %v2578_v35  ;;  %v2465_v57 = vpop.f32.mrf.mxu0 }
 0x4ec   :  { %v2581_v6 = vsel %vm73_vm0, %v2465_v57, 0.0  ;;  %v2530_v30 = vpop.f32.mrf.mxu1 }
 0x4ed   :  { %v2582_v42 = vadd.f32 %v2581_v6, %v2580_v23  ;;  %v2583_v26 = vsel %vm73_vm0, %v2530_v30, 0.0  ;;  %v4261_v6 = vld [vmem:[%s6649_s0 + $0x30] sm:$0xff] }
 0x4ef   :  { %v2584_v41 = vadd.f32 %v2583_v26, %v2582_v42 }
 0x4f0   :  { %v2688_v9 = vpop.f32.mrf.mxu2  ;;  %v2613_v4 = vld [vmem:[#allocation2 + $0x68] sm:$0xff] }
 0x4f1   :  { %2598 = vst.msk [vmem:[#allocation2 + $0x70] sm:$0xff] %vm73_vm0, %v2584_v41  ;;  %v2403_v13 = vpop.f32.mrf.mxu3  ;;  %v2689_v32 = vadd.f32 %v6130_v40, %v2688_v9  ;;  %3821 = vmatmul.msk.f32.gmra.mxu2 %vm73_vm0, %v2613_v4 }
 0x4f2   :  { %v2586_v52 = vsel %vm73_vm0, %v2403_v13, 0.0  ;;  %v4262_v13 = vld [vmem:[%s6649_s0 + $0x38] sm:$0xff] }
 0x4f3   :  { %v2587_v59 = vadd.f32 %v2586_v52, %v2585_v0  ;;  %v6141_v51 = vadd.f32 %v4255_v49, %v2689_v32  ;;  %v2468_v15 = vpop.f32.mrf.mxu0 }
 0x4f4   :  { %v2588_v53 = vsel %vm73_vm0, %v2468_v15, 0.0  ;;  %v2533_v22 = vpop.f32.mrf.mxu1 }
 0x4f5   :  { %v2589_v56 = vadd.f32 %v2588_v53, %v2587_v59  ;;  %v2754_v48 = vsel %vm73_vm0, %v6141_v51, 0.0  ;;  %v2818_v27 = vmul.f32 %v6141_v51, %v6141_v51  ;;  %v2590_v33 = vsel %vm73_vm0, %v2533_v22, 0.0  ;;  %v4263_v53 = vld [vmem:[%s6649_s0 + $0x40] sm:$0xff] }
 0x4f6   :  { %2755 = vadd.xlane.f32.xlu0 %v2754_v48 }
 0x4f7   :  { %v2591_v44 = vadd.f32 %v2590_v33, %v2589_v56  ;;  %v2834_v19 = vsel %vm73_vm0, %v2818_v27, 0.0 }
 0x4f8   :  { %v2691_v3 = vpop.f32.mrf.mxu2  ;;  %2835 = vadd.xlane.f32.xlu1 %v2834_v19  ;;  %v2614_v17 = vld [vmem:[#allocation2 + $0x70] sm:$0xff]  ;;  %v4264_v19 = vld [vmem:[%s6649_s0 + $0x48] sm:$0xff] }
 0x4f9   :  { %2599 = vst.msk [vmem:[#allocation2 + $0x78] sm:$0xff] %vm73_vm0, %v2591_v44  ;;  %v2692_v45 = vadd.f32 %v6130_v40, %v2691_v3  ;;  %3822 = vmatmul.msk.f32.gmra.mxu2 %vm73_vm0, %v2614_v17 }
 0x4fb   :  { %v6156_v63 = vadd.f32 %v4256_v46, %v2692_v45 }
 0x4fd   :  { %v2757_v38 = vsel %vm73_vm0, %v6156_v63, 0.0  ;;  %v2819_v10 = vmul.f32 %v6156_v63, %v6156_v63 }
 0x4fe   :  { %2758 = vadd.xlane.f32.xlu2 %v2757_v38 }
 0x4ff   :  { %v2837_v47 = vsel %vm73_vm0, %v2819_v10, 0.0 }
 0x500   :  { %v2694_v29 = vpop.f32.mrf.mxu2  ;;  %2838 = vadd.xlane.f32.xlu0 %v2837_v47  ;;  %v2615_v7 = vld [vmem:[#allocation2 + $0x78] sm:$0xff]  ;;  %v4265_v47 = vld [vmem:[%s6649_s0 + $0x50] sm:$0xff] }
 0x501   :  { %v2695_v12 = vadd.f32 %v6130_v40, %v2694_v29  ;;  %3823 = vmatmul.msk.f32.gmra.mxu2 %vm73_vm0, %v2615_v7 }
 0x503   :  { %v6168_v50 = vadd.f32 %v4257_v5, %v2695_v12 }
 0x505   :  { %v2760_v11 = vsel %vm73_vm0, %v6168_v50, 0.0  ;;  %v2820_v2 = vmul.f32 %v6168_v50, %v6168_v50 }
 0x506   :  { %2761 = vadd.xlane.f32.xlu1 %v2760_v11 }
 0x507   :  { %v2840_v1 = vsel %vm73_vm0, %v2820_v2, 0.0 }
 0x508   :  { %v2697_v60 = vpop.f32.mrf.mxu2  ;;  %2841 = vadd.xlane.f32.xlu2 %v2840_v1  ;;  %v3175_v1 = vld [vmem:[%s6653_s4 + $0x18] sm:$0xff] }
 0x509   :  { %v2698_v54 = vadd.f32 %v6130_v40, %v2697_v60  ;;  %3238 = vmatpush.msrb.mxu3 %v3175_v1  ;;  %v4266_v60 = vld [vmem:[%s6649_s0 + $0x58] sm:$0xff] }
 0x50b   :  { %v6179_v43 = vadd.f32 %v4258_v61, %v2698_v54  ;;  %v3174_v61 = vld [vmem:[%s6653_s4 + $0x10] sm:$0xff] }
 0x50c   :  { %3239 = vmatpush.msrb.mxu3 %v3174_v61 }
 0x50d   :  { %v2763_v24 = vsel %vm73_vm0, %v6179_v43, 0.0  ;;  %v2821_v37 = vmul.f32 %v6179_v43, %v6179_v43 }
 0x50e   :  { %2764 = vadd.xlane.f32.xlu0 %v2763_v24 }
 0x50f   :  { %v2843_v18 = vsel %vm73_vm0, %v2821_v37, 0.0 }
 0x510   :  { %v2700_v8 = vpop.f32.mrf.mxu2  ;;  %2844 = vadd.xlane.f32.xlu1 %v2843_v18 }
 0x511   :  { %v2701_v62 = vadd.f32 %v6130_v40, %v2700_v8  ;;  %v3173_v8 = vld [vmem:[%s6653_s4 + $0x8] sm:$0xff] }
 0x512   :  { %3240 = vmatpush.msrb.mxu3 %v3173_v8 }
 0x513   :  { %v6190_v55 = vadd.f32 %v4259_v28, %v2701_v62 }
 0x515   :  { %v2766_v25 = vsel %vm73_vm0, %v6190_v55, 0.0  ;;  %v2822_v31 = vmul.f32 %v6190_v55, %v6190_v55 }
 0x516   :  { %2767 = vadd.xlane.f32.xlu2 %v2766_v25 }
 0x517   :  { %v2846_v39 = vsel %vm73_vm0, %v2822_v31, 0.0  ;;  %v3172_v31 = vld [vmem:[%s6653_s4] sm:$0xff] }
 0x518   :  { %v2703_v34 = vpop.f32.mrf.mxu2  ;;  %2847 = vadd.xlane.f32.xlu0 %v2846_v39  ;;  %3241 = vmatpush.msrb.mxu3 %v3172_v31 }
 0x519   :  { %v2704_v21 = vadd.f32 %v6130_v40, %v2703_v34 }
 0x51b   :  { %v6201_v20 = vadd.f32 %v4260_v14, %v2704_v21 }
 0x51d   :  { %v2769_v36 = vsel %vm73_vm0, %v6201_v20, 0.0  ;;  %v2823_v35 = vmul.f32 %v6201_v20, %v6201_v20 }
 0x51e   :  { %2770 = vadd.xlane.f32.xlu1 %v2769_v36 }
 0x51f   :  { %v2849_v58 = vsel %vm73_vm0, %v2823_v35, 0.0  ;;  %v4267_v35 = vld [vmem:[%s6649_s0 + $0x60] sm:$0xff] }
 0x520   :  { %v2706_v23 = vpop.f32.mrf.mxu2  ;;  %2850 = vadd.xlane.f32.xlu2 %v2849_v58 }
 0x521   :  { %v2707_v57 = vadd.f32 %v6130_v40, %v2706_v23 }
 0x523   :  { %v6212_v30 = vadd.f32 %v4261_v6, %v2707_v57 }
 0x525   :  { %v2772_v42 = vsel %vm73_vm0, %v6212_v30, 0.0  ;;  %v2824_v26 = vmul.f32 %v6212_v30, %v6212_v30 }
 0x526   :  { %2773 = vadd.xlane.f32.xlu0 %v2772_v42 }
 0x527   :  { %v2852_v41 = vsel %vm73_vm0, %v2824_v26, 0.0 }
 0x528   :  { %v2709_v9 = vpop.f32.mrf.mxu2  ;;  %2853 = vadd.xlane.f32.xlu1 %v2852_v41 }
 0x529   :  { %v2710_v4 = vadd.f32 %v6130_v40, %v2709_v9 }
 0x52b   :  { %v6223_v32 = vadd.f32 %v4262_v13, %v2710_v4 }
 0x52d   :  { %v2775_v0 = vsel %vm73_vm0, %v6223_v32, 0.0  ;;  %v2825_v52 = vmul.f32 %v6223_v32, %v6223_v32 }
 0x52e   :  { %2776 = vadd.xlane.f32.xlu2 %v2775_v0 }
 0x52f   :  { %v2855_v59 = vsel %vm73_vm0, %v2825_v52, 0.0 }
 0x530   :  { %2856 = vadd.xlane.f32.xlu0 %v2855_v59 }
 0x549   :  { %v2712_v49 = vpop.f32.mrf.mxu2 }
 0x54a   :  { %v2713_v15 = vadd.f32 %v6130_v40, %v2712_v49  ;;  %v4268_v49 = vld [vmem:[%s6649_s0 + $0x68] sm:$0xff] }
 0x54c   :  { %v6234_v22 = vadd.f32 %v4263_v53, %v2713_v15 }
 0x54e   :  { %v2778_v56 = vsel %vm73_vm0, %v6234_v22, 0.0  ;;  %v2826_v48 = vmul.f32 %v6234_v22, %v6234_v22 }
 0x54f   :  { %2779 = vadd.xlane.f32.xlu1 %v2778_v56 }
 0x550   :  { %v2858_v27 = vsel %vm73_vm0, %v2826_v48, 0.0 }
 0x551   :  { %2859 = vadd.xlane.f32.xlu2 %v2858_v27 }
 0x554   :  { %v2715_v33 = vpop.f32.mrf.mxu2 }
 0x555   :  { %v2716_v44 = vadd.f32 %v6130_v40, %v2715_v33 }
 0x557   :  { %v6245_v3 = vadd.f32 %v4264_v19, %v2716_v44 }
 0x559   :  { %v2781_v17 = vsel %vm73_vm0, %v6245_v3, 0.0  ;;  %v2827_v45 = vmul.f32 %v6245_v3, %v6245_v3 }
 0x55a   :  { %2782 = vadd.xlane.f32.xlu0 %v2781_v17 }
 0x55b   :  { %v2861_v46 = vsel %vm73_vm0, %v2827_v45, 0.0 }
 0x55c   :  { %v2718_v38 = vpop.f32.mrf.mxu2  ;;  %2862 = vadd.xlane.f32.xlu1 %v2861_v46 }
 0x55d   :  { %v2719_v10 = vadd.f32 %v6130_v40, %v2718_v38 }
 0x55f   :  { %v6256_v29 = vadd.f32 %v4265_v47, %v2719_v10 }
 0x561   :  { %v2784_v7 = vsel %vm73_vm0, %v6256_v29, 0.0  ;;  %v2828_v12 = vmul.f32 %v6256_v29, %v6256_v29 }
 0x562   :  { %2785 = vadd.xlane.f32.xlu2 %v2784_v7 }
 0x563   :  { %v2864_v5 = vsel %vm73_vm0, %v2828_v12, 0.0 }
 0x564   :  { %v2721_v11 = vpop.f32.mrf.mxu2  ;;  %2865 = vadd.xlane.f32.xlu0 %v2864_v5 }
 0x565   :  { %v2722_v2 = vadd.f32 %v6130_v40, %v2721_v11 }
 0x567   :  { %v6270_v54 = vadd.f32 %v4266_v60, %v2722_v2  ;;  %v4269_v2 = vld [vmem:[%s6649_s0 + $0x70] sm:$0xff] }
 0x569   :  { %v2787_v24 = vsel %vm73_vm0, %v6270_v54, 0.0  ;;  %v2756_v37 = vpop.xlane.xlu0 %2755  ;;  %v2829_v18 = vmul.f32 %v6270_v54, %v6270_v54 }
 0x56a   :  { %2788 = vadd.xlane.f32.xlu1 %v2787_v24  ;;  %v6283_v62 = vmul.f32 %v2756_v37, %v4535_v16 }
 0x56b   :  { %v2867_v28 = vsel %vm73_vm0, %v2829_v18, 0.0  ;;  %v2836_v25 = vpop.xlane.xlu1 %2835 }
 0x56c   :  { %v2898_v39 = vmul.f32 %v6283_v62, %v6283_v62  ;;  %2868 = vadd.xlane.f32.xlu2 %v2867_v28  ;;  %v2724_v34 = vpop.f32.mrf.mxu2  ;;  %v2882_v21 = vmul.f32 %v2836_v25, %v4535_v16  ;;  %v2930_v28 = vsub.f32 %v6141_v51, %v6283_v62  ;;  %v6341_v25 = vld [vmem:[%s6651_s2 + $0x2] ss:$0 sm:$0xff]  ;;  %v6352_v62 = vld [vmem:[%s6651_s2 + $0x3] ss:$0 sm:$0xff] }
 0x56d   :  { %v2725_v14 = vadd.f32 %v6130_v40, %v2724_v34 }
 0x56e   :  { %v2914_v36 = vsub.f32 %v2882_v21, %v2898_v39 }
 0x56f   :  { %v6296_v58 = vadd.f32 %v4267_v35, %v2725_v14 }
 0x570   :  { %v2946_v23 = vadd.f32 1e-05, %v2914_v36 }
 0x571   :  { %v2759_v57 = vpop.xlane.xlu2 %2758  ;;  %v2790_v6 = vsel %vm73_vm0, %v6296_v58, 0.0  ;;  %v2830_v42 = vmul.f32 %v6296_v58, %v6296_v58 }
 0x572   :  { %4157 = vrsqrt.f32 %v2946_v23  ;;  %v6303_v26 = vmul.f32 %v2759_v57, %v4535_v16  ;;  %2791 = vadd.xlane.f32.xlu0 %v2790_v6  ;;  %vm2968_vm7 = vweird.f32 %v2946_v23 }
 0x573   :  { %v2839_v41 = vpop.xlane.xlu0 %2838  ;;  %v2870_v9 = vsel %vm73_vm0, %v2830_v42, 0.0 }
 0x574   :  { %v2899_v4 = vmul.f32 %v6303_v26, %v6303_v26  ;;  %v2883_v13 = vmul.f32 %v2839_v41, %v4535_v16  ;;  %2871 = vadd.xlane.f32.xlu1 %v2870_v9  ;;  %v2727_v0 = vpop.f32.mrf.mxu2 }
 0x575   :  { %v2728_v52 = vadd.f32 %v6130_v40, %v2727_v0 }
 0x576   :  { %v2915_v59 = vsub.f32 %v2883_v13, %v2899_v4  ;;  %v4270_v13 = vld [vmem:[%s6649_s0 + $0x78] sm:$0xff] }
 0x577   :  { %v6313_v15 = vadd.f32 %v4268_v49, %v2728_v52 }
 0x578   :  { %v4158_v53 = vpop.eup %4157  ;;  %v2947_v56 = vadd.f32 1e-05, %v2915_v59 }
 0x579   :  { %v2963_v48 = vmul.f32 %v4158_v53, %v2946_v23  ;;  %v2793_v27 = vsel %vm73_vm0, %v6313_v15, 0.0  ;;  %v2762_v33 = vpop.xlane.xlu1 %2761  ;;  %v2831_v44 = vmul.f32 %v6313_v15, %v6313_v15  ;;  %vm2969_vm6 = vweird.f32 %v4158_v53 }
 0x57a   :  { %4159 = vrsqrt.f32 %v2947_v56  ;;  %2794 = vadd.xlane.f32.xlu2 %v2793_v27  ;;  %v6320_v19 = vmul.f32 %v2762_v33, %v4535_v16  ;;  %vm2970_vm8 = vmor %vm2968_vm7, %vm2969_vm6  ;;  %vm2978_vm10 = vweird.f32 %v2947_v56 }
 0x57b   :  { %v2964_v17 = vmul.f32 %v4158_v53, %v2963_v48  ;;  %v2842_v45 = vpop.xlane.xlu2 %2841  ;;  %v2873_v46 = vsel %vm73_vm0, %v2831_v44, 0.0 }
 0x57c   :  { %v2900_v38 = vmul.f32 %v6320_v19, %v6320_v19  ;;  %v2884_v10 = vmul.f32 %v2842_v45, %v4535_v16  ;;  %2874 = vadd.xlane.f32.xlu0 %v2873_v46  ;;  %v2730_v47 = vpop.f32.mrf.mxu2 }
 0x57d   :  { %v2965_v7 = vmul.f32 0.5, %v2964_v17  ;;  %v2731_v12 = vadd.f32 %v6130_v40, %v2730_v47 }
 0x57e   :  { %v2916_v5 = vsub.f32 %v2884_v10, %v2900_v38 }
 0x57f   :  { %v2966_v11 = vsub.f32 1.5, %v2965_v7  ;;  %v6330_v1 = vadd.f32 %v4269_v2, %v2731_v12 }
 0x580   :  { %v4160_v60 = vpop.eup %4159  ;;  %v6332_v61 = vadd.f32 1e-05, %v2916_v5 }
 0x581   :  { %v2967_v24 = vmul.f32 %v4158_v53, %v2966_v11  ;;  %v2973_v37 = vmul.f32 %v4160_v60, %v2947_v56  ;;  %v2765_v18 = vpop.xlane.xlu0 %2764  ;;  %v2796_v8 = vsel %vm73_vm0, %v6330_v1, 0.0  ;;  %v2832_v39 = vmul.f32 %v6330_v1, %v6330_v1 }
 0x582   :  { %4161 = vrsqrt.f32 %v6332_v61  ;;  %v6345_v31 = vmul.f32 %v2765_v18, %v4535_v16  ;;  %2797 = vadd.xlane.f32.xlu1 %v2796_v8  ;;  %vm2979_vm9 = vweird.f32 %v4160_v60  ;;  %v2931_v56 = vsub.f32 %v6156_v63, %v6303_v26 }
 0x583   :  { %v2971_v34 = vsel %vm2970_vm8, %v4158_v53, %v2967_v24  ;;  %v2974_v21 = vmul.f32 %v4160_v60, %v2973_v37  ;;  %v2845_v14 = vpop.xlane.xlu1 %2844  ;;  %v2876_v23 = vsel %vm73_vm0, %v2832_v39, 0.0  ;;  %vm6367_vm11 = vmor %vm2978_vm10, %vm2979_vm9  ;;  %vm2988_vm13 = vweird.f32 %v6332_v61 }
 0x584   :  { %v3122_v36 = vmul.f32 %v2971_v34, %v2930_v28  ;;  %v2901_v35 = vmul.f32 %v6345_v31, %v6345_v31  ;;  %v2733_v57 = vpop.f32.mrf.mxu2  ;;  %2877 = vadd.xlane.f32.xlu2 %v2876_v23  ;;  %v2885_v41 = vmul.f32 %v2845_v14, %v4535_v16  ;;  %v2932_v39 = vsub.f32 %v6168_v50, %v6320_v19 }
 0x585   :  { %v2975_v6 = vmul.f32 0.5, %v2974_v21  ;;  %v2734_v42 = vadd.f32 %v6130_v40, %v2733_v57 }
 0x586   :  { %v3139_v9 = vmul.f32 %v6341_v25, %v3122_v36  ;;  %v2917_v52 = vsub.f32 %v2885_v41, %v2901_v35 }
 0x587   :  { %v2976_v4 = vsub.f32 1.5, %v2975_v6  ;;  %v6363_v0 = vadd.f32 %v4270_v13, %v2734_v42 }
 0x588   :  { %v4162_v59 = vpop.eup %4161  ;;  %v3156_v49 = vadd.f32 %v6352_v62, %v3139_v9  ;;  %v2949_v48 = vadd.f32 1e-05, %v2917_v52 }
 0x589   :  { %v2977_v53 = vmul.f32 %v4160_v60, %v2976_v4  ;;  %v2983_v40 = vmul.f32 %v4162_v59, %v6332_v61  ;;  %v2768_v27 = vpop.xlane.xlu2 %2767  ;;  %v2799_v17 = vsel %vm73_vm0, %v6363_v0, 0.0  ;;  %v2833_v45 = vmul.f32 %v6363_v0, %v6363_v0 }
 0x58a   :  { %v6372_v44 = vmul.f32 %v2768_v27, %v4535_v16  ;;  %3824 = vmatmul.msk.f32.vlgmr.msrb.gmra.mxu3 %vm73_vm0, %v3156_v49  ;;  %4163 = vrsqrt.f32 %v2949_v48  ;;  %2800 = vadd.xlane.f32.xlu0 %v2799_v17  ;;  %vm2989_vm12 = vweird.f32 %v4162_v59  ;;  %vm2998_vm1 = vweird.f32 %v2949_v48 }
 0x58b   :  { %v2981_v46 = vsel %vm6367_vm11, %v4160_v60, %v2977_v53  ;;  %v2984_v38 = vmul.f32 %v4162_v59, %v2983_v40  ;;  %v2848_v10 = vpop.xlane.xlu0 %2847  ;;  %v2879_v12 = vsel %vm73_vm0, %v2833_v45, 0.0  ;;  %vm2990_vm14 = vmor %vm2988_vm13, %vm2989_vm12  ;;  %v2933_v40 = vsub.f32 %v6179_v43, %v6345_v31 }
 0x58c   :  { %v2902_v47 = vmul.f32 %v6372_v44, %v6372_v44  ;;  %v2886_v7 = vmul.f32 %v2848_v10, %v4535_v16  ;;  %2880 = vadd.xlane.f32.xlu1 %v2879_v12  ;;  %v3123_v11 = vmul.f32 %v2981_v46, %v2931_v56 }
 0x58d   :  { %v2985_v5 = vmul.f32 0.5, %v2984_v38 }
 0x58e   :  { %v2918_v2 = vsub.f32 %v2886_v7, %v2902_v47  ;;  %v3140_v26 = vmul.f32 %v6341_v25, %v3123_v11 }
 0x58f   :  { %v2986_v24 = vsub.f32 1.5, %v2985_v5 }
 0x590   :  { %v2950_v60 = vadd.f32 1e-05, %v2918_v2  ;;  %v4164_v37 = vpop.eup %4163  ;;  %v3157_v28 = vadd.f32 %v6352_v62, %v3140_v26  ;;  %v2934_v2 = vsub.f32 %v6190_v55, %v6372_v44 }
 0x591   :  { %v2987_v18 = vmul.f32 %v4162_v59, %v2986_v24  ;;  %v2771_v8 = vpop.xlane.xlu1 %2770  ;;  %v2993_v34 = vmul.f32 %v4164_v37, %v2949_v48  ;;  %vm2999_vm15 = vweird.f32 %v4164_v37 }
 0x592   :  { %4165 = vrsqrt.f32 %v2950_v60  ;;  %v6393_v14 = vmul.f32 %v2771_v8, %v4535_v16  ;;  %3825 = vmatmul.msk.f32.gmra.mxu3 %vm73_vm0, %v3157_v28  ;;  %vm3000_vm2 = vmor %vm2998_vm1, %vm2999_vm15  ;;  %vm3008_vm4 = vweird.f32 %v2950_v60 }
 0x593   :  { %v2991_v21 = vsel %vm2990_vm14, %v4162_v59, %v2987_v18  ;;  %v2851_v36 = vpop.xlane.xlu2 %2850  ;;  %v2994_v35 = vmul.f32 %v4164_v37, %v2993_v34 }
 0x594   :  { %v2887_v23 = vmul.f32 %v2851_v36, %v4535_v16  ;;  %v3124_v61 = vmul.f32 %v2991_v21, %v2932_v39  ;;  %v2903_v57 = vmul.f32 %v6393_v14, %v6393_v14 }
 0x595   :  { %v2995_v6 = vmul.f32 0.5, %v2994_v35 }
 0x596   :  { %v3141_v19 = vmul.f32 %v6341_v25, %v3124_v61  ;;  %v2919_v42 = vsub.f32 %v2887_v23, %v2903_v57 }
 0x597   :  { %v2996_v9 = vsub.f32 1.5, %v2995_v6 }
 0x598   :  { %v4166_v41 = vpop.eup %4165  ;;  %v3158_v4 = vadd.f32 %v6352_v62, %v3141_v19  ;;  %v2951_v52 = vadd.f32 1e-05, %v2919_v42  ;;  %v2935_v19 = vsub.f32 %v6201_v20, %v6393_v14 }
 0x599   :  { %v3003_v13 = vmul.f32 %v4166_v41, %v2950_v60  ;;  %v2774_v59 = vpop.xlane.xlu0 %2773  ;;  %v2997_v49 = vmul.f32 %v4164_v37, %v2996_v9  ;;  %vm3009_vm3 = vweird.f32 %v4166_v41 }
 0x59a   :  { %v6402_v53 = vmul.f32 %v2774_v59, %v4535_v16  ;;  %4167 = vrsqrt.f32 %v2951_v52  ;;  %3826 = vmatmul.msk.f32.gmra.mxu3 %vm73_vm0, %v3158_v4  ;;  %vm3010_vm5 = vmor %vm3008_vm4, %vm3009_vm3  ;;  %vm3018_vm7 = vweird.f32 %v2951_v52 }
 0x59b   :  { %v3004_v27 = vmul.f32 %v4166_v41, %v3003_v13  ;;  %v2854_v33 = vpop.xlane.xlu1 %2853  ;;  %v3001_v17 = vsel %vm3000_vm2, %v4164_v37, %v2997_v49 }
 0x59c   :  { %v2904_v45 = vmul.f32 %v6402_v53, %v6402_v53  ;;  %v2888_v56 = vmul.f32 %v2854_v33, %v4535_v16  ;;  %v3125_v48 = vmul.f32 %v3001_v17, %v2933_v40  ;;  %v2936_v14 = vsub.f32 %v6212_v30, %v6402_v53 }
 0x59d   :  { %v3005_v46 = vmul.f32 0.5, %v3004_v27 }
 0x59e   :  { %v2920_v38 = vsub.f32 %v2888_v56, %v2904_v45  ;;  %v3142_v47 = vmul.f32 %v6341_v25, %v3125_v48 }
 0x59f   :  { %v3006_v10 = vsub.f32 1.5, %v3005_v46 }
 0x5a0   :  { %v2952_v31 = vadd.f32 1e-05, %v2920_v38  ;;  %v4168_v7 = vpop.eup %4167  ;;  %v3159_v11 = vadd.f32 %v6352_v62, %v3142_v47 }
 0x5a1   :  { %v3007_v12 = vmul.f32 %v4166_v41, %v3006_v10  ;;  %v2777_v5 = vpop.xlane.xlu2 %2776  ;;  %v3013_v24 = vmul.f32 %v4168_v7, %v2951_v52  ;;  %vm3019_vm6 = vweird.f32 %v4168_v7 }
 0x5a2   :  { %4169 = vrsqrt.f32 %v2952_v31  ;;  %v2809_v37 = vmul.f32 %v2777_v5, %v4535_v16  ;;  %3827 = vmatmul.msk.f32.gmra.mxu3 %vm73_vm0, %v3159_v11  ;;  %vm3020_vm8 = vmor %vm3018_vm7, %vm3019_vm6  ;;  %vm3028_vm10 = vweird.f32 %v2952_v31 }
 0x5a3   :  { %v3011_v26 = vsel %vm3010_vm5, %v4166_v41, %v3007_v12  ;;  %v2857_v18 = vpop.xlane.xlu0 %2856  ;;  %v3014_v8 = vmul.f32 %v4168_v7, %v3013_v24 }
 0x5a4   :  { %v2889_v28 = vmul.f32 %v2857_v18, %v4535_v16  ;;  %v3126_v39 = vmul.f32 %v3011_v26, %v2934_v2  ;;  %v2905_v60 = vmul.f32 %v2809_v37, %v2809_v37  ;;  %v2937_v47 = vsub.f32 %v6223_v32, %v2809_v37 }
 0x5a5   :  { %v3015_v34 = vmul.f32 0.5, %v3014_v8 }
 0x5a6   :  { %v3143_v21 = vmul.f32 %v6341_v25, %v3126_v39  ;;  %v2921_v36 = vsub.f32 %v2889_v28, %v2905_v60 }
 0x5a7   :  { %v3016_v44 = vsub.f32 1.5, %v3015_v34 }
 0x5a8   :  { %v4170_v35 = vpop.eup %4169  ;;  %v3160_v23 = vadd.f32 %v6352_v62, %v3143_v21  ;;  %v2953_v57 = vadd.f32 1e-05, %v2921_v36 }
 0x5a9   :  { %v3023_v61 = vmul.f32 %v4170_v35, %v2952_v31  ;;  %v3017_v6 = vmul.f32 %v4168_v7, %v3016_v44  ;;  %vm3029_vm9 = vweird.f32 %v4170_v35 }
 0x5aa   :  { %4171 = vrsqrt.f32 %v2953_v57  ;;  %3828 = vmatmul.msk.f32.gmra.mxu3 %vm73_vm0, %v3160_v23  ;;  %vm3030_vm11 = vmor %vm3028_vm10, %vm3029_vm9  ;;  %vm3038_vm13 = vweird.f32 %v2953_v57 }
 0x5ab   :  { %v3024_v42 = vmul.f32 %v4170_v35, %v3023_v61  ;;  %v3021_v41 = vsel %vm3020_vm8, %v4168_v7, %v3017_v6 }
 0x5ac   :  { %v3127_v4 = vmul.f32 %v3021_v41, %v2935_v19 }
 0x5ad   :  { %v3025_v9 = vmul.f32 0.5, %v3024_v42 }
 0x5ae   :  { %v3144_v59 = vmul.f32 %v6341_v25, %v3127_v4 }
 0x5af   :  { %v3026_v13 = vsub.f32 1.5, %v3025_v9 }
 0x5b0   :  { %v4172_v49 = vpop.eup %4171  ;;  %v3161_v52 = vadd.f32 %v6352_v62, %v3144_v59 }
 0x5b1   :  { %v3027_v40 = vmul.f32 %v4170_v35, %v3026_v13  ;;  %v3033_v27 = vmul.f32 %v4172_v49, %v2953_v57  ;;  %vm3039_vm12 = vweird.f32 %v4172_v49 }
 0x5b2   :  { %3829 = vmatmul.msk.f32.gmra.mxu3 %vm73_vm0, %v3161_v52  ;;  %vm3040_vm14 = vmor %vm3038_vm13, %vm3039_vm12 }
 0x5b3   :  { %v3031_v33 = vsel %vm3030_vm11, %v4170_v35, %v3027_v40  ;;  %v3034_v17 = vmul.f32 %v4172_v49, %v3033_v27 }
 0x5b4   :  { %v3128_v45 = vmul.f32 %v3031_v33, %v2936_v14 }
 0x5b5   :  { %v3035_v56 = vmul.f32 0.5, %v3034_v17 }
 0x5b6   :  { %v3145_v46 = vmul.f32 %v6341_v25, %v3128_v45 }
 0x5b7   :  { %v3036_v48 = vsub.f32 1.5, %v3035_v56 }
 0x5b8   :  { %v3162_v38 = vadd.f32 %v6352_v62, %v3145_v46 }
 0x5b9   :  { %v3037_v10 = vmul.f32 %v4172_v49, %v3036_v48 }
 0x5ba   :  { %3830 = vmatmul.msk.f32.gmra.mxu3 %vm73_vm0, %v3162_v38 }
 0x5bb   :  { %v3041_v53 = vsel %vm3040_vm14, %v4172_v49, %v3037_v10 }
 0x5bc   :  { %v3129_v31 = vmul.f32 %v3041_v53, %v2937_v47 }
 0x5be   :  { %v3146_v7 = vmul.f32 %v6341_v25, %v3129_v31 }
 0x5c0   :  { %v3163_v12 = vadd.f32 %v6352_v62, %v3146_v7 }
 0x5c2   :  { %v2780_v5 = vpop.xlane.xlu1 %2779  ;;  %3831 = vmatmul.msk.f32.gmra.mxu3 %vm73_vm0, %v3163_v12 }
 0x5c3   :  { %v2810_v11 = vmul.f32 %v2780_v5, %v4535_v16 }
 0x5c4   :  { %v2860_v2 = vpop.xlane.xlu2 %2859 }
 0x5c5   :  { %v2906_v24 = vmul.f32 %v2810_v11, %v2810_v11  ;;  %v2890_v26 = vmul.f32 %v2860_v2, %v4535_v16  ;;  %v2938_v59 = vsub.f32 %v6234_v22, %v2810_v11 }
 0x5c7   :  { %v2922_v18 = vsub.f32 %v2890_v26, %v2906_v24 }
 0x5c9   :  { %v2954_v37 = vadd.f32 1e-05, %v2922_v18 }
 0x5cb   :  { %4173 = vrsqrt.f32 %v2954_v37  ;;  %vm3048_vm1 = vweird.f32 %v2954_v37 }
 0x5cd   :  { %v2783_v8 = vpop.xlane.xlu0 %2782 }
 0x5ce   :  { %v2811_v28 = vmul.f32 %v2783_v8, %v4535_v16 }
 0x5cf   :  { %v2863_v39 = vpop.xlane.xlu1 %2862 }
 0x5d0   :  { %v2907_v60 = vmul.f32 %v2811_v28, %v2811_v28  ;;  %v2891_v34 = vmul.f32 %v2863_v39, %v4535_v16  ;;  %v2939_v24 = vsub.f32 %v6245_v3, %v2811_v28  ;;  %v3450_v28 = vld [vmem:[#allocation5 + $0x78] sm:$0xff] }
 0x5d1   :  { %v4174_v21 = vpop.eup %4173  ;;  %3453 = vmatpush.msrb.mxu0 %v3450_v28 }
 0x5d2   :  { %v3043_v36 = vmul.f32 %v4174_v21, %v2954_v37  ;;  %v2923_v35 = vsub.f32 %v2891_v34, %v2907_v60  ;;  %vm3049_vm15 = vweird.f32 %v4174_v21 }
 0x5d3   :  { %vm3050_vm2 = vmor %vm3048_vm1, %vm3049_vm15 }
 0x5d4   :  { %v3044_v44 = vmul.f32 %v4174_v21, %v3043_v36  ;;  %v2955_v23 = vadd.f32 1e-05, %v2923_v35 }
 0x5d5   :  { %v2786_v61 = vpop.xlane.xlu2 %2785 }
 0x5d6   :  { %v3045_v57 = vmul.f32 0.5, %v3044_v44  ;;  %4175 = vrsqrt.f32 %v2955_v23  ;;  %v6439_v6 = vmul.f32 %v2786_v61, %v4535_v16  ;;  %vm3058_vm4 = vweird.f32 %v2955_v23 }
 0x5d7   :  { %v2866_v19 = vpop.xlane.xlu0 %2865 }
 0x5d8   :  { %v3046_v42 = vsub.f32 1.5, %v3045_v57  ;;  %v2908_v41 = vmul.f32 %v6439_v6, %v6439_v6  ;;  %v2892_v9 = vmul.f32 %v2866_v19, %v4535_v16  ;;  %v3449_v19 = vld [vmem:[#allocation5 + $0x70] sm:$0xff] }
 0x5d9   :  { %3454 = vmatpush.msrb.mxu0 %v3449_v19  ;;  %v3441_v19 = vld [vmem:[#allocation5 + $0x30] sm:$0xff] }
 0x5da   :  { %v3047_v4 = vmul.f32 %v4174_v21, %v3046_v42  ;;  %v2924_v13 = vsub.f32 %v2892_v9, %v2908_v41 }
 0x5dc   :  { %v4176_v49 = vpop.eup %4175  ;;  %v3051_v40 = vsel %vm3050_vm2, %v4174_v21, %v3047_v4  ;;  %v2956_v52 = vadd.f32 1e-05, %v2924_v13  ;;  %v2940_v4 = vsub.f32 %v6256_v29, %v6439_v6  ;;  %v3447_v6 = vld [vmem:[#allocation5 + $0x60] sm:$0xff] }
 0x5dd   :  { %v3053_v14 = vmul.f32 %v4176_v49, %v2955_v23  ;;  %v2789_v27 = vpop.xlane.xlu1 %2788  ;;  %v3130_v33 = vmul.f32 %v3051_v40, %v2938_v59  ;;  %vm3059_vm3 = vweird.f32 %v4176_v49  ;;  %v3448_v59 = vld [vmem:[#allocation5 + $0x68] sm:$0xff] }
 0x5de   :  { %4177 = vrsqrt.f32 %v2956_v52  ;;  %v6446_v17 = vmul.f32 %v2789_v27, %v4535_v16  ;;  %vm3060_vm5 = vmor %vm3058_vm4, %vm3059_vm3  ;;  %vm3068_vm7 = vweird.f32 %v2956_v52  ;;  %3455 = vmatpush.msrb.mxu0 %v3448_v59 }
 0x5df   :  { %v3054_v45 = vmul.f32 %v4176_v49, %v3053_v14  ;;  %v2869_v56 = vpop.xlane.xlu2 %2868  ;;  %v3147_v46 = vmul.f32 %v6341_v25, %v3130_v33 }
 0x5e0   :  { %v2909_v48 = vmul.f32 %v6446_v17, %v6446_v17  ;;  %v2893_v38 = vmul.f32 %v2869_v56, %v4535_v16  ;;  %3456 = vmatpush.msrb.mxu0 %v3447_v6 }
 0x5e1   :  { %v3055_v10 = vmul.f32 0.5, %v3054_v45  ;;  %v3164_v47 = vadd.f32 %v6352_v62, %v3147_v46 }
 0x5e2   :  { %v2925_v53 = vsub.f32 %v2893_v38, %v2909_v48  ;;  %v3446_v48 = vld [vmem:[#allocation5 + $0x58] sm:$0xff] }
 0x5e3   :  { %v3056_v31 = vsub.f32 1.5, %v3055_v10  ;;  %3832 = vmatmul.msk.f32.gmra.mxu3 %vm73_vm0, %v3164_v47  ;;  %3457 = vmatpush.msrb.mxu0 %v3446_v48 }
 0x5e4   :  { %v4178_v7 = vpop.eup %4177  ;;  %v6454_v12 = vadd.f32 1e-05, %v2925_v53 }
 0x5e5   :  { %v3057_v5 = vmul.f32 %v4176_v49, %v3056_v31  ;;  %v3063_v11 = vmul.f32 %v4178_v7, %v2956_v52  ;;  %v2792_v2 = vpop.xlane.xlu0 %2791  ;;  %vm3069_vm6 = vweird.f32 %v4178_v7  ;;  %v3445_v31 = vld [vmem:[#allocation5 + $0x50] sm:$0xff] }
 0x5e6   :  { %4179 = vrsqrt.f32 %v6454_v12  ;;  %v6459_v26 = vmul.f32 %v2792_v2, %v4535_v16  ;;  %vm3070_vm8 = vmor %vm3068_vm7, %vm3069_vm6  ;;  %vm3078_vm10 = vweird.f32 %v6454_v12  ;;  %3458 = vmatpush.msrb.mxu0 %v3445_v31  ;;  %v2941_v2 = vsub.f32 %v6270_v54, %v6446_v17 }
 0x5e7   :  { %v3061_v18 = vsel %vm3060_vm5, %v4176_v49, %v3057_v5  ;;  %v3064_v37 = vmul.f32 %v4178_v7, %v3063_v11  ;;  %v2872_v8 = vpop.xlane.xlu1 %2871 }
 0x5e8   :  { %v2910_v39 = vmul.f32 %v6459_v26, %v6459_v26  ;;  %v2894_v60 = vmul.f32 %v2872_v8, %v4535_v16  ;;  %v3131_v34 = vmul.f32 %v3061_v18, %v2939_v24  ;;  %v3444_v18 = vld [vmem:[#allocation5 + $0x48] sm:$0xff] }
 0x5e9   :  { %v3065_v21 = vmul.f32 0.5, %v3064_v37  ;;  %3459 = vmatpush.msrb.mxu0 %v3444_v18 }
 0x5ea   :  { %v2926_v36 = vsub.f32 %v2894_v60, %v2910_v39  ;;  %v3148_v35 = vmul.f32 %v6341_v25, %v3131_v34  ;;  %v3443_v34 = vld [vmem:[#allocation5 + $0x40] sm:$0xff] }
 0x5eb   :  { %v3066_v44 = vsub.f32 1.5, %v3065_v21  ;;  %3460 = vmatpush.msrb.mxu0 %v3443_v34 }
 0x5ec   :  { %v4180_v23 = vpop.eup %4179  ;;  %v6465_v61 = vadd.f32 1e-05, %v2926_v36  ;;  %v3165_v57 = vadd.f32 %v6352_v62, %v3148_v35  ;;  %v3442_v35 = vld [vmem:[#allocation5 + $0x38] sm:$0xff] }
 0x5ed   :  { %v3067_v42 = vmul.f32 %v4178_v7, %v3066_v44  ;;  %v3073_v41 = vmul.f32 %v4180_v23, %v6454_v12  ;;  %v2795_v9 = vpop.xlane.xlu2 %2794  ;;  %vm3079_vm9 = vweird.f32 %v4180_v23  ;;  %3461 = vmatpush.msrb.mxu0 %v3442_v35 }
 0x5ee   :  { %4181 = vrsqrt.f32 %v6465_v61  ;;  %v6473_v13 = vmul.f32 %v2795_v9, %v4535_v16  ;;  %3833 = vmatmul.msk.f32.gmra.mxu3 %vm73_vm0, %v3165_v57  ;;  %vm3080_vm11 = vmor %vm3078_vm10, %vm3079_vm9  ;;  %vm3088_vm13 = vweird.f32 %v6465_v61 }
 0x5ef   :  { %v3071_v49 = vsel %vm3070_vm8, %v4178_v7, %v3067_v42  ;;  %v3074_v40 = vmul.f32 %v4180_v23, %v3073_v41  ;;  %v2875_v14 = vpop.xlane.xlu0 %2874  ;;  %3462 = vmatpush.msrb.mxu0 %v3441_v19 }
 0x5f0   :  { %v2911_v52 = vmul.f32 %v6473_v13, %v6473_v13  ;;  %v2895_v27 = vmul.f32 %v2875_v14, %v4535_v16  ;;  %v3132_v33 = vmul.f32 %v3071_v49, %v2940_v4  ;;  %v2942_v4 = vsub.f32 %v6296_v58, %v6459_v26  ;;  %v3440_v49 = vld [vmem:[#allocation5 + $0x28] sm:$0xff] }
 0x5f1   :  { %v3075_v45 = vmul.f32 0.5, %v3074_v40  ;;  %3463 = vmatpush.msrb.mxu0 %v3440_v49 }
 0x5f2   :  { %v2927_v56 = vsub.f32 %v2895_v27, %v2911_v52  ;;  %v3149_v46 = vmul.f32 %v6341_v25, %v3132_v33  ;;  %v3439_v33 = vld [vmem:[#allocation5 + $0x20] sm:$0xff] }
 0x5f3   :  { %v3076_v38 = vsub.f32 1.5, %v3075_v45  ;;  %3464 = vmatpush.msrb.mxu0 %v3439_v33 }
 0x5f4   :  { %v4182_v10 = vpop.eup %4181  ;;  %v6480_v47 = vadd.f32 1e-05, %v2927_v56  ;;  %v3166_v53 = vadd.f32 %v6352_v62, %v3149_v46  ;;  %v3438_v46 = vld [vmem:[#allocation5 + $0x18] sm:$0xff] }
 0x5f5   :  { %v3077_v7 = vmul.f32 %v4180_v23, %v3076_v38  ;;  %v3083_v5 = vmul.f32 %v4182_v10, %v6465_v61  ;;  %v2798_v11 = vpop.xlane.xlu1 %2797  ;;  %vm3089_vm12 = vweird.f32 %v4182_v10  ;;  %3465 = vmatpush.msrb.mxu0 %v3438_v46 }
 0x5f6   :  { %4183 = vrsqrt.f32 %v6480_v47  ;;  %v6489_v24 = vmul.f32 %v2798_v11, %v4535_v16  ;;  %3834 = vmatmul.msk.f32.gmra.mxu3 %vm73_vm0, %v3166_v53  ;;  %vm3090_vm14 = vmor %vm3088_vm13, %vm3089_vm12  ;;  %v3437_v53 = vld [vmem:[#allocation5 + $0x10] sm:$0xff]  ;;  %vm3098_vm1 = vweird.f32 %v6480_v47 }
 0x5f7   :  { %v3081_v37 = vsel %vm3080_vm11, %v4180_v23, %v3077_v7  ;;  %v3084_v8 = vmul.f32 %v4182_v10, %v3083_v5  ;;  %v2878_v39 = vpop.xlane.xlu2 %2877  ;;  %3466 = vmatpush.msrb.mxu0 %v3437_v53 }
 0x5f8   :  { %v2912_v12 = vmul.f32 %v6489_v24, %v6489_v24  ;;  %v3133_v60 = vmul.f32 %v3081_v37, %v2941_v2  ;;  %v2896_v17 = vmul.f32 %v2878_v39, %v4535_v16  ;;  %v3436_v2 = vld [vmem:[#allocation5 + $0x8] sm:$0xff] }
 0x5f9   :  { %v3085_v21 = vmul.f32 0.5, %v3084_v8  ;;  %3467 = vmatpush.msrb.mxu0 %v3436_v2 }
 0x5fa   :  { %v3150_v36 = vmul.f32 %v6341_v25, %v3133_v60  ;;  %v2928_v44 = vsub.f32 %v2896_v17, %v2912_v12  ;;  %v3435_v12 = vld [vmem:[#allocation5] sm:$0xff] }
 0x5fb   :  { %v3086_v28 = vsub.f32 1.5, %v3085_v21  ;;  %3468 = vmatpush.msrb.mxu0 %v3435_v12 }
 0x5fc   :  { %v4184_v23 = vpop.eup %4183  ;;  %v3167_v57 = vadd.f32 %v6352_v62, %v3150_v36  ;;  %v2960_v9 = vadd.f32 1e-05, %v2928_v44 }
 0x5fd   :  { %v3087_v42 = vmul.f32 %v4182_v10, %v3086_v28  ;;  %v3093_v41 = vmul.f32 %v4184_v23, %v6480_v47  ;;  %v2801_v59 = vpop.xlane.xlu0 %2800  ;;  %vm3099_vm15 = vweird.f32 %v4184_v23  ;;  %v6517_v47 = vld [vmem:[%s6651_s2 + $0xc] ss:$0 sm:$0xff]  ;;  %v2944_v28 = vsub.f32 %v6330_v1, %v6489_v24 }
 0x5fe   :  { %3835 = vmatmul.msk.f32.gmra.mxu3 %vm73_vm0, %v3167_v57  ;;  %4185 = vrsqrt.f32 %v2960_v9  ;;  %v6503_v52 = vmul.f32 %v2801_v59, %v4535_v16  ;;  %vm3100_vm2 = vmor %vm3098_vm1, %vm3099_vm15  ;;  %vm3108_vm4 = vweird.f32 %v2960_v9 }
 0x5ff   :  { %v3091_v40 = vsel %vm3090_vm14, %v4182_v10, %v3087_v42  ;;  %v3094_v14 = vmul.f32 %v4184_v23, %v3093_v41  ;;  %v2881_v61 = vpop.xlane.xlu1 %2880 }
 0x600   :  { %v3134_v27 = vmul.f32 %v3091_v40, %v2942_v4  ;;  %v2897_v45 = vmul.f32 %v2881_v61, %v4535_v16  ;;  %v2913_v26 = vmul.f32 %v6503_v52, %v6503_v52  ;;  %v2943_v16 = vsub.f32 %v6313_v15, %v6473_v13 }
 0x601   :  { %v3095_v6 = vmul.f32 0.5, %v3094_v14  ;;  %v2945_v33 = vsub.f32 %v6363_v0, %v6503_v52 }
 0x602   :  { %v3151_v56 = vmul.f32 %v6341_v25, %v3134_v27  ;;  %v2929_v38 = vsub.f32 %v2897_v45, %v2913_v26 }
 0x603   :  { %v3096_v48 = vsub.f32 1.5, %v3095_v6 }
 0x604   :  { %v3168_v10 = vadd.f32 %v6352_v62, %v3151_v56  ;;  %v4186_v31 = vpop.eup %4185  ;;  %v2961_v11 = vadd.f32 1e-05, %v2929_v38 }
 0x605   :  { %v3097_v7 = vmul.f32 %v4184_v23, %v3096_v48  ;;  %v3103_v5 = vmul.f32 %v4186_v31, %v2960_v9  ;;  %vm3109_vm3 = vweird.f32 %v4186_v31 }
 0x606   :  { %3836 = vmatmul.msk.f32.gmra.mxu3 %vm73_vm0, %v3168_v10  ;;  %4187 = vrsqrt.f32 %v2961_v11  ;;  %vm3110_vm5 = vmor %vm3108_vm4, %vm3109_vm3  ;;  %vm3118_vm7 = vweird.f32 %v2961_v11 }
 0x607   :  { %v3101_v18 = vsel %vm3100_vm2, %v4184_v23, %v3097_v7  ;;  %v3104_v37 = vmul.f32 %v4186_v31, %v3103_v5 }
 0x608   :  { %v3135_v8 = vmul.f32 %v3101_v18, %v2943_v16 }
 0x609   :  { %v3105_v39 = vmul.f32 0.5, %v3104_v37 }
 0x60a   :  { %v3152_v13 = vmul.f32 %v6341_v25, %v3135_v8 }
 0x60b   :  { %v3106_v60 = vsub.f32 1.5, %v3105_v39 }
 0x60c   :  { %v3169_v34 = vadd.f32 %v6352_v62, %v3152_v13  ;;  %v4188_v17 = vpop.eup %4187 }
 0x60d   :  { %v3243_v21 = vpop.f32.mrf.mxu3  ;;  %v3107_v36 = vmul.f32 %v4186_v31, %v3106_v60  ;;  %v3113_v44 = vmul.f32 %v4188_v17, %v2961_v11  ;;  %vm3119_vm6 = vweird.f32 %v4188_v17 }
 0x60e   :  { %v3244_v35 = vadd.f32 %v6517_v47, %v3243_v21  ;;  %3837 = vmatmul.msk.f32.gmra.mxu3 %vm73_vm0, %v3169_v34  ;;  %vm3120_vm8 = vmor %vm3118_vm7, %vm3119_vm6 }
 0x60f   :  { %v3111_v23 = vsel %vm3110_vm5, %v4186_v31, %v3107_v36  ;;  %v3114_v19 = vmul.f32 %v4188_v17, %v3113_v44 }
 0x610   :  { %v3291_v57 = vmul.f32 %v3244_v35, %v3244_v35  ;;  %v3136_v42 = vmul.f32 %v3111_v23, %v2944_v28 }
 0x611   :  { %v3115_v4 = vmul.f32 0.5, %v3114_v19 }
 0x612   :  { %v3307_v41 = vmul.f32 %v3291_v57, %v3244_v35  ;;  %v3153_v59 = vmul.f32 %v6341_v25, %v3136_v42 }
 0x613   :  { %v3116_v40 = vsub.f32 1.5, %v3115_v4 }
 0x614   :  { %v3323_v49 = vmul.f32 0.044715, %v3307_v41  ;;  %v3170_v9 = vadd.f32 %v6352_v62, %v3153_v59 }
 0x615   :  { %v3246_v61 = vpop.f32.mrf.mxu3  ;;  %v3117_v27 = vmul.f32 %v4188_v17, %v3116_v40 }
 0x616   :  { %v3339_v14 = vadd.f32 %v3323_v49, %v3244_v35  ;;  %v3247_v24 = vadd.f32 %v6517_v47, %v3246_v61  ;;  %3838 = vmatmul.msk.f32.gmra.mxu3 %vm73_vm0, %v3170_v9 }
 0x617   :  { %v3121_v45 = vsel %vm3120_vm8, %v4188_v17, %v3117_v27 }
 0x618   :  { %v3355_v6 = vmul.f32 0.7978846, %v3339_v14  ;;  %v3292_v26 = vmul.f32 %v3247_v24, %v3247_v24  ;;  %v3137_v56 = vmul.f32 %v3121_v45, %v2945_v33 }
 0x61a   :  { %4189 = vtanh.f32 %v3355_v6  ;;  %v3308_v46 = vmul.f32 %v3292_v26, %v3247_v24  ;;  %v3154_v48 = vmul.f32 %v6341_v25, %v3137_v56 }
 0x61c   :  { %v3324_v38 = vmul.f32 0.044715, %v3308_v46  ;;  %v3171_v53 = vadd.f32 %v6352_v62, %v3154_v48 }
 0x61d   :  { %v3249_v10 = vpop.f32.mrf.mxu3 }
 0x61e   :  { %v3340_v31 = vadd.f32 %v3324_v38, %v3247_v24  ;;  %v3250_v7 = vadd.f32 %v6517_v47, %v3249_v10  ;;  %3839 = vmatmul.msk.f32.gmra.mxu3 %vm73_vm0, %v3171_v53 }
 0x620   :  { %v4190_v16 = vpop.eup %4189  ;;  %v3293_v5 = vmul.f32 %v3250_v7, %v3250_v7  ;;  %v3356_v11 = vmul.f32 0.7978846, %v3340_v31 }
 0x621   :  { %v3387_v52 = vadd.f32 1.0, %v4190_v16 }
 0x622   :  { %v3309_v18 = vmul.f32 %v3293_v5, %v3250_v7  ;;  %4191 = vtanh.f32 %v3356_v11 }
 0x623   :  { %v3403_v2 = vmul.f32 0.5, %v3387_v52 }
 0x624   :  { %v3325_v8 = vmul.f32 0.044715, %v3309_v18 }
 0x625   :  { %v3419_v37 = vmul.f32 %v3403_v2, %v3244_v35  ;;  %v3252_v12 = vpop.f32.mrf.mxu3 }
 0x626   :  { %v3341_v25 = vadd.f32 %v3325_v8, %v3250_v7  ;;  %v3253_v39 = vadd.f32 %v6517_v47, %v3252_v12 }
 0x627   :  { %3469 = vmatmul.f32.vlgmr.msrb.gmra.mxu0 %v3419_v37 }
 0x628   :  { %v4192_v62 = vpop.eup %4191  ;;  %v3294_v13 = vmul.f32 %v3253_v39, %v3253_v39  ;;  %v3357_v60 = vmul.f32 0.7978846, %v3341_v25 }
 0x629   :  { %v3388_v34 = vadd.f32 1.0, %v4192_v62 }
 0x62a   :  { %v3310_v21 = vmul.f32 %v3294_v13, %v3253_v39  ;;  %4193 = vtanh.f32 %v3357_v60 }
 0x62b   :  { %v3404_v17 = vmul.f32 0.5, %v3388_v34 }
 0x62c   :  { %v3326_v36 = vmul.f32 0.044715, %v3310_v21 }
 0x62d   :  { %v3255_v28 = vpop.f32.mrf.mxu3  ;;  %v3420_v44 = vmul.f32 %v3404_v17, %v3247_v24 }
 0x62e   :  { %v3342_v23 = vadd.f32 %v3326_v36, %v3253_v39  ;;  %v3256_v57 = vadd.f32 %v6517_v47, %v3255_v28 }
 0x62f   :  { %3472 = vmatmul.f32.gmra.mxu0 %v3420_v44 }
 0x630   :  { %v4194_v35 = vpop.eup %4193  ;;  %v3295_v19 = vmul.f32 %v3256_v57, %v3256_v57  ;;  %v3358_v42 = vmul.f32 0.7978846, %v3342_v23 }
 0x631   :  { %v3389_v41 = vadd.f32 1.0, %v4194_v35 }
 0x632   :  { %v3311_v4 = vmul.f32 %v3295_v19, %v3256_v57  ;;  %4195 = vtanh.f32 %v3358_v42 }
 0x633   :  { %v3405_v59 = vmul.f32 0.5, %v3389_v41 }
 0x634   :  { %v3327_v49 = vmul.f32 0.044715, %v3311_v4 }
 0x635   :  { %v3258_v40 = vpop.f32.mrf.mxu3  ;;  %v3421_v9 = vmul.f32 %v3405_v59, %v3250_v7 }
 0x636   :  { %v3343_v14 = vadd.f32 %v3327_v49, %v3256_v57  ;;  %v3259_v61 = vadd.f32 %v6517_v47, %v3258_v40 }
 0x637   :  { %3475 = vmatmul.f32.gmra.mxu0 %v3421_v9 }
 0x638   :  { %v4196_v27 = vpop.eup %4195  ;;  %v3296_v24 = vmul.f32 %v3259_v61, %v3259_v61  ;;  %v3359_v33 = vmul.f32 0.7978846, %v3343_v14 }
 0x639   :  { %v3390_v6 = vadd.f32 1.0, %v4196_v27 }
 0x63a   :  { %v3312_v45 = vmul.f32 %v3296_v24, %v3259_v61  ;;  %4197 = vtanh.f32 %v3359_v33 }
 0x63b   :  { %v3406_v26 = vmul.f32 0.5, %v3390_v6 }
 0x63c   :  { %v3328_v56 = vmul.f32 0.044715, %v3312_v45 }
 0x63d   :  { %v3261_v46 = vpop.f32.mrf.mxu3  ;;  %v3422_v48 = vmul.f32 %v3406_v26, %v3253_v39 }
 0x63e   :  { %v3344_v38 = vadd.f32 %v3328_v56, %v3259_v61  ;;  %v3262_v10 = vadd.f32 %v6517_v47, %v3261_v46 }
 0x63f   :  { %3478 = vmatmul.f32.gmra.mxu0 %v3422_v48 }
 0x640   :  { %v4198_v53 = vpop.eup %4197  ;;  %v3297_v31 = vmul.f32 %v3262_v10, %v3262_v10  ;;  %v3360_v7 = vmul.f32 0.7978846, %v3344_v38 }
 0x641   :  { %v3391_v16 = vadd.f32 1.0, %v4198_v53 }
 0x642   :  { %v3313_v52 = vmul.f32 %v3297_v31, %v3262_v10  ;;  %4199 = vtanh.f32 %v3360_v7 }
 0x643   :  { %v3407_v5 = vmul.f32 0.5, %v3391_v16 }
 0x644   :  { %v3329_v11 = vmul.f32 0.044715, %v3313_v52 }
 0x645   :  { %v3264_v2 = vpop.f32.mrf.mxu3  ;;  %v3423_v18 = vmul.f32 %v3407_v5, %v3256_v57 }
 0x646   :  { %v3345_v37 = vadd.f32 %v3329_v11, %v3262_v10  ;;  %v3265_v8 = vadd.f32 %v6517_v47, %v3264_v2 }
 0x647   :  { %3481 = vmatmul.f32.gmra.mxu0 %v3423_v18 }
 0x648   :  { %v4200_v12 = vpop.eup %4199  ;;  %v3298_v25 = vmul.f32 %v3265_v8, %v3265_v8  ;;  %v3361_v39 = vmul.f32 0.7978846, %v3345_v37 }
 0x649   :  { %v3392_v62 = vadd.f32 1.0, %v4200_v12 }
 0x64a   :  { %v3314_v13 = vmul.f32 %v3298_v25, %v3265_v8  ;;  %4201 = vtanh.f32 %v3361_v39 }
 0x64b   :  { %v3408_v60 = vmul.f32 0.5, %v3392_v62 }
 0x64c   :  { %v3330_v34 = vmul.f32 0.044715, %v3314_v13 }
 0x64d   :  { %v3424_v21 = vmul.f32 %v3408_v60, %v3259_v61 }
 0x64e   :  { %v3346_v17 = vadd.f32 %v3330_v34, %v3265_v8 }
 0x64f   :  { %3484 = vmatmul.f32.gmra.mxu0 %v3424_v21 }
 0x650   :  { %v4202_v36 = vpop.eup %4201  ;;  %v3362_v28 = vmul.f32 0.7978846, %v3346_v17 }
 0x651   :  { %v3393_v44 = vadd.f32 1.0, %v4202_v36 }
 0x652   :  { %4203 = vtanh.f32 %v3362_v28 }
 0x653   :  { %v3409_v23 = vmul.f32 0.5, %v3393_v44 }
 0x655   :  { %v3425_v57 = vmul.f32 %v3409_v23, %v3262_v10 }
 0x657   :  { %3487 = vmatmul.f32.gmra.mxu0 %v3425_v57 }
 0x658   :  { %v4204_v35 = vpop.eup %4203 }
 0x659   :  { %v3394_v19 = vadd.f32 1.0, %v4204_v35 }
 0x65b   :  { %v3410_v42 = vmul.f32 0.5, %v3394_v19 }
 0x65d   :  { %v3426_v41 = vmul.f32 %v3410_v42, %v3265_v8 }
 0x65f   :  { %3490 = vmatmul.f32.gmra.mxu0 %v3426_v41 }
 0x666   :  { %v3267_v4 = vpop.f32.mrf.mxu3 }
 0x667   :  { %v3268_v59 = vadd.f32 %v6517_v47, %v3267_v4 }
 0x669   :  { %v3299_v49 = vmul.f32 %v3268_v59, %v3268_v59 }
 0x66b   :  { %v3315_v40 = vmul.f32 %v3299_v49, %v3268_v59 }
 0x66d   :  { %v3331_v9 = vmul.f32 0.044715, %v3315_v40 }
 0x66f   :  { %v3347_v14 = vadd.f32 %v3331_v9, %v3268_v59 }
 0x671   :  { %v3270_v61 = vpop.f32.mrf.mxu3  ;;  %v3363_v27 = vmul.f32 0.7978846, %v3347_v14 }
 0x672   :  { %v3271_v24 = vadd.f32 %v6517_v47, %v3270_v61 }
 0x673   :  { %4205 = vtanh.f32 %v3363_v27 }
 0x674   :  { %v3300_v33 = vmul.f32 %v3271_v24, %v3271_v24 }
 0x676   :  { %v3316_v6 = vmul.f32 %v3300_v33, %v3271_v24 }
 0x678   :  { %v3332_v45 = vmul.f32 0.044715, %v3316_v6 }
 0x679   :  { %v4206_v26 = vpop.eup %4205  ;;  %v3273_v56 = vpop.f32.mrf.mxu3 }
 0x67a   :  { %v3348_v46 = vadd.f32 %v3332_v45, %v3271_v24  ;;  %v3274_v48 = vadd.f32 %v6517_v47, %v3273_v56  ;;  %v3395_v38 = vadd.f32 1.0, %v4206_v26 }
 0x67c   :  { %v3301_v10 = vmul.f32 %v3274_v48, %v3274_v48  ;;  %v3411_v53 = vmul.f32 0.5, %v3395_v38  ;;  %v3364_v31 = vmul.f32 0.7978846, %v3348_v46 }
 0x67e   :  { %v3317_v7 = vmul.f32 %v3301_v10, %v3274_v48  ;;  %v3427_v16 = vmul.f32 %v3411_v53, %v3268_v59  ;;  %4207 = vtanh.f32 %v3364_v31 }
 0x680   :  { %v3333_v52 = vmul.f32 0.044715, %v3317_v7  ;;  %3493 = vmatmul.f32.gmra.mxu0 %v3427_v16  ;;  %v6550_v7 = vld [vmem:[%s6651_s2 + $0xd] ss:$0 sm:$0xff] }
 0x681   :  { %v3276_v5 = vpop.f32.mrf.mxu3 }
 0x682   :  { %v3349_v11 = vadd.f32 %v3333_v52, %v3274_v48  ;;  %v3277_v2 = vadd.f32 %v6517_v47, %v3276_v5 }
 0x684   :  { %v4208_v18 = vpop.eup %4207  ;;  %v3302_v37 = vmul.f32 %v3277_v2, %v3277_v2  ;;  %v3365_v8 = vmul.f32 0.7978846, %v3349_v11 }
 0x685   :  { %v3396_v12 = vadd.f32 1.0, %v4208_v18 }
 0x686   :  { %v3318_v25 = vmul.f32 %v3302_v37, %v3277_v2  ;;  %4209 = vtanh.f32 %v3365_v8 }
 0x687   :  { %v3412_v39 = vmul.f32 0.5, %v3396_v12 }
 0x688   :  { %v3334_v62 = vmul.f32 0.044715, %v3318_v25 }
 0x689   :  { %v3279_v13 = vpop.f32.mrf.mxu3  ;;  %v3428_v60 = vmul.f32 %v3412_v39, %v3271_v24 }
 0x68a   :  { %v3350_v34 = vadd.f32 %v3334_v62, %v3277_v2  ;;  %v3280_v21 = vadd.f32 %v6517_v47, %v3279_v13 }
 0x68b   :  { %3496 = vmatmul.f32.gmra.mxu0 %v3428_v60 }
 0x68c   :  { %v4210_v17 = vpop.eup %4209  ;;  %v3303_v36 = vmul.f32 %v3280_v21, %v3280_v21  ;;  %v3366_v28 = vmul.f32 0.7978846, %v3350_v34 }
 0x68d   :  { %v3397_v44 = vadd.f32 1.0, %v4210_v17 }
 0x68e   :  { %v3319_v23 = vmul.f32 %v3303_v36, %v3280_v21  ;;  %4211 = vtanh.f32 %v3366_v28 }
 0x68f   :  { %v3413_v57 = vmul.f32 0.5, %v3397_v44 }
 0x690   :  { %v3335_v35 = vmul.f32 0.044715, %v3319_v23 }
 0x691   :  { %v3282_v19 = vpop.f32.mrf.mxu3  ;;  %v3429_v42 = vmul.f32 %v3413_v57, %v3274_v48 }
 0x692   :  { %v3351_v41 = vadd.f32 %v3335_v35, %v3280_v21  ;;  %v3283_v4 = vadd.f32 %v6517_v47, %v3282_v19 }
 0x693   :  { %3499 = vmatmul.f32.gmra.mxu0 %v3429_v42 }
 0x694   :  { %v4212_v59 = vpop.eup %4211  ;;  %v3304_v49 = vmul.f32 %v3283_v4, %v3283_v4  ;;  %v3367_v40 = vmul.f32 0.7978846, %v3351_v41 }
 0x695   :  { %v3398_v9 = vadd.f32 1.0, %v4212_v59 }
 0x696   :  { %v3320_v14 = vmul.f32 %v3304_v49, %v3283_v4  ;;  %4213 = vtanh.f32 %v3367_v40 }
 0x697   :  { %v3414_v61 = vmul.f32 0.5, %v3398_v9 }
 0x698   :  { %v3336_v27 = vmul.f32 0.044715, %v3320_v14 }
 0x699   :  { %v3430_v24 = vmul.f32 %v3414_v61, %v3277_v2  ;;  %v3285_v6 = vpop.f32.mrf.mxu3 }
 0x69a   :  { %v3352_v33 = vadd.f32 %v3336_v27, %v3283_v4  ;;  %v3286_v45 = vadd.f32 %v6517_v47, %v3285_v6 }
 0x69b   :  { %3502 = vmatmul.f32.gmra.mxu0 %v3430_v24 }
 0x69c   :  { %v4214_v26 = vpop.eup %4213  ;;  %v3368_v56 = vmul.f32 0.7978846, %v3352_v33  ;;  %v3305_v46 = vmul.f32 %v3286_v45, %v3286_v45 }
 0x69d   :  { %v3399_v48 = vadd.f32 1.0, %v4214_v26 }
 0x69e   :  { %4215 = vtanh.f32 %v3368_v56  ;;  %v3321_v38 = vmul.f32 %v3305_v46, %v3286_v45 }
 0x69f   :  { %v3415_v10 = vmul.f32 0.5, %v3399_v48 }
 0x6a0   :  { %v3337_v53 = vmul.f32 0.044715, %v3321_v38 }
 0x6a1   :  { %v3431_v31 = vmul.f32 %v3415_v10, %v3280_v21  ;;  %v3288_v52 = vpop.f32.mrf.mxu3 }
 0x6a2   :  { %v3353_v16 = vadd.f32 %v3337_v53, %v3286_v45  ;;  %v3289_v11 = vadd.f32 %v6517_v47, %v3288_v52 }
 0x6a3   :  { %3505 = vmatmul.f32.gmra.mxu0 %v3431_v31 }
 0x6a4   :  { %v4216_v5 = vpop.eup %4215  ;;  %v3470_v2 = vpop.f32.mrf.mxu0  ;;  %v3369_v8 = vmul.f32 0.7978846, %v3353_v16  ;;  %v3306_v12 = vmul.f32 %v3289_v11, %v3289_v11 }
 0x6a5   :  { %v3471_v18 = vadd.f32 %v6550_v7, %v3470_v2  ;;  %v3400_v37 = vadd.f32 1.0, %v4216_v5 }
 0x6a6   :  { %4217 = vtanh.f32 %v3369_v8  ;;  %v3322_v62 = vmul.f32 %v3306_v12, %v3289_v11 }
 0x6a7   :  { %v3518_v25 = vadd.f32 %v3471_v18, %v6141_v51  ;;  %v3416_v39 = vmul.f32 0.5, %v3400_v37 }
 0x6a8   :  { %v3338_v60 = vmul.f32 0.044715, %v3322_v62 }
 0x6a9   :  { %3534 = vst.msk [vmem:[%s6655_s6] sm:$0xff] %vm73_vm0, %v3518_v25  ;;  %v3432_v13 = vmul.f32 %v3416_v39, %v3283_v4 }
 0x6aa   :  { %v3354_v47 = vadd.f32 %v3338_v60, %v3289_v11 }
 0x6ab   :  { %3508 = vmatmul.f32.gmra.mxu0 %v3432_v13 }
 0x6ac   :  { %v4218_v34 = vpop.eup %4217  ;;  %v3473_v21 = vpop.f32.mrf.mxu0  ;;  %v3370_v28 = vmul.f32 0.7978846, %v3354_v47 }
 0x6ad   :  { %v3474_v17 = vadd.f32 %v6550_v7, %v3473_v21  ;;  %v3401_v36 = vadd.f32 1.0, %v4218_v34 }
 0x6ae   :  { %4219 = vtanh.f32 %v3370_v28 }
 0x6af   :  { %v3519_v51 = vadd.f32 %v3474_v17, %v6156_v63  ;;  %v3417_v44 = vmul.f32 0.5, %v3401_v36 }
 0x6b1   :  { %3535 = vst.msk [vmem:[%s6655_s6 + $0x8] sm:$0xff] %vm73_vm0, %v3519_v51  ;;  %v3433_v23 = vmul.f32 %v3417_v44, %v3286_v45 }
 0x6b3   :  { %3511 = vmatmul.f32.gmra.mxu0 %v3433_v23 }
 0x6b4   :  { %v3476_v57 = vpop.f32.mrf.mxu0  ;;  %v4220_v35 = vpop.eup %4219 }
 0x6b5   :  { %v3477_v19 = vadd.f32 %v6550_v7, %v3476_v57  ;;  %v3402_v42 = vadd.f32 1.0, %v4220_v35 }
 0x6b7   :  { %v3520_v41 = vadd.f32 %v3477_v19, %v6168_v50  ;;  %v3418_v4 = vmul.f32 0.5, %v3402_v42 }
 0x6b9   :  { %3536 = vst.msk [vmem:[%s6655_s6 + $0x10] sm:$0xff] %vm73_vm0, %v3520_v41  ;;  %v3434_v63 = vmul.f32 %v3418_v4, %v3289_v11 }
 0x6bb   :  { %3514 = vmatmul.f32.gmra.mxu0 %v3434_v63 }
 0x6bc   :  { %v3479_v59 = vpop.f32.mrf.mxu0 }
 0x6bd   :  { %v3480_v49 = vadd.f32 %v6550_v7, %v3479_v59 }
 0x6bf   :  { %v3521_v40 = vadd.f32 %v3480_v49, %v6179_v43 }
 0x6c1   :  { %3537 = vst.msk [vmem:[%s6655_s6 + $0x18] sm:$0xff] %vm73_vm0, %v3521_v40 }
 0x6c4   :  { %v3482_v9 = vpop.f32.mrf.mxu0 }
 0x6c5   :  { %v3483_v50 = vadd.f32 %v6550_v7, %v3482_v9 }
 0x6c7   :  { %v3522_v14 = vadd.f32 %v3483_v50, %v6190_v55 }
 0x6c9   :  { %3538 = vst.msk [vmem:[%s6655_s6 + $0x20] sm:$0xff] %vm73_vm0, %v3522_v14 }
 0x6cc   :  { %v3485_v61 = vpop.f32.mrf.mxu0 }
 0x6cd   :  { %v3486_v27 = vadd.f32 %v6550_v7, %v3485_v61 }
 0x6cf   :  { %v3523_v43 = vadd.f32 %v3486_v27, %v6201_v20 }
 0x6d1   :  { %3539 = vst.msk [vmem:[%s6655_s6 + $0x28] sm:$0xff] %vm73_vm0, %v3523_v43 }
 0x6d4   :  { %v3488_v24 = vpop.f32.mrf.mxu0 }
 0x6d5   :  { %v3489_v33 = vadd.f32 %v6550_v7, %v3488_v24 }
 0x6d7   :  { %v3524_v55 = vadd.f32 %v3489_v33, %v6212_v30 }
 0x6d9   :  { %3540 = vst.msk [vmem:[%s6655_s6 + $0x30] sm:$0xff] %vm73_vm0, %v3524_v55 }
 0x6dc   :  { %v3491_v6 = vpop.f32.mrf.mxu0 }
 0x6dd   :  { %v3492_v45 = vadd.f32 %v6550_v7, %v3491_v6 }
 0x6df   :  { %v3525_v20 = vadd.f32 %v3492_v45, %v6223_v32 }
 0x6e1   :  { %3541 = vst.msk [vmem:[%s6655_s6 + $0x38] sm:$0xff] %vm73_vm0, %v3525_v20 }
 0x6fd   :  { %v3494_v26 = vpop.f32.mrf.mxu0 }
 0x6fe   :  { %v3495_v56 = vadd.f32 %v6550_v7, %v3494_v26 }
 0x700   :  { %v3526_v30 = vadd.f32 %v3495_v56, %v6234_v22 }
 0x702   :  { %3542 = vst.msk [vmem:[%s6655_s6 + $0x40] sm:$0xff] %vm73_vm0, %v3526_v30 }
 0x708   :  { %v3497_v46 = vpop.f32.mrf.mxu0 }
 0x709   :  { %v3498_v48 = vadd.f32 %v6550_v7, %v3497_v46 }
 0x70b   :  { %v3527_v32 = vadd.f32 %v3498_v48, %v6245_v3 }
 0x70d   :  { %3543 = vst.msk [vmem:[%s6655_s6 + $0x48] sm:$0xff] %vm73_vm0, %v3527_v32 }
 0x710   :  { %v3500_v38 = vpop.f32.mrf.mxu0 }
 0x711   :  { %v3501_v10 = vadd.f32 %v6550_v7, %v3500_v38 }
 0x713   :  { %v3528_v22 = vadd.f32 %v3501_v10, %v6256_v29 }
 0x715   :  { %3544 = vst.msk [vmem:[%s6655_s6 + $0x50] sm:$0xff] %vm73_vm0, %v3528_v22 }
 0x718   :  { %v3503_v53 = vpop.f32.mrf.mxu0 }
 0x719   :  { %v3504_v31 = vadd.f32 %v6550_v7, %v3503_v53 }
 0x71b   :  { %v3529_v3 = vadd.f32 %v3504_v31, %v6270_v54 }
 0x71d   :  { %3545 = vst.msk [vmem:[%s6655_s6 + $0x58] sm:$0xff] %vm73_vm0, %v3529_v3 }
 0x720   :  { %v3506_v16 = vpop.f32.mrf.mxu0 }
 0x721   :  { %v3507_v52 = vadd.f32 %v6550_v7, %v3506_v16 }
 0x723   :  { %v3530_v29 = vadd.f32 %v3507_v52, %v6296_v58 }
 0x725   :  { %3546 = vst.msk [vmem:[%s6655_s6 + $0x60] sm:$0xff] %vm73_vm0, %v3530_v29 }
 0x728   :  { %v3509_v5 = vpop.f32.mrf.mxu0 }
 0x729   :  { %v3510_v11 = vadd.f32 %v6550_v7, %v3509_v5 }
 0x72b   :  { %v3531_v54 = vadd.f32 %v3510_v11, %v6313_v15 }
 0x72d   :  { %3547 = vst.msk [vmem:[%s6655_s6 + $0x68] sm:$0xff] %vm73_vm0, %v3531_v54 }
 0x730   :  { %v3512_v2 = vpop.f32.mrf.mxu0 }
 0x731   :  { %v3513_v18 = vadd.f32 %v6550_v7, %v3512_v2 }
 0x733   :  { %v3532_v58 = vadd.f32 %v3513_v18, %v6330_v1 }
 0x735   :  { %3548 = vst.msk [vmem:[%s6655_s6 + $0x70] sm:$0xff] %vm73_vm0, %v3532_v58 }
 0x738   :  { %v3515_v37 = vpop.f32.mrf.mxu0 }
 0x739   :  { %v3516_v8 = vadd.f32 %v6550_v7, %v3515_v37 }
 0x73b   :  { %v3533_v15 = vadd.f32 %v3516_v8, %v6363_v0 }
 0x73d   :  { %3549 = vst.msk [vmem:[%s6655_s6 + $0x78] sm:$0xff] %vm73_vm0, %v3533_v15 }
 0x73e   :  { %3554 = vsyncpa [#allocation4], 1 }
 0x73f   :  { %3555 = vsyncpa [#allocation6], 1 }

</bundles_post_ra>
